<compile_context>
chip_gen: v7x
topology: tpu7x:2x2x1
jax: 0.10.0
libtpu: 0.0.40
codegen_flags: <defaults>
</compile_context>

<pallas_src>
import math
from functools import partial

import jax
import jax.numpy as jnp
from jax import lax
from jax.experimental import pallas as pl
from jax.experimental.pallas import tpu as pltpu

NEG = -1e30  # stand-in for -inf (same softmax result when a row has a valid key)


# ----------------------------- small helpers -----------------------------

def _compiler_params(*operands, grid_dims=1):
    """Parallel grid semantics + an explicit scoped-VMEM budget with headroom."""
    nbytes = sum(int(a.size) * a.dtype.itemsize for a in operands)
    vmem = int(min(64 * 1024 * 1024, max(32 * 1024 * 1024, 3 * nbytes)))
    return pltpu.CompilerParams(
        dimension_semantics=("parallel",) * grid_dims,
        vmem_limit_bytes=vmem)


def _layer_norm(x, g, b, eps=1e-5):
    """LayerNorm over the last axis (f32 math). g, b: [1, D] f32."""
    mean = jnp.mean(x, axis=-1, keepdims=True)
    xc = x - mean
    var = jnp.mean(xc * xc, axis=-1, keepdims=True)
    return xc * lax.rsqrt(var + eps) * g + b


def _mha_block(q, k, v, wo, pad_row, *, Sq, Sk, H, Dh, causal):
    """Single-batch multi-head attention with a single fused output projection.

    q: [Sq, E] f32, k/v: [Sk, E] f32 (post-projection), wo: [E, E] bf16,
    pad_row: [1, Sk] f32 (1.0 = masked key).  Returns [Sq, E] f32 (no wo bias).
    Causal + key-padding masks are built in-kernel (no dense HBM mask).
    Attention matmuls run bf16 x bf16 -> f32 on the MXU; softmax math is f32.
    """
    E = H * Dh
    scale = 1.0 / math.sqrt(Dh)

    masked = jnp.broadcast_to(pad_row > 0.5, (Sq, Sk))
    if causal:
        row = lax.broadcasted_iota(jnp.int32, (Sq, Sk), 0)
        col = lax.broadcasted_iota(jnp.int32, (Sq, Sk), 1)
        masked = jnp.logical_or(masked, col > row)
    add = jnp.where(masked, NEG, 0.0).astype(jnp.float32)           # [Sq, Sk]

    q_bf = (q * scale).astype(jnp.bfloat16)
    k_bf = k.astype(jnp.bfloat16)
    v_bf = v.astype(jnp.bfloat16)

    heads = []
    for h in range(H):                                              # small H, unrolled
        qh = q_bf[:, h * Dh:(h + 1) * Dh]
        kh = k_bf[:, h * Dh:(h + 1) * Dh]
        vh = v_bf[:, h * Dh:(h + 1) * Dh]
        s = lax.dot_general(qh, kh, (((1,), (1,)), ((), ())),
                            preferred_element_type=jnp.float32)     # [Sq, Sk] f32
        s = s + add
        s = s - jnp.max(s, axis=-1, keepdims=True)
        p = jnp.exp(s)
        denom = jnp.sum(p, axis=-1, keepdims=True)
        p = p * pl.reciprocal(denom, approx=False)                  # exact, parity-safe
        heads.append(jnp.dot(p.astype(jnp.bfloat16), vh,
                             preferred_element_type=jnp.float32))   # [Sq, Dh]
    attn = jnp.concatenate(heads, axis=-1)                          # lane-axis concat
    return jnp.dot(attn.astype(jnp.bfloat16), wo,
                   preferred_element_type=jnp.float32)              # single K=E matmul


# ----------------------------- fused layer kernels -----------------------------

def _encoder_layer_kernel(x_ref, pad_ref, wqkv_ref, bqkv_ref, wo_ref, bo_ref,
                          ln1g_ref, ln1b_ref, wff1_ref, bff1_ref,
                          wff2_ref, bff2_ref, ln2g_ref, ln2b_ref, o_ref,
                          *, S, H, Dh):
    E = H * Dh
    x_in = x_ref[0]                                                 # [S, E] bf16
    # fused QKV projection (bf16 x bf16 -> f32)
    qkv = jnp.dot(x_in, wqkv_ref[...],
                  preferred_element_type=jnp.float32) + bqkv_ref[...]
    attn = _mha_block(qkv[:, :E], qkv[:, E:2 * E], qkv[:, 2 * E:],
                      wo_ref[...], pad_ref[0],
                      Sq=S, Sk=S, H=H, Dh=Dh, causal=False)
    attn = attn + bo_ref[...]
    x = _layer_norm(x_in.astype(jnp.float32) + attn, ln1g_ref[...], ln1b_ref[...])
    h = jnp.dot(x.astype(jnp.bfloat16), wff1_ref[...],
                preferred_element_type=jnp.float32) + bff1_ref[...]
    h = jnp.maximum(h, 0.0)
    ff = jnp.dot(h.astype(jnp.bfloat16), wff2_ref[...],
                 preferred_element_type=jnp.float32) + bff2_ref[...]
    x = _layer_norm(x + ff, ln2g_ref[...], ln2b_ref[...])
    o_ref[0] = x.astype(o_ref.dtype)


def _decoder_layer_kernel(y_ref, mem_ref, tpad_ref, spad_ref,
                          sa_wqkv_ref, sa_bqkv_ref, sa_wo_ref, sa_bo_ref,
                          ln1g_ref, ln1b_ref,
                          ca_wq_ref, ca_bq_ref, ca_wkv_ref, ca_bkv_ref,
                          ca_wo_ref, ca_bo_ref, ln2g_ref, ln2b_ref,
                          wff1_ref, bff1_ref, wff2_ref, bff2_ref,
                          ln3g_ref, ln3b_ref, o_ref,
                          *, T, S, H, Dh):
    E = H * Dh
    y_in = y_ref[0]                                                 # [T, E] bf16
    mem = mem_ref[0]                                                # [S, E] bf16

    # --- causal self-attention (causal + tgt key-padding, built in-kernel) ---
    qkv = jnp.dot(y_in, sa_wqkv_ref[...],
                  preferred_element_type=jnp.float32) + sa_bqkv_ref[...]
    sa = _mha_block(qkv[:, :E], qkv[:, E:2 * E], qkv[:, 2 * E:],
                    sa_wo_ref[...], tpad_ref[0],
                    Sq=T, Sk=T, H=H, Dh=Dh, causal=True)
    sa = sa + sa_bo_ref[...]
    y = _layer_norm(y_in.astype(jnp.float32) + sa, ln1g_ref[...], ln1b_ref[...])

    # --- cross-attention over encoder memory (src key-padding) ---
    q = jnp.dot(y.astype(jnp.bfloat16), ca_wq_ref[...],
                preferred_element_type=jnp.float32) + ca_bq_ref[...]
    kv = jnp.dot(mem, ca_wkv_ref[...],
                 preferred_element_type=jnp.float32) + ca_bkv_ref[...]
    ca = _mha_block(q, kv[:, :E], kv[:, E:], ca_wo_ref[...], spad_ref[0],
                    Sq=T, Sk=S, H=H, Dh=Dh, causal=False)
    ca = ca + ca_bo_ref[...]
    y = _layer_norm(y + ca, ln2g_ref[...], ln2b_ref[...])

    # --- feed-forward ---
    h = jnp.dot(y.astype(jnp.bfloat16), wff1_ref[...],
                preferred_element_type=jnp.float32) + bff1_ref[...]
    h = jnp.maximum(h, 0.0)
    ff = jnp.dot(h.astype(jnp.bfloat16), wff2_ref[...],
                 preferred_element_type=jnp.float32) + bff2_ref[...]
    y = _layer_norm(y + ff, ln3g_ref[...], ln3b_ref[...])
    o_ref[0] = y.astype(o_ref.dtype)


def _layer_norm_kernel(x_ref, g_ref, b_ref, o_ref):
    o_ref[0] = _layer_norm(x_ref[0].astype(jnp.float32),
                           g_ref[...], b_ref[...]).astype(o_ref.dtype)


def _final_kernel(y_ref, g_ref, b_ref, w_ref, bias_ref, o_ref):
    # fused decoder final LayerNorm + one vocab-tile of the output projection
    y = _layer_norm(y_ref[...].astype(jnp.float32), g_ref[...], b_ref[...])
    o_ref[...] = (jnp.dot(y.astype(jnp.bfloat16), w_ref[...],
                          preferred_element_type=jnp.float32)
                  + bias_ref[...]).astype(o_ref.dtype)


# ----------------------------- pallas_call wrappers -----------------------------

def _weight_spec(a):
    # full-array block, constant index map -> stays VMEM-resident across the grid
    return pl.BlockSpec(a.shape, lambda b: (0,) * a.ndim)


def encoder_layer(x, src_pad, lp, *, H, Dh):
    B, S, D = x.shape
    act_spec = pl.BlockSpec((1, S, D), lambda b: (b, 0, 0))
    pad_spec = pl.BlockSpec((1, 1, S), lambda b: (b, 0, 0))
    weights = [lp["wqkv"], lp["bqkv"], lp["wo"], lp["bo"],
               lp["ln1_g"], lp["ln1_b"], lp["wff1"], lp["bff1"],
               lp["wff2"], lp["bff2"], lp["ln2_g"], lp["ln2_b"]]
    return pl.pallas_call(
        partial(_encoder_layer_kernel, S=S, H=H, Dh=Dh),
        grid=(B,),
        out_shape=jax.ShapeDtypeStruct((B, S, D), x.dtype),
        in_specs=[act_spec, pad_spec] + [_weight_spec(a) for a in weights],
        out_specs=act_spec,
        input_output_aliases={0: 0},
        compiler_params=_compiler_params(x, src_pad, *weights),
    )(x, src_pad, *weights)


def decoder_layer(y, mem, tgt_pad, src_pad, lp, *, H, Dh):
    B, T, D = y.shape
    S = mem.shape[1]
    y_spec = pl.BlockSpec((1, T, D), lambda b: (b, 0, 0))
    mem_spec = pl.BlockSpec((1, S, D), lambda b: (b, 0, 0))
    tpad_spec = pl.BlockSpec((1, 1, T), lambda b: (b, 0, 0))
    spad_spec = pl.BlockSpec((1, 1, S), lambda b: (b, 0, 0))
    weights = [lp["sa_wqkv"], lp["sa_bqkv"], lp["sa_wo"], lp["sa_bo"],
               lp["ln1_g"], lp["ln1_b"],
               lp["ca_wq"], lp["ca_bq"], lp["ca_wkv"], lp["ca_bkv"],
               lp["ca_wo"], lp["ca_bo"], lp["ln2_g"], lp["ln2_b"],
               lp["wff1"], lp["bff1"], lp["wff2"], lp["bff2"],
               lp["ln3_g"], lp["ln3_b"]]
    return pl.pallas_call(
        partial(_decoder_layer_kernel, T=T, S=S, H=H, Dh=Dh),
        grid=(B,),
        out_shape=jax.ShapeDtypeStruct((B, T, D), y.dtype),
        in_specs=[y_spec, mem_spec, tpad_spec, spad_spec]
                 + [_weight_spec(a) for a in weights],
        out_specs=y_spec,
        input_output_aliases={0: 0},
        compiler_params=_compiler_params(y, mem, *weights),
    )(y, mem, tgt_pad, src_pad, *weights)


def layer_norm(x, g, b):
    B, S, D = x.shape
    spec = pl.BlockSpec((1, S, D), lambda i: (i, 0, 0))
    w_spec = pl.BlockSpec((1, D), lambda i: (0, 0))
    return pl.pallas_call(
        _layer_norm_kernel,
        grid=(B,),
        out_shape=jax.ShapeDtypeStruct((B, S, D), x.dtype),
        in_specs=[spec, w_spec, w_spec],
        out_specs=spec,
        compiler_params=_compiler_params(x, g, b),
    )(x, g, b)


def final_projection(y2d, g, b, w_pad, b_pad, *, tn):
    """Fused final LayerNorm + vocab projection, tiled over the padded vocab axis."""
    M, D = y2d.shape
    vpad = w_pad.shape[1]
    return pl.pallas_call(
        _final_kernel,
        grid=(vpad // tn,),
        out_shape=jax.ShapeDtypeStruct((M, vpad), jnp.float32),
        in_specs=[pl.BlockSpec((M, D), lambda j: (0, 0)),      # activations resident
                  pl.BlockSpec((1, D), lambda j: (0, 0)),
                  pl.BlockSpec((1, D), lambda j: (0, 0)),
                  pl.BlockSpec((D, tn), lambda j: (0, j)),     # weight streams by N-tile
                  pl.BlockSpec((1, tn), lambda j: (0, j))],
        out_specs=pl.BlockSpec((M, tn), lambda j: (0, j)),     # lane-dense output tiles
        compiler_params=_compiler_params(y2d, g, b, w_pad, b_pad),
    )(y2d, g, b, w_pad, b_pad)


# ----------------------------- model pieces -----------------------------

def make_pe(max_len, d_model):
    position = jnp.arange(max_len, dtype=jnp.float32)[:, None]
    div_term = jnp.exp(jnp.arange(0, d_model, 2, dtype=jnp.float32)
                       * (-math.log(10000.0) / d_model))
    pe = jnp.zeros((max_len, d_model), jnp.float32)
    pe = pe.at[:, 0::2].set(jnp.sin(position * div_term))
    pe = pe.at[:, 1::2].set(jnp.cos(position * div_term))
    return pe[:, None, :]   # [max_len, 1, d_model]  (pe.unsqueeze(0).transpose(0,1))


def init_params(key, vocab_size, d_model, enc_layers, dec_layers, d_ff, pad_id):
    """Weights stored once in compute layout ([in, out]); matmul weights bf16,
    biases / LayerNorm params f32."""
    keys = iter(jax.random.split(key, 512))
    D, F = d_model, d_ff
    WDT = jnp.bfloat16

    def nrm(shape, scale=0.02):
        return (scale * jax.random.normal(next(keys), shape)).astype(jnp.float32)

    def ln():
        return jnp.ones((1, D), jnp.float32), jnp.zeros((1, D), jnp.float32)

    emb = nrm((vocab_size, D), 1.0).at[pad_id].set(0.0)   # nn.Embedding(padding_idx)

    vpad = ((vocab_size + 127) // 128) * 128              # lane-dense vocab output
    out_w = (jnp.zeros((D, vpad), jnp.float32)
             .at[:, :vocab_size].set(nrm((vocab_size, D)).T)).astype(WDT)
    out_b = jnp.zeros((1, vpad), jnp.float32).at[:, :vocab_size].set(nrm((vocab_size,)))

    params = {"embedding": emb, "enc": [], "dec": [],
              "out_w_pad": out_w, "out_b_pad": out_b}
    g, b = ln(); params["enc_norm"] = {"g": g, "b": b}
    g, b = ln(); params["dec_norm"] = {"g": g, "b": b}

    for _ in range(enc_layers):
        in_w, in_b = nrm((3 * D, D)), nrm((3 * D,))
        ln1g, ln1b = ln(); ln2g, ln2b = ln()
        params["enc"].append({
            "wqkv": in_w.T.astype(WDT), "bqkv": in_b.reshape(1, 3 * D),
            "wo": nrm((D, D)).T.astype(WDT), "bo": nrm((D,)).reshape(1, D),
            "ln1_g": ln1g, "ln1_b": ln1b,
            "wff1": nrm((F, D)).T.astype(WDT), "bff1": nrm((F,)).reshape(1, F),
            "wff2": nrm((D, F)).T.astype(WDT), "bff2": nrm((D,)).reshape(1, D),
            "ln2_g": ln2g, "ln2_b": ln2b,
        })
    for _ in range(dec_layers):
        sa_w, sa_b = nrm((3 * D, D)), nrm((3 * D,))
        ca_w, ca_b = nrm((3 * D, D)), nrm((3 * D,))
        ln1g, ln1b = ln(); ln2g, ln2b = ln(); ln3g, ln3b = ln()
        params["dec"].append({
            "sa_wqkv": sa_w.T.astype(WDT), "sa_bqkv": sa_b.reshape(1, 3 * D),
            "sa_wo": nrm((D, D)).T.astype(WDT), "sa_bo": nrm((D,)).reshape(1, D),
            "ln1_g": ln1g, "ln1_b": ln1b,
            "ca_wq": ca_w[:D].T.astype(WDT), "ca_bq": ca_b[:D].reshape(1, D),
            "ca_wkv": ca_w[D:].T.astype(WDT), "ca_bkv": ca_b[D:].reshape(1, 2 * D),
            "ca_wo": nrm((D, D)).T.astype(WDT), "ca_bo": nrm((D,)).reshape(1, D),
            "ln2_g": ln2g, "ln2_b": ln2b,
            "wff1": nrm((F, D)).T.astype(WDT), "bff1": nrm((F,)).reshape(1, F),
            "wff2": nrm((D, F)).T.astype(WDT), "bff2": nrm((D,)).reshape(1, D),
            "ln3_g": ln3g, "ln3_b": ln3b,
        })
    return params


@partial(jax.jit, static_argnames=("num_heads", "vocab_size", "pad_id"))
def transformer_forward(params, src, tgt, pe, *, num_heads, vocab_size, pad_id=0):
    B, S = src.shape
    T = tgt.shape[1]
    D = params["embedding"].shape[1]
    H = num_heads
    Dh = D // H

    # key-padding vectors (tiny; the dense per-head mask is built in-kernel)
    src_pad = (src == pad_id).astype(jnp.float32).reshape(B, 1, S)
    tgt_pad = (tgt == pad_id).astype(jnp.float32).reshape(B, 1, T)

    # embedding gather (plain-JAX glue) + PositionalEncoding
    # (faithful quirk: pe indexed by x.size(0)==batch with batch_first, broadcast over seq)
    src_e = jnp.take(params["embedding"], src, axis=0) + pe[:B]
    tgt_e = jnp.take(params["embedding"], tgt, axis=0) + pe[:B]

    # ---- encoder (post-norm), one fused pallas_call per layer, gridded over B ----
    x = src_e.astype(jnp.bfloat16)                               # [B, S, D]
    for lp in params["enc"]:
        x = encoder_layer(x, src_pad, lp, H=H, Dh=Dh)
    memory = layer_norm(x, params["enc_norm"]["g"], params["enc_norm"]["b"])

    # ---- decoder (post-norm), one fused pallas_call per layer, gridded over B ----
    y = tgt_e.astype(jnp.bfloat16)                               # [B, T, D]
    for lp in params["dec"]:
        y = decoder_layer(y, memory, tgt_pad, src_pad, lp, H=H, Dh=Dh)

    # ---- fused final LayerNorm + vocab projection, tiled over the vocab axis ----
    vpad = params["out_w_pad"].shape[1]
    tn = 512 if vpad % 512 == 0 else (256 if vpad % 256 == 0 else 128)
    logits = final_projection(y.reshape(B * T, D),
                              params["dec_norm"]["g"], params["dec_norm"]["b"],
                              params["out_w_pad"], params["out_b_pad"], tn=tn)
    return logits[:, :vocab_size].reshape(B, T, vocab_size)


if __name__ == "__main__":
    vocab_size, d_model = 50, 32
    encoder_layers, decoder_layers = 2, 2
    dim_feedforward, num_heads = 64, 4
    pad_id = 0
    B, S, T = 2, 8, 8

    key = jax.random.PRNGKey(0)
    kp, ks, kt = jax.random.split(key, 3)
    params = init_params(kp, vocab_size, d_model, encoder_layers, decoder_layers,
                         dim_feedforward, pad_id)
    pe = make_pe(5000, d_model)

    # tokens in [1, vocab) -> no pad tokens (avoids fully-masked softmax rows)
    src = jax.random.randint(ks, (B, S), 1, vocab_size, dtype=jnp.int32)
    tgt = jax.random.randint(kt, (B, T), 1, vocab_size, dtype=jnp.int32)

    out = transformer_forward(params, src, tgt, pe,
                              num_heads=num_heads, vocab_size=vocab_size, pad_id=pad_id)
    out = jax.block_until_ready(out)
    assert out.shape == (B, T, vocab_size)
    assert bool(jnp.all(jnp.isfinite(out)))
    print("KERNEL_OK")
</pallas_src>

<mosaic_0001>
module attributes {stable_mosaic.version = 11 : i64} {
  func.func @_layer_norm_kernel(%arg0: i32, %arg1: memref<1x8x32xbf16, #tpu.memory_space<vmem>>, %arg2: memref<1x32xf32, #tpu.memory_space<vmem>>, %arg3: memref<1x32xf32, #tpu.memory_space<vmem>>, %arg4: memref<1x8x32xbf16, #tpu.memory_space<vmem>>) attributes {dimension_semantics = [#tpu.dimension_semantics<parallel>], iteration_bounds = array<i64: 2>, scalar_prefetch = 0 : i64, scratch_operands = 0 : i64, tpu.core_type = #tpu.core_type<tc>, window_params = [{transform_indices = @transform_0, window_bounds = array<i64: 1, 8, 32>}, {pipeline_mode = #tpu.pipeline_mode<synchronous>, transform_indices = @transform_1, window_bounds = array<i64: 1, 32>}, {pipeline_mode = #tpu.pipeline_mode<synchronous>, transform_indices = @transform_2, window_bounds = array<i64: 1, 32>}, {transform_indices = @transform_3, window_bounds = array<i64: 1, 8, 32>}]} {
    %c0 = arith.constant 0 : index
    %c0_0 = arith.constant 0 : index
    %c0_1 = arith.constant 0 : index
    %0 = vector.load %arg1[%c0, %c0_0, %c0_1] : memref<1x8x32xbf16, #tpu.memory_space<vmem>>, vector<1x8x32xbf16>
    %1 = vector.shape_cast %0 : vector<1x8x32xbf16> to vector<8x32xbf16>
    %2 = arith.extf %1 : vector<8x32xbf16> to vector<8x32xf32>
    %c0_2 = arith.constant 0 : index
    %c0_3 = arith.constant 0 : index
    %3 = vector.load %arg2[%c0_2, %c0_3] : memref<1x32xf32, #tpu.memory_space<vmem>>, vector<1x32xf32>
    %c0_4 = arith.constant 0 : index
    %c0_5 = arith.constant 0 : index
    %4 = vector.load %arg3[%c0_4, %c0_5] : memref<1x32xf32, #tpu.memory_space<vmem>>, vector<1x32xf32>
    %cst = arith.constant dense<0.000000e+00> : vector<8xf32>
    %5 = vector.multi_reduction <add>, %2, %cst [1] : vector<8x32xf32> to vector<8xf32>
    %6 = vector.shape_cast %5 : vector<8xf32> to vector<8x1xf32>
    %cst_6 = arith.constant 3.200000e+01 : f32
    %7 = vector.broadcast %cst_6 : f32 to vector<8x1xf32>
    %8 = arith.divf %6, %7 : vector<8x1xf32>
    %9 = vector.broadcast %8 : vector<8x1xf32> to vector<8x32xf32>
    %10 = arith.subf %2, %9 : vector<8x32xf32>
    %11 = arith.mulf %10, %10 : vector<8x32xf32>
    %cst_7 = arith.constant dense<0.000000e+00> : vector<8xf32>
    %12 = vector.multi_reduction <add>, %11, %cst_7 [1] : vector<8x32xf32> to vector<8xf32>
    %13 = vector.shape_cast %12 : vector<8xf32> to vector<8x1xf32>
    %cst_8 = arith.constant 3.200000e+01 : f32
    %14 = vector.broadcast %cst_8 : f32 to vector<8x1xf32>
    %15 = arith.divf %13, %14 : vector<8x1xf32>
    %cst_9 = arith.constant 9.99999974E-6 : f32
    %16 = vector.broadcast %cst_9 : f32 to vector<8x1xf32>
    %17 = arith.addf %15, %16 : vector<8x1xf32>
    %18 = math.rsqrt %17 : vector<8x1xf32>
    %19 = vector.broadcast %18 : vector<8x1xf32> to vector<8x32xf32>
    %20 = arith.mulf %10, %19 : vector<8x32xf32>
    %21 = vector.broadcast %3 : vector<1x32xf32> to vector<8x32xf32>
    %22 = arith.mulf %20, %21 : vector<8x32xf32>
    %23 = vector.broadcast %4 : vector<1x32xf32> to vector<8x32xf32>
    %24 = arith.addf %22, %23 : vector<8x32xf32>
    %25 = arith.truncf %24 : vector<8x32xf32> to vector<8x32xbf16>
    %c0_10 = arith.constant 0 : index
    %c0_11 = arith.constant 0 : index
    %c0_12 = arith.constant 0 : index
    %26 = vector.load %arg4[%c0_10, %c0_11, %c0_12] : memref<1x8x32xbf16, #tpu.memory_space<vmem>>, vector<1x8x32xbf16>
    %27 = vector.shape_cast %26 : vector<1x8x32xbf16> to vector<8x32xbf16>
    %28 = vector.shape_cast %25 : vector<8x32xbf16> to vector<1x8x32xbf16>
    tpu.vector_store %arg4[%c0_10, %c0_11, %c0_12], %28 {strides = array<i32>} : memref<1x8x32xbf16, #tpu.memory_space<vmem>>, vector<1x8x32xbf16>,
    return
  }
  func.func @transform_0(%arg0: i32) -> (i32, i32, i32) {
    %c0_i32 = arith.constant 0 : i32
    %c0_i32_0 = arith.constant 0 : i32
    %c0_i32_1 = arith.constant 0 : i32
    return %arg0, %c0_i32, %c0_i32_0 : i32, i32, i32
  }
  func.func @transform_1(%arg0: i32) -> (i32, i32) {
    %c0_i32 = arith.constant 0 : i32
    %c0_i32_0 = arith.constant 0 : i32
    %c0_i32_1 = arith.constant 0 : i32
    return %c0_i32, %c0_i32_0 : i32, i32
  }
  func.func @transform_2(%arg0: i32) -> (i32, i32) {
    %c0_i32 = arith.constant 0 : i32
    %c0_i32_0 = arith.constant 0 : i32
    %c0_i32_1 = arith.constant 0 : i32
    return %c0_i32, %c0_i32_0 : i32, i32
  }
  func.func @transform_3(%arg0: i32) -> (i32, i32, i32) {
    %c0_i32 = arith.constant 0 : i32
    %c0_i32_0 = arith.constant 0 : i32
    %c0_i32_1 = arith.constant 0 : i32
    return %arg0, %c0_i32, %c0_i32_0 : i32, i32, i32
  }
}

module attributes {stable_mosaic.version = 11 : i64} {
  func.func @_encoder_layer_kernel(%arg0: i32, %arg1: memref<1x8x32xbf16, #tpu.memory_space<vmem>>, %arg2: memref<1x1x8xf32, #tpu.memory_space<vmem>>, %arg3: memref<32x96xbf16, #tpu.memory_space<vmem>>, %arg4: memref<1x96xf32, #tpu.memory_space<vmem>>, %arg5: memref<32x32xbf16, #tpu.memory_space<vmem>>, %arg6: memref<1x32xf32, #tpu.memory_space<vmem>>, %arg7: memref<1x32xf32, #tpu.memory_space<vmem>>, %arg8: memref<1x32xf32, #tpu.memory_space<vmem>>, %arg9: memref<32x64xbf16, #tpu.memory_space<vmem>>, %arg10: memref<1x64xf32, #tpu.memory_space<vmem>>, %arg11: memref<64x32xbf16, #tpu.memory_space<vmem>>, %arg12: memref<1x32xf32, #tpu.memory_space<vmem>>, %arg13: memref<1x32xf32, #tpu.memory_space<vmem>>, %arg14: memref<1x32xf32, #tpu.memory_space<vmem>>, %arg15: memref<1x8x32xbf16, #tpu.memory_space<vmem>>) attributes {dimension_semantics = [#tpu.dimension_semantics<parallel>], iteration_bounds = array<i64: 2>, scalar_prefetch = 0 : i64, scratch_operands = 0 : i64, tpu.core_type = #tpu.core_type<tc>, window_params = [{transform_indices = @transform_0, window_bounds = array<i64: 1, 8, 32>}, {transform_indices = @transform_1, window_bounds = array<i64: 1, 1, 8>}, {pipeline_mode = #tpu.pipeline_mode<synchronous>, transform_indices = @transform_2, window_bounds = array<i64: 32, 96>}, {pipeline_mode = #tpu.pipeline_mode<synchronous>, transform_indices = @transform_3, window_bounds = array<i64: 1, 96>}, {pipeline_mode = #tpu.pipeline_mode<synchronous>, transform_indices = @transform_4, window_bounds = array<i64: 32, 32>}, {pipeline_mode = #tpu.pipeline_mode<synchronous>, transform_indices = @transform_5, window_bounds = array<i64: 1, 32>}, {pipeline_mode = #tpu.pipeline_mode<synchronous>, transform_indices = @transform_6, window_bounds = array<i64: 1, 32>}, {pipeline_mode = #tpu.pipeline_mode<synchronous>, transform_indices = @transform_7, window_bounds = array<i64: 1, 32>}, {pipeline_mode = #tpu.pipeline_mode<synchronous>, transform_indices = @transform_8, window_bounds = array<i64: 32, 64>}, {pipeline_mode = #tpu.pipeline_mode<synchronous>, transform_indices = @transform_9, window_bounds = array<i64: 1, 64>}, {pipeline_mode = #tpu.pipeline_mode<synchronous>, transform_indices = @transform_10, window_bounds = array<i64: 64, 32>}, {pipeline_mode = #tpu.pipeline_mode<synchronous>, transform_indices = @transform_11, window_bounds = array<i64: 1, 32>}, {pipeline_mode = #tpu.pipeline_mode<synchronous>, transform_indices = @transform_12, window_bounds = array<i64: 1, 32>}, {pipeline_mode = #tpu.pipeline_mode<synchronous>, transform_indices = @transform_13, window_bounds = array<i64: 1, 32>}, {transform_indices = @transform_14, window_bounds = array<i64: 1, 8, 32>}]} {
    %c0 = arith.constant 0 : index
    %c0_0 = arith.constant 0 : index
    %c0_1 = arith.constant 0 : index
    %0 = vector.load %arg1[%c0, %c0_0, %c0_1] : memref<1x8x32xbf16, #tpu.memory_space<vmem>>, vector<1x8x32xbf16>
    %1 = vector.shape_cast %0 : vector<1x8x32xbf16> to vector<8x32xbf16>
    %c0_2 = arith.constant 0 : index
    %c0_3 = arith.constant 0 : index
    %2 = vector.load %arg3[%c0_2, %c0_3] : memref<32x96xbf16, #tpu.memory_space<vmem>>, vector<32x96xbf16>
    %cst = arith.constant dense<0.000000e+00> : vector<8x96xf32>
    %3 = tpu.matmul %1, %2, %cst {dimension_numbers = #tpu.dot_dimension_numbers<[1], [0], [0], [1], [0, 0, 1, 1], [], []>} : vector<8x32xbf16>, vector<32x96xbf16>, vector<8x96xf32> -> vector<8x96xf32>
    %c0_4 = arith.constant 0 : index
    %c0_5 = arith.constant 0 : index
    %4 = vector.load %arg4[%c0_4, %c0_5] : memref<1x96xf32, #tpu.memory_space<vmem>>, vector<1x96xf32>
    %5 = vector.broadcast %4 : vector<1x96xf32> to vector<8x96xf32>
    %6 = arith.addf %3, %5 : vector<8x96xf32>
    %7 = vector.extract_strided_slice %6 {offsets = [0, 0], sizes = [8, 32], strides = [1, 1]} : vector<8x96xf32> to vector<8x32xf32>
    %8 = vector.extract_strided_slice %6 {offsets = [0, 32], sizes = [8, 32], strides = [1, 1]} : vector<8x96xf32> to vector<8x32xf32>
    %9 = vector.extract_strided_slice %6 {offsets = [0, 64], sizes = [8, 32], strides = [1, 1]} : vector<8x96xf32> to vector<8x32xf32>
    %c0_6 = arith.constant 0 : index
    %c0_7 = arith.constant 0 : index
    %10 = vector.load %arg5[%c0_6, %c0_7] : memref<32x32xbf16, #tpu.memory_space<vmem>>, vector<32x32xbf16>
    %c0_8 = arith.constant 0 : index
    %c0_9 = arith.constant 0 : index
    %c0_10 = arith.constant 0 : index
    %11 = vector.load %arg2[%c0_8, %c0_9, %c0_10] : memref<1x1x8xf32, #tpu.memory_space<vmem>>, vector<1x1x8xf32>
    %12 = vector.shape_cast %11 : vector<1x1x8xf32> to vector<1x8xf32>
    %cst_11 = arith.constant 5.000000e-01 : f32
    %13 = vector.broadcast %cst_11 : f32 to vector<1x8xf32>
    %14 = arith.cmpf ogt, %12, %13 : vector<1x8xf32>
    %15 = vector.shape_cast %14 : vector<1x8xi1> to vector<1x8xi1>
    %16 = vector.broadcast %15 : vector<1x8xi1> to vector<8x8xi1>
    %cst_12 = arith.constant -1.000000e+30 : f32
    %cst_13 = arith.constant 0.000000e+00 : f32
    %17 = vector.broadcast %cst_12 : f32 to vector<8x8xf32>
    %18 = vector.broadcast %cst_13 : f32 to vector<8x8xf32>
    %19 = arith.select %16, %17, %18 : vector<8x8xi1>, vector<8x8xf32>
    %cst_14 = arith.constant 0.353553385 : f32
    %20 = vector.broadcast %cst_14 : f32 to vector<8x32xf32>
    %21 = arith.mulf %7, %20 : vector<8x32xf32>
    %22 = arith.truncf %21 : vector<8x32xf32> to vector<8x32xbf16>
    %23 = arith.truncf %8 : vector<8x32xf32> to vector<8x32xbf16>
    %24 = arith.truncf %9 : vector<8x32xf32> to vector<8x32xbf16>
    %25 = vector.extract_strided_slice %22 {offsets = [0, 0], sizes = [8, 8], strides = [1, 1]} : vector<8x32xbf16> to vector<8x8xbf16>
    %26 = vector.extract_strided_slice %23 {offsets = [0, 0], sizes = [8, 8], strides = [1, 1]} : vector<8x32xbf16> to vector<8x8xbf16>
    %27 = vector.extract_strided_slice %24 {offsets = [0, 0], sizes = [8, 8], strides = [1, 1]} : vector<8x32xbf16> to vector<8x8xbf16>
    %cst_15 = arith.constant dense<0.000000e+00> : vector<8x8xf32>
    %28 = tpu.matmul %25, %26, %cst_15 {dimension_numbers = #tpu.dot_dimension_numbers<[1], [1], [0], [0], [0, 0, 1, 0], [], []>} : vector<8x8xbf16>, vector<8x8xbf16>, vector<8x8xf32> -> vector<8x8xf32>
    %29 = arith.addf %28, %19 : vector<8x8xf32>
    %cst_16 = arith.constant dense<0xFF800000> : vector<8xf32>
    %30 = vector.multi_reduction <maximumf>, %29, %cst_16 [1] : vector<8x8xf32> to vector<8xf32>
    %31 = vector.shape_cast %30 : vector<8xf32> to vector<8x1xf32>
    %32 = vector.broadcast %31 : vector<8x1xf32> to vector<8x8xf32>
    %33 = arith.subf %29, %32 : vector<8x8xf32>
    %34 = math.exp %33 : vector<8x8xf32>
    %cst_17 = arith.constant dense<0.000000e+00> : vector<8xf32>
    %35 = vector.multi_reduction <add>, %34, %cst_17 [1] : vector<8x8xf32> to vector<8xf32>
    %36 = vector.shape_cast %35 : vector<8xf32> to vector<8x1xf32>
    %37 = tpu.reciprocal %36 : vector<8x1xf32> -> vector<8x1xf32>
    %38 = vector.broadcast %37 : vector<8x1xf32> to vector<8x8xf32>
    %39 = arith.mulf %34, %38 : vector<8x8xf32>
    %40 = arith.truncf %39 : vector<8x8xf32> to vector<8x8xbf16>
    %cst_18 = arith.constant dense<0.000000e+00> : vector<8x8xf32>
    %41 = tpu.matmul %40, %27, %cst_18 {dimension_numbers = #tpu.dot_dimension_numbers<[1], [0], [0], [1], [0, 0, 1, 1], [], []>} : vector<8x8xbf16>, vector<8x8xbf16>, vector<8x8xf32> -> vector<8x8xf32>
    %42 = vector.extract_strided_slice %22 {offsets = [0, 8], sizes = [8, 8], strides = [1, 1]} : vector<8x32xbf16> to vector<8x8xbf16>
    %43 = vector.extract_strided_slice %23 {offsets = [0, 8], sizes = [8, 8], strides = [1, 1]} : vector<8x32xbf16> to vector<8x8xbf16>
    %44 = vector.extract_strided_slice %24 {offsets = [0, 8], sizes = [8, 8], strides = [1, 1]} : vector<8x32xbf16> to vector<8x8xbf16>
    %cst_19 = arith.constant dense<0.000000e+00> : vector<8x8xf32>
    %45 = tpu.matmul %42, %43, %cst_19 {dimension_numbers = #tpu.dot_dimension_numbers<[1], [1], [0], [0], [0, 0, 1, 0], [], []>} : vector<8x8xbf16>, vector<8x8xbf16>, vector<8x8xf32> -> vector<8x8xf32>
    %46 = arith.addf %45, %19 : vector<8x8xf32>
    %cst_20 = arith.constant dense<0xFF800000> : vector<8xf32>
    %47 = vector.multi_reduction <maximumf>, %46, %cst_20 [1] : vector<8x8xf32> to vector<8xf32>
    %48 = vector.shape_cast %47 : vector<8xf32> to vector<8x1xf32>
    %49 = vector.broadcast %48 : vector<8x1xf32> to vector<8x8xf32>
    %50 = arith.subf %46, %49 : vector<8x8xf32>
    %51 = math.exp %50 : vector<8x8xf32>
    %cst_21 = arith.constant dense<0.000000e+00> : vector<8xf32>
    %52 = vector.multi_reduction <add>, %51, %cst_21 [1] : vector<8x8xf32> to vector<8xf32>
    %53 = vector.shape_cast %52 : vector<8xf32> to vector<8x1xf32>
    %54 = tpu.reciprocal %53 : vector<8x1xf32> -> vector<8x1xf32>
    %55 = vector.broadcast %54 : vector<8x1xf32> to vector<8x8xf32>
    %56 = arith.mulf %51, %55 : vector<8x8xf32>
    %57 = arith.truncf %56 : vector<8x8xf32> to vector<8x8xbf16>
    %cst_22 = arith.constant dense<0.000000e+00> : vector<8x8xf32>
    %58 = tpu.matmul %57, %44, %cst_22 {dimension_numbers = #tpu.dot_dimension_numbers<[1], [0], [0], [1], [0, 0, 1, 1], [], []>} : vector<8x8xbf16>, vector<8x8xbf16>, vector<8x8xf32> -> vector<8x8xf32>
    %59 = vector.extract_strided_slice %22 {offsets = [0, 16], sizes = [8, 8], strides = [1, 1]} : vector<8x32xbf16> to vector<8x8xbf16>
    %60 = vector.extract_strided_slice %23 {offsets = [0, 16], sizes = [8, 8], strides = [1, 1]} : vector<8x32xbf16> to vector<8x8xbf16>
    %61 = vector.extract_strided_slice %24 {offsets = [0, 16], sizes = [8, 8], strides = [1, 1]} : vector<8x32xbf16> to vector<8x8xbf16>
    %cst_23 = arith.constant dense<0.000000e+00> : vector<8x8xf32>
    %62 = tpu.matmul %59, %60, %cst_23 {dimension_numbers = #tpu.dot_dimension_numbers<[1], [1], [0], [0], [0, 0, 1, 0], [], []>} : vector<8x8xbf16>, vector<8x8xbf16>, vector<8x8xf32> -> vector<8x8xf32>
    %63 = arith.addf %62, %19 : vector<8x8xf32>
    %cst_24 = arith.constant dense<0xFF800000> : vector<8xf32>
    %64 = vector.multi_reduction <maximumf>, %63, %cst_24 [1] : vector<8x8xf32> to vector<8xf32>
    %65 = vector.shape_cast %64 : vector<8xf32> to vector<8x1xf32>
    %66 = vector.broadcast %65 : vector<8x1xf32> to vector<8x8xf32>
    %67 = arith.subf %63, %66 : vector<8x8xf32>
    %68 = math.exp %67 : vector<8x8xf32>
    %cst_25 = arith.constant dense<0.000000e+00> : vector<8xf32>
    %69 = vector.multi_reduction <add>, %68, %cst_25 [1] : vector<8x8xf32> to vector<8xf32>
    %70 = vector.shape_cast %69 : vector<8xf32> to vector<8x1xf32>
    %71 = tpu.reciprocal %70 : vector<8x1xf32> -> vector<8x1xf32>
    %72 = vector.broadcast %71 : vector<8x1xf32> to vector<8x8xf32>
    %73 = arith.mulf %68, %72 : vector<8x8xf32>
    %74 = arith.truncf %73 : vector<8x8xf32> to vector<8x8xbf16>
    %cst_26 = arith.constant dense<0.000000e+00> : vector<8x8xf32>
    %75 = tpu.matmul %74, %61, %cst_26 {dimension_numbers = #tpu.dot_dimension_numbers<[1], [0], [0], [1], [0, 0, 1, 1], [], []>} : vector<8x8xbf16>, vector<8x8xbf16>, vector<8x8xf32> -> vector<8x8xf32>
    %76 = vector.extract_strided_slice %22 {offsets = [0, 24], sizes = [8, 8], strides = [1, 1]} : vector<8x32xbf16> to vector<8x8xbf16>
    %77 = vector.extract_strided_slice %23 {offsets = [0, 24], sizes = [8, 8], strides = [1, 1]} : vector<8x32xbf16> to vector<8x8xbf16>
    %78 = vector.extract_strided_slice %24 {offsets = [0, 24], sizes = [8, 8], strides = [1, 1]} : vector<8x32xbf16> to vector<8x8xbf16>
    %cst_27 = arith.constant dense<0.000000e+00> : vector<8x8xf32>
    %79 = tpu.matmul %76, %77, %cst_27 {dimension_numbers = #tpu.dot_dimension_numbers<[1], [1], [0], [0], [0, 0, 1, 0], [], []>} : vector<8x8xbf16>, vector<8x8xbf16>, vector<8x8xf32> -> vector<8x8xf32>
    %80 = arith.addf %79, %19 : vector<8x8xf32>
    %cst_28 = arith.constant dense<0xFF800000> : vector<8xf32>
    %81 = vector.multi_reduction <maximumf>, %80, %cst_28 [1] : vector<8x8xf32> to vector<8xf32>
    %82 = vector.shape_cast %81 : vector<8xf32> to vector<8x1xf32>
    %83 = vector.broadcast %82 : vector<8x1xf32> to vector<8x8xf32>
    %84 = arith.subf %80, %83 : vector<8x8xf32>
    %85 = math.exp %84 : vector<8x8xf32>
    %cst_29 = arith.constant dense<0.000000e+00> : vector<8xf32>
    %86 = vector.multi_reduction <add>, %85, %cst_29 [1] : vector<8x8xf32> to vector<8xf32>
    %87 = vector.shape_cast %86 : vector<8xf32> to vector<8x1xf32>
    %88 = tpu.reciprocal %87 : vector<8x1xf32> -> vector<8x1xf32>
    %89 = vector.broadcast %88 : vector<8x1xf32> to vector<8x8xf32>
    %90 = arith.mulf %85, %89 : vector<8x8xf32>
    %91 = arith.truncf %90 : vector<8x8xf32> to vector<8x8xbf16>
    %cst_30 = arith.constant dense<0.000000e+00> : vector<8x8xf32>
    %92 = tpu.matmul %91, %78, %cst_30 {dimension_numbers = #tpu.dot_dimension_numbers<[1], [0], [0], [1], [0, 0, 1, 1], [], []>} : vector<8x8xbf16>, vector<8x8xbf16>, vector<8x8xf32> -> vector<8x8xf32>
    %93 = tpu.concatenate %41, %58, %75, %92 in 1 : vector<8x8xf32>, vector<8x8xf32>, vector<8x8xf32>, vector<8x8xf32> -> vector<8x32xf32>
    %94 = arith.truncf %93 : vector<8x32xf32> to vector<8x32xbf16>
    %cst_31 = arith.constant dense<0.000000e+00> : vector<8x32xf32>
    %95 = tpu.matmul %94, %10, %cst_31 {dimension_numbers = #tpu.dot_dimension_numbers<[1], [0], [0], [1], [0, 0, 1, 1], [], []>} : vector<8x32xbf16>, vector<32x32xbf16>, vector<8x32xf32> -> vector<8x32xf32>
    %c0_32 = arith.constant 0 : index
    %c0_33 = arith.constant 0 : index
    %96 = vector.load %arg6[%c0_32, %c0_33] : memref<1x32xf32, #tpu.memory_space<vmem>>, vector<1x32xf32>
    %97 = vector.broadcast %96 : vector<1x32xf32> to vector<8x32xf32>
    %98 = arith.addf %95, %97 : vector<8x32xf32>
    %99 = arith.extf %1 : vector<8x32xbf16> to vector<8x32xf32>
    %100 = arith.addf %99, %98 : vector<8x32xf32>
    %c0_34 = arith.constant 0 : index
    %c0_35 = arith.constant 0 : index
    %101 = vector.load %arg7[%c0_34, %c0_35] : memref<1x32xf32, #tpu.memory_space<vmem>>, vector<1x32xf32>
    %c0_36 = arith.constant 0 : index
    %c0_37 = arith.constant 0 : index
    %102 = vector.load %arg8[%c0_36, %c0_37] : memref<1x32xf32, #tpu.memory_space<vmem>>, vector<1x32xf32>
    %cst_38 = arith.constant dense<0.000000e+00> : vector<8xf32>
    %103 = vector.multi_reduction <add>, %100, %cst_38 [1] : vector<8x32xf32> to vector<8xf32>
    %104 = vector.shape_cast %103 : vector<8xf32> to vector<8x1xf32>
    %cst_39 = arith.constant 3.200000e+01 : f32
    %105 = vector.broadcast %cst_39 : f32 to vector<8x1xf32>
    %106 = arith.divf %104, %105 : vector<8x1xf32>
    %107 = vector.broadcast %106 : vector<8x1xf32> to vector<8x32xf32>
    %108 = arith.subf %100, %107 : vector<8x32xf32>
    %109 = arith.mulf %108, %108 : vector<8x32xf32>
    %cst_40 = arith.constant dense<0.000000e+00> : vector<8xf32>
    %110 = vector.multi_reduction <add>, %109, %cst_40 [1] : vector<8x32xf32> to vector<8xf32>
    %111 = vector.shape_cast %110 : vector<8xf32> to vector<8x1xf32>
    %cst_41 = arith.constant 3.200000e+01 : f32
    %112 = vector.broadcast %cst_41 : f32 to vector<8x1xf32>
    %113 = arith.divf %111, %112 : vector<8x1xf32>
    %cst_42 = arith.constant 9.99999974E-6 : f32
    %114 = vector.broadcast %cst_42 : f32 to vector<8x1xf32>
    %115 = arith.addf %113, %114 : vector<8x1xf32>
    %116 = math.rsqrt %115 : vector<8x1xf32>
    %117 = vector.broadcast %116 : vector<8x1xf32> to vector<8x32xf32>
    %118 = arith.mulf %108, %117 : vector<8x32xf32>
    %119 = vector.broadcast %101 : vector<1x32xf32> to vector<8x32xf32>
    %120 = arith.mulf %118, %119 : vector<8x32xf32>
    %121 = vector.broadcast %102 : vector<1x32xf32> to vector<8x32xf32>
    %122 = arith.addf %120, %121 : vector<8x32xf32>
    %123 = arith.truncf %122 : vector<8x32xf32> to vector<8x32xbf16>
    %c0_43 = arith.constant 0 : index
    %c0_44 = arith.constant 0 : index
    %124 = vector.load %arg9[%c0_43, %c0_44] : memref<32x64xbf16, #tpu.memory_space<vmem>>, vector<32x64xbf16>
    %cst_45 = arith.constant dense<0.000000e+00> : vector<8x64xf32>
    %125 = tpu.matmul %123, %124, %cst_45 {dimension_numbers = #tpu.dot_dimension_numbers<[1], [0], [0], [1], [0, 0, 1, 1], [], []>} : vector<8x32xbf16>, vector<32x64xbf16>, vector<8x64xf32> -> vector<8x64xf32>
    %c0_46 = arith.constant 0 : index
    %c0_47 = arith.constant 0 : index
    %126 = vector.load %arg10[%c0_46, %c0_47] : memref<1x64xf32, #tpu.memory_space<vmem>>, vector<1x64xf32>
    %127 = vector.broadcast %126 : vector<1x64xf32> to vector<8x64xf32>
    %128 = arith.addf %125, %127 : vector<8x64xf32>
    %cst_48 = arith.constant 0.000000e+00 : f32
    %129 = vector.broadcast %cst_48 : f32 to vector<8x64xf32>
    %130 = arith.maximumf %128, %129 : vector<8x64xf32>
    %131 = arith.truncf %130 : vector<8x64xf32> to vector<8x64xbf16>
    %c0_49 = arith.constant 0 : index
    %c0_50 = arith.constant 0 : index
    %132 = vector.load %arg11[%c0_49, %c0_50] : memref<64x32xbf16, #tpu.memory_space<vmem>>, vector<64x32xbf16>
    %cst_51 = arith.constant dense<0.000000e+00> : vector<8x32xf32>
    %133 = tpu.matmul %131, %132, %cst_51 {dimension_numbers = #tpu.dot_dimension_numbers<[1], [0], [0], [1], [0, 0, 1, 1], [], []>} : vector<8x64xbf16>, vector<64x32xbf16>, vector<8x32xf32> -> vector<8x32xf32>
    %c0_52 = arith.constant 0 : index
    %c0_53 = arith.constant 0 : index
    %134 = vector.load %arg12[%c0_52, %c0_53] : memref<1x32xf32, #tpu.memory_space<vmem>>, vector<1x32xf32>
    %135 = vector.broadcast %134 : vector<1x32xf32> to vector<8x32xf32>
    %136 = arith.addf %133, %135 : vector<8x32xf32>
    %137 = arith.addf %122, %136 : vector<8x32xf32>
    %c0_54 = arith.constant 0 : index
    %c0_55 = arith.constant 0 : index
    %138 = vector.load %arg13[%c0_54, %c0_55] : memref<1x32xf32, #tpu.memory_space<vmem>>, vector<1x32xf32>
    %c0_56 = arith.constant 0 : index
    %c0_57 = arith.constant 0 : index
    %139 = vector.load %arg14[%c0_56, %c0_57] : memref<1x32xf32, #tpu.memory_space<vmem>>, vector<1x32xf32>
    %cst_58 = arith.constant dense<0.000000e+00> : vector<8xf32>
    %140 = vector.multi_reduction <add>, %137, %cst_58 [1] : vector<8x32xf32> to vector<8xf32>
    %141 = vector.shape_cast %140 : vector<8xf32> to vector<8x1xf32>
    %cst_59 = arith.constant 3.200000e+01 : f32
    %142 = vector.broadcast %cst_59 : f32 to vector<8x1xf32>
    %143 = arith.divf %141, %142 : vector<8x1xf32>
    %144 = vector.broadcast %143 : vector<8x1xf32> to vector<8x32xf32>
    %145 = arith.subf %137, %144 : vector<8x32xf32>
    %146 = arith.mulf %145, %145 : vector<8x32xf32>
    %cst_60 = arith.constant dense<0.000000e+00> : vector<8xf32>
    %147 = vector.multi_reduction <add>, %146, %cst_60 [1] : vector<8x32xf32> to vector<8xf32>
    %148 = vector.shape_cast %147 : vector<8xf32> to vector<8x1xf32>
    %cst_61 = arith.constant 3.200000e+01 : f32
    %149 = vector.broadcast %cst_61 : f32 to vector<8x1xf32>
    %150 = arith.divf %148, %149 : vector<8x1xf32>
    %cst_62 = arith.constant 9.99999974E-6 : f32
    %151 = vector.broadcast %cst_62 : f32 to vector<8x1xf32>
    %152 = arith.addf %150, %151 : vector<8x1xf32>
    %153 = math.rsqrt %152 : vector<8x1xf32>
    %154 = vector.broadcast %153 : vector<8x1xf32> to vector<8x32xf32>
    %155 = arith.mulf %145, %154 : vector<8x32xf32>
    %156 = vector.broadcast %138 : vector<1x32xf32> to vector<8x32xf32>
    %157 = arith.mulf %155, %156 : vector<8x32xf32>
    %158 = vector.broadcast %139 : vector<1x32xf32> to vector<8x32xf32>
    %159 = arith.addf %157, %158 : vector<8x32xf32>
    %160 = arith.truncf %159 : vector<8x32xf32> to vector<8x32xbf16>
    %c0_63 = arith.constant 0 : index
    %c0_64 = arith.constant 0 : index
    %c0_65 = arith.constant 0 : index
    %161 = vector.load %arg15[%c0_63, %c0_64, %c0_65] : memref<1x8x32xbf16, #tpu.memory_space<vmem>>, vector<1x8x32xbf16>
    %162 = vector.shape_cast %161 : vector<1x8x32xbf16> to vector<8x32xbf16>
    %163 = vector.shape_cast %160 : vector<8x32xbf16> to vector<1x8x32xbf16>
    tpu.vector_store %arg15[%c0_63, %c0_64, %c0_65], %163 {strides = array<i32>} : memref<1x8x32xbf16, #tpu.memory_space<vmem>>, vector<1x8x32xbf16>,
    return
  }
  func.func @transform_0(%arg0: i32) -> (i32, i32, i32) {
    %c0_i32 = arith.constant 0 : i32
    %c0_i32_0 = arith.constant 0 : i32
    %c0_i32_1 = arith.constant 0 : i32
    return %arg0, %c0_i32, %c0_i32_0 : i32, i32, i32
  }
  func.func @transform_1(%arg0: i32) -> (i32, i32, i32) {
    %c0_i32 = arith.constant 0 : i32
    %c0_i32_0 = arith.constant 0 : i32
    %c0_i32_1 = arith.constant 0 : i32
    return %arg0, %c0_i32, %c0_i32_0 : i32, i32, i32
  }
  func.func @transform_2(%arg0: i32) -> (i32, i32) {
    %c0_i32 = arith.constant 0 : i32
    %c0_i32_0 = arith.constant 0 : i32
    %c0_i32_1 = arith.constant 0 : i32
    return %c0_i32, %c0_i32_0 : i32, i32
  }
  func.func @transform_3(%arg0: i32) -> (i32, i32) {
    %c0_i32 = arith.constant 0 : i32
    %c0_i32_0 = arith.constant 0 : i32
    %c0_i32_1 = arith.constant 0 : i32
    return %c0_i32, %c0_i32_0 : i32, i32
  }
  func.func @transform_4(%arg0: i32) -> (i32, i32) {
    %c0_i32 = arith.constant 0 : i32
    %c0_i32_0 = arith.constant 0 : i32
    %c0_i32_1 = arith.constant 0 : i32
    return %c0_i32, %c0_i32_0 : i32, i32
  }
  func.func @transform_5(%arg0: i32) -> (i32, i32) {
    %c0_i32 = arith.constant 0 : i32
    %c0_i32_0 = arith.constant 0 : i32
    %c0_i32_1 = arith.constant 0 : i32
    return %c0_i32, %c0_i32_0 : i32, i32
  }
  func.func @transform_6(%arg0: i32) -> (i32, i32) {
    %c0_i32 = arith.constant 0 : i32
    %c0_i32_0 = arith.constant 0 : i32
    %c0_i32_1 = arith.constant 0 : i32
    return %c0_i32, %c0_i32_0 : i32, i32
  }
  func.func @transform_7(%arg0: i32) -> (i32, i32) {
    %c0_i32 = arith.constant 0 : i32
    %c0_i32_0 = arith.constant 0 : i32
    %c0_i32_1 = arith.constant 0 : i32
    return %c0_i32, %c0_i32_0 : i32, i32
  }
  func.func @transform_8(%arg0: i32) -> (i32, i32) {
    %c0_i32 = arith.constant 0 : i32
    %c0_i32_0 = arith.constant 0 : i32
    %c0_i32_1 = arith.constant 0 : i32
    return %c0_i32, %c0_i32_0 : i32, i32
  }
  func.func @transform_9(%arg0: i32) -> (i32, i32) {
    %c0_i32 = arith.constant 0 : i32
    %c0_i32_0 = arith.constant 0 : i32
    %c0_i32_1 = arith.constant 0 : i32
    return %c0_i32, %c0_i32_0 : i32, i32
  }
  func.func @transform_10(%arg0: i32) -> (i32, i32) {
    %c0_i32 = arith.constant 0 : i32
    %c0_i32_0 = arith.constant 0 : i32
    %c0_i32_1 = arith.constant 0 : i32
    return %c0_i32, %c0_i32_0 : i32, i32
  }
  func.func @transform_11(%arg0: i32) -> (i32, i32) {
    %c0_i32 = arith.constant 0 : i32
    %c0_i32_0 = arith.constant 0 : i32
    %c0_i32_1 = arith.constant 0 : i32
    return %c0_i32, %c0_i32_0 : i32, i32
  }
  func.func @transform_12(%arg0: i32) -> (i32, i32) {
    %c0_i32 = arith.constant 0 : i32
    %c0_i32_0 = arith.constant 0 : i32
    %c0_i32_1 = arith.constant 0 : i32
    return %c0_i32, %c0_i32_0 : i32, i32
  }
  func.func @transform_13(%arg0: i32) -> (i32, i32) {
    %c0_i32 = arith.constant 0 : i32
    %c0_i32_0 = arith.constant 0 : i32
    %c0_i32_1 = arith.constant 0 : i32
    return %c0_i32, %c0_i32_0 : i32, i32
  }
  func.func @transform_14(%arg0: i32) -> (i32, i32, i32) {
    %c0_i32 = arith.constant 0 : i32
    %c0_i32_0 = arith.constant 0 : i32
    %c0_i32_1 = arith.constant 0 : i32
    return %arg0, %c0_i32, %c0_i32_0 : i32, i32, i32
  }
}

module attributes {stable_mosaic.version = 11 : i64} {
  func.func @_decoder_layer_kernel(%arg0: i32, %arg1: memref<1x8x32xbf16, #tpu.memory_space<vmem>>, %arg2: memref<1x8x32xbf16, #tpu.memory_space<vmem>>, %arg3: memref<1x1x8xf32, #tpu.memory_space<vmem>>, %arg4: memref<1x1x8xf32, #tpu.memory_space<vmem>>, %arg5: memref<32x96xbf16, #tpu.memory_space<vmem>>, %arg6: memref<1x96xf32, #tpu.memory_space<vmem>>, %arg7: memref<32x32xbf16, #tpu.memory_space<vmem>>, %arg8: memref<1x32xf32, #tpu.memory_space<vmem>>, %arg9: memref<1x32xf32, #tpu.memory_space<vmem>>, %arg10: memref<1x32xf32, #tpu.memory_space<vmem>>, %arg11: memref<32x32xbf16, #tpu.memory_space<vmem>>, %arg12: memref<1x32xf32, #tpu.memory_space<vmem>>, %arg13: memref<32x64xbf16, #tpu.memory_space<vmem>>, %arg14: memref<1x64xf32, #tpu.memory_space<vmem>>, %arg15: memref<32x32xbf16, #tpu.memory_space<vmem>>, %arg16: memref<1x32xf32, #tpu.memory_space<vmem>>, %arg17: memref<1x32xf32, #tpu.memory_space<vmem>>, %arg18: memref<1x32xf32, #tpu.memory_space<vmem>>, %arg19: memref<32x64xbf16, #tpu.memory_space<vmem>>, %arg20: memref<1x64xf32, #tpu.memory_space<vmem>>, %arg21: memref<64x32xbf16, #tpu.memory_space<vmem>>, %arg22: memref<1x32xf32, #tpu.memory_space<vmem>>, %arg23: memref<1x32xf32, #tpu.memory_space<vmem>>, %arg24: memref<1x32xf32, #tpu.memory_space<vmem>>, %arg25: memref<1x8x32xbf16, #tpu.memory_space<vmem>>) attributes {dimension_semantics = [#tpu.dimension_semantics<parallel>], iteration_bounds = array<i64: 2>, scalar_prefetch = 0 : i64, scratch_operands = 0 : i64, tpu.core_type = #tpu.core_type<tc>, window_params = [{transform_indices = @transform_0, window_bounds = array<i64: 1, 8, 32>}, {transform_indices = @transform_1, window_bounds = array<i64: 1, 8, 32>}, {transform_indices = @transform_2, window_bounds = array<i64: 1, 1, 8>}, {transform_indices = @transform_3, window_bounds = array<i64: 1, 1, 8>}, {pipeline_mode = #tpu.pipeline_mode<synchronous>, transform_indices = @transform_4, window_bounds = array<i64: 32, 96>}, {pipeline_mode = #tpu.pipeline_mode<synchronous>, transform_indices = @transform_5, window_bounds = array<i64: 1, 96>}, {pipeline_mode = #tpu.pipeline_mode<synchronous>, transform_indices = @transform_6, window_bounds = array<i64: 32, 32>}, {pipeline_mode = #tpu.pipeline_mode<synchronous>, transform_indices = @transform_7, window_bounds = array<i64: 1, 32>}, {pipeline_mode = #tpu.pipeline_mode<synchronous>, transform_indices = @transform_8, window_bounds = array<i64: 1, 32>}, {pipeline_mode = #tpu.pipeline_mode<synchronous>, transform_indices = @transform_9, window_bounds = array<i64: 1, 32>}, {pipeline_mode = #tpu.pipeline_mode<synchronous>, transform_indices = @transform_10, window_bounds = array<i64: 32, 32>}, {pipeline_mode = #tpu.pipeline_mode<synchronous>, transform_indices = @transform_11, window_bounds = array<i64: 1, 32>}, {pipeline_mode = #tpu.pipeline_mode<synchronous>, transform_indices = @transform_12, window_bounds = array<i64: 32, 64>}, {pipeline_mode = #tpu.pipeline_mode<synchronous>, transform_indices = @transform_13, window_bounds = array<i64: 1, 64>}, {pipeline_mode = #tpu.pipeline_mode<synchronous>, transform_indices = @transform_14, window_bounds = array<i64: 32, 32>}, {pipeline_mode = #tpu.pipeline_mode<synchronous>, transform_indices = @transform_15, window_bounds = array<i64: 1, 32>}, {pipeline_mode = #tpu.pipeline_mode<synchronous>, transform_indices = @transform_16, window_bounds = array<i64: 1, 32>}, {pipeline_mode = #tpu.pipeline_mode<synchronous>, transform_indices = @transform_17, window_bounds = array<i64: 1, 32>}, {pipeline_mode = #tpu.pipeline_mode<synchronous>, transform_indices = @transform_18, window_bounds = array<i64: 32, 64>}, {pipeline_mode = #tpu.pipeline_mode<synchronous>, transform_indices = @transform_19, window_bounds = array<i64: 1, 64>}, {pipeline_mode = #tpu.pipeline_mode<synchronous>, transform_indices = @transform_20, window_bounds = array<i64: 64, 32>}, {pipeline_mode = #tpu.pipeline_mode<synchronous>, transform_indices = @transform_21, window_bounds = array<i64: 1, 32>}, {pipeline_mode = #tpu.pipeline_mode<synchronous>, transform_indices = @transform_22, window_bounds = array<i64: 1, 32>}, {pipeline_mode = #tpu.pipeline_mode<synchronous>, transform_indices = @transform_23, window_bounds = array<i64: 1, 32>}, {transform_indices = @transform_24, window_bounds = array<i64: 1, 8, 32>}]} {
    %c0 = arith.constant 0 : index
    %c0_0 = arith.constant 0 : index
    %c0_1 = arith.constant 0 : index
    %0 = vector.load %arg1[%c0, %c0_0, %c0_1] : memref<1x8x32xbf16, #tpu.memory_space<vmem>>, vector<1x8x32xbf16>
    %1 = vector.shape_cast %0 : vector<1x8x32xbf16> to vector<8x32xbf16>
    %c0_2 = arith.constant 0 : index
    %c0_3 = arith.constant 0 : index
    %c0_4 = arith.constant 0 : index
    %2 = vector.load %arg2[%c0_2, %c0_3, %c0_4] : memref<1x8x32xbf16, #tpu.memory_space<vmem>>, vector<1x8x32xbf16>
    %3 = vector.shape_cast %2 : vector<1x8x32xbf16> to vector<8x32xbf16>
    %c0_5 = arith.constant 0 : index
    %c0_6 = arith.constant 0 : index
    %4 = vector.load %arg5[%c0_5, %c0_6] : memref<32x96xbf16, #tpu.memory_space<vmem>>, vector<32x96xbf16>
    %cst = arith.constant dense<0.000000e+00> : vector<8x96xf32>
    %5 = tpu.matmul %1, %4, %cst {dimension_numbers = #tpu.dot_dimension_numbers<[1], [0], [0], [1], [0, 0, 1, 1], [], []>} : vector<8x32xbf16>, vector<32x96xbf16>, vector<8x96xf32> -> vector<8x96xf32>
    %c0_7 = arith.constant 0 : index
    %c0_8 = arith.constant 0 : index
    %6 = vector.load %arg6[%c0_7, %c0_8] : memref<1x96xf32, #tpu.memory_space<vmem>>, vector<1x96xf32>
    %7 = vector.broadcast %6 : vector<1x96xf32> to vector<8x96xf32>
    %8 = arith.addf %5, %7 : vector<8x96xf32>
    %9 = vector.extract_strided_slice %8 {offsets = [0, 0], sizes = [8, 32], strides = [1, 1]} : vector<8x96xf32> to vector<8x32xf32>
    %10 = vector.extract_strided_slice %8 {offsets = [0, 32], sizes = [8, 32], strides = [1, 1]} : vector<8x96xf32> to vector<8x32xf32>
    %11 = vector.extract_strided_slice %8 {offsets = [0, 64], sizes = [8, 32], strides = [1, 1]} : vector<8x96xf32> to vector<8x32xf32>
    %c0_9 = arith.constant 0 : index
    %c0_10 = arith.constant 0 : index
    %12 = vector.load %arg7[%c0_9, %c0_10] : memref<32x32xbf16, #tpu.memory_space<vmem>>, vector<32x32xbf16>
    %c0_11 = arith.constant 0 : index
    %c0_12 = arith.constant 0 : index
    %c0_13 = arith.constant 0 : index
    %13 = vector.load %arg3[%c0_11, %c0_12, %c0_13] : memref<1x1x8xf32, #tpu.memory_space<vmem>>, vector<1x1x8xf32>
    %14 = vector.shape_cast %13 : vector<1x1x8xf32> to vector<1x8xf32>
    %cst_14 = arith.constant 5.000000e-01 : f32
    %15 = vector.broadcast %cst_14 : f32 to vector<1x8xf32>
    %16 = arith.cmpf ogt, %14, %15 : vector<1x8xf32>
    %17 = vector.shape_cast %16 : vector<1x8xi1> to vector<1x8xi1>
    %18 = vector.broadcast %17 : vector<1x8xi1> to vector<8x8xi1>
    %19 = tpu.iota {dimensions = array<i32: 0>} : vector<8x8xi32>
    %20 = tpu.iota {dimensions = array<i32: 1>} : vector<8x8xi32>
    %21 = arith.cmpi sgt, %20, %19 : vector<8x8xi32>
    %22 = arith.ori %18, %21 : vector<8x8xi1>
    %cst_15 = arith.constant -1.000000e+30 : f32
    %cst_16 = arith.constant 0.000000e+00 : f32
    %23 = vector.broadcast %cst_15 : f32 to vector<8x8xf32>
    %24 = vector.broadcast %cst_16 : f32 to vector<8x8xf32>
    %25 = arith.select %22, %23, %24 : vector<8x8xi1>, vector<8x8xf32>
    %cst_17 = arith.constant 0.353553385 : f32
    %26 = vector.broadcast %cst_17 : f32 to vector<8x32xf32>
    %27 = arith.mulf %9, %26 : vector<8x32xf32>
    %28 = arith.truncf %27 : vector<8x32xf32> to vector<8x32xbf16>
    %29 = arith.truncf %10 : vector<8x32xf32> to vector<8x32xbf16>
    %30 = arith.truncf %11 : vector<8x32xf32> to vector<8x32xbf16>
    %31 = vector.extract_strided_slice %28 {offsets = [0, 0], sizes = [8, 8], strides = [1, 1]} : vector<8x32xbf16> to vector<8x8xbf16>
    %32 = vector.extract_strided_slice %29 {offsets = [0, 0], sizes = [8, 8], strides = [1, 1]} : vector<8x32xbf16> to vector<8x8xbf16>
    %33 = vector.extract_strided_slice %30 {offsets = [0, 0], sizes = [8, 8], strides = [1, 1]} : vector<8x32xbf16> to vector<8x8xbf16>
    %cst_18 = arith.constant dense<0.000000e+00> : vector<8x8xf32>
    %34 = tpu.matmul %31, %32, %cst_18 {dimension_numbers = #tpu.dot_dimension_numbers<[1], [1], [0], [0], [0, 0, 1, 0], [], []>} : vector<8x8xbf16>, vector<8x8xbf16>, vector<8x8xf32> -> vector<8x8xf32>
    %35 = arith.addf %34, %25 : vector<8x8xf32>
    %cst_19 = arith.constant dense<0xFF800000> : vector<8xf32>
    %36 = vector.multi_reduction <maximumf>, %35, %cst_19 [1] : vector<8x8xf32> to vector<8xf32>
    %37 = vector.shape_cast %36 : vector<8xf32> to vector<8x1xf32>
    %38 = vector.broadcast %37 : vector<8x1xf32> to vector<8x8xf32>
    %39 = arith.subf %35, %38 : vector<8x8xf32>
    %40 = math.exp %39 : vector<8x8xf32>
    %cst_20 = arith.constant dense<0.000000e+00> : vector<8xf32>
    %41 = vector.multi_reduction <add>, %40, %cst_20 [1] : vector<8x8xf32> to vector<8xf32>
    %42 = vector.shape_cast %41 : vector<8xf32> to vector<8x1xf32>
    %43 = tpu.reciprocal %42 : vector<8x1xf32> -> vector<8x1xf32>
    %44 = vector.broadcast %43 : vector<8x1xf32> to vector<8x8xf32>
    %45 = arith.mulf %40, %44 : vector<8x8xf32>
    %46 = arith.truncf %45 : vector<8x8xf32> to vector<8x8xbf16>
    %cst_21 = arith.constant dense<0.000000e+00> : vector<8x8xf32>
    %47 = tpu.matmul %46, %33, %cst_21 {dimension_numbers = #tpu.dot_dimension_numbers<[1], [0], [0], [1], [0, 0, 1, 1], [], []>} : vector<8x8xbf16>, vector<8x8xbf16>, vector<8x8xf32> -> vector<8x8xf32>
    %48 = vector.extract_strided_slice %28 {offsets = [0, 8], sizes = [8, 8], strides = [1, 1]} : vector<8x32xbf16> to vector<8x8xbf16>
    %49 = vector.extract_strided_slice %29 {offsets = [0, 8], sizes = [8, 8], strides = [1, 1]} : vector<8x32xbf16> to vector<8x8xbf16>
    %50 = vector.extract_strided_slice %30 {offsets = [0, 8], sizes = [8, 8], strides = [1, 1]} : vector<8x32xbf16> to vector<8x8xbf16>
    %cst_22 = arith.constant dense<0.000000e+00> : vector<8x8xf32>
    %51 = tpu.matmul %48, %49, %cst_22 {dimension_numbers = #tpu.dot_dimension_numbers<[1], [1], [0], [0], [0, 0, 1, 0], [], []>} : vector<8x8xbf16>, vector<8x8xbf16>, vector<8x8xf32> -> vector<8x8xf32>
    %52 = arith.addf %51, %25 : vector<8x8xf32>
    %cst_23 = arith.constant dense<0xFF800000> : vector<8xf32>
    %53 = vector.multi_reduction <maximumf>, %52, %cst_23 [1] : vector<8x8xf32> to vector<8xf32>
    %54 = vector.shape_cast %53 : vector<8xf32> to vector<8x1xf32>
    %55 = vector.broadcast %54 : vector<8x1xf32> to vector<8x8xf32>
    %56 = arith.subf %52, %55 : vector<8x8xf32>
    %57 = math.exp %56 : vector<8x8xf32>
    %cst_24 = arith.constant dense<0.000000e+00> : vector<8xf32>
    %58 = vector.multi_reduction <add>, %57, %cst_24 [1] : vector<8x8xf32> to vector<8xf32>
    %59 = vector.shape_cast %58 : vector<8xf32> to vector<8x1xf32>
    %60 = tpu.reciprocal %59 : vector<8x1xf32> -> vector<8x1xf32>
    %61 = vector.broadcast %60 : vector<8x1xf32> to vector<8x8xf32>
    %62 = arith.mulf %57, %61 : vector<8x8xf32>
    %63 = arith.truncf %62 : vector<8x8xf32> to vector<8x8xbf16>
    %cst_25 = arith.constant dense<0.000000e+00> : vector<8x8xf32>
    %64 = tpu.matmul %63, %50, %cst_25 {dimension_numbers = #tpu.dot_dimension_numbers<[1], [0], [0], [1], [0, 0, 1, 1], [], []>} : vector<8x8xbf16>, vector<8x8xbf16>, vector<8x8xf32> -> vector<8x8xf32>
    %65 = vector.extract_strided_slice %28 {offsets = [0, 16], sizes = [8, 8], strides = [1, 1]} : vector<8x32xbf16> to vector<8x8xbf16>
    %66 = vector.extract_strided_slice %29 {offsets = [0, 16], sizes = [8, 8], strides = [1, 1]} : vector<8x32xbf16> to vector<8x8xbf16>
    %67 = vector.extract_strided_slice %30 {offsets = [0, 16], sizes = [8, 8], strides = [1, 1]} : vector<8x32xbf16> to vector<8x8xbf16>
    %cst_26 = arith.constant dense<0.000000e+00> : vector<8x8xf32>
    %68 = tpu.matmul %65, %66, %cst_26 {dimension_numbers = #tpu.dot_dimension_numbers<[1], [1], [0], [0], [0, 0, 1, 0], [], []>} : vector<8x8xbf16>, vector<8x8xbf16>, vector<8x8xf32> -> vector<8x8xf32>
    %69 = arith.addf %68, %25 : vector<8x8xf32>
    %cst_27 = arith.constant dense<0xFF800000> : vector<8xf32>
    %70 = vector.multi_reduction <maximumf>, %69, %cst_27 [1] : vector<8x8xf32> to vector<8xf32>
    %71 = vector.shape_cast %70 : vector<8xf32> to vector<8x1xf32>
    %72 = vector.broadcast %71 : vector<8x1xf32> to vector<8x8xf32>
    %73 = arith.subf %69, %72 : vector<8x8xf32>
    %74 = math.exp %73 : vector<8x8xf32>
    %cst_28 = arith.constant dense<0.000000e+00> : vector<8xf32>
    %75 = vector.multi_reduction <add>, %74, %cst_28 [1] : vector<8x8xf32> to vector<8xf32>
    %76 = vector.shape_cast %75 : vector<8xf32> to vector<8x1xf32>
    %77 = tpu.reciprocal %76 : vector<8x1xf32> -> vector<8x1xf32>
    %78 = vector.broadcast %77 : vector<8x1xf32> to vector<8x8xf32>
    %79 = arith.mulf %74, %78 : vector<8x8xf32>
    %80 = arith.truncf %79 : vector<8x8xf32> to vector<8x8xbf16>
    %cst_29 = arith.constant dense<0.000000e+00> : vector<8x8xf32>
    %81 = tpu.matmul %80, %67, %cst_29 {dimension_numbers = #tpu.dot_dimension_numbers<[1], [0], [0], [1], [0, 0, 1, 1], [], []>} : vector<8x8xbf16>, vector<8x8xbf16>, vector<8x8xf32> -> vector<8x8xf32>
    %82 = vector.extract_strided_slice %28 {offsets = [0, 24], sizes = [8, 8], strides = [1, 1]} : vector<8x32xbf16> to vector<8x8xbf16>
    %83 = vector.extract_strided_slice %29 {offsets = [0, 24], sizes = [8, 8], strides = [1, 1]} : vector<8x32xbf16> to vector<8x8xbf16>
    %84 = vector.extract_strided_slice %30 {offsets = [0, 24], sizes = [8, 8], strides = [1, 1]} : vector<8x32xbf16> to vector<8x8xbf16>
    %cst_30 = arith.constant dense<0.000000e+00> : vector<8x8xf32>
    %85 = tpu.matmul %82, %83, %cst_30 {dimension_numbers = #tpu.dot_dimension_numbers<[1], [1], [0], [0], [0, 0, 1, 0], [], []>} : vector<8x8xbf16>, vector<8x8xbf16>, vector<8x8xf32> -> vector<8x8xf32>
    %86 = arith.addf %85, %25 : vector<8x8xf32>
    %cst_31 = arith.constant dense<0xFF800000> : vector<8xf32>
    %87 = vector.multi_reduction <maximumf>, %86, %cst_31 [1] : vector<8x8xf32> to vector<8xf32>
    %88 = vector.shape_cast %87 : vector<8xf32> to vector<8x1xf32>
    %89 = vector.broadcast %88 : vector<8x1xf32> to vector<8x8xf32>
    %90 = arith.subf %86, %89 : vector<8x8xf32>
    %91 = math.exp %90 : vector<8x8xf32>
    %cst_32 = arith.constant dense<0.000000e+00> : vector<8xf32>
    %92 = vector.multi_reduction <add>, %91, %cst_32 [1] : vector<8x8xf32> to vector<8xf32>
    %93 = vector.shape_cast %92 : vector<8xf32> to vector<8x1xf32>
    %94 = tpu.reciprocal %93 : vector<8x1xf32> -> vector<8x1xf32>
    %95 = vector.broadcast %94 : vector<8x1xf32> to vector<8x8xf32>
    %96 = arith.mulf %91, %95 : vector<8x8xf32>
    %97 = arith.truncf %96 : vector<8x8xf32> to vector<8x8xbf16>
    %cst_33 = arith.constant dense<0.000000e+00> : vector<8x8xf32>
    %98 = tpu.matmul %97, %84, %cst_33 {dimension_numbers = #tpu.dot_dimension_numbers<[1], [0], [0], [1], [0, 0, 1, 1], [], []>} : vector<8x8xbf16>, vector<8x8xbf16>, vector<8x8xf32> -> vector<8x8xf32>
    %99 = tpu.concatenate %47, %64, %81, %98 in 1 : vector<8x8xf32>, vector<8x8xf32>, vector<8x8xf32>, vector<8x8xf32> -> vector<8x32xf32>
    %100 = arith.truncf %99 : vector<8x32xf32> to vector<8x32xbf16>
    %cst_34 = arith.constant dense<0.000000e+00> : vector<8x32xf32>
    %101 = tpu.matmul %100, %12, %cst_34 {dimension_numbers = #tpu.dot_dimension_numbers<[1], [0], [0], [1], [0, 0, 1, 1], [], []>} : vector<8x32xbf16>, vector<32x32xbf16>, vector<8x32xf32> -> vector<8x32xf32>
    %c0_35 = arith.constant 0 : index
    %c0_36 = arith.constant 0 : index
    %102 = vector.load %arg8[%c0_35, %c0_36] : memref<1x32xf32, #tpu.memory_space<vmem>>, vector<1x32xf32>
    %103 = vector.broadcast %102 : vector<1x32xf32> to vector<8x32xf32>
    %104 = arith.addf %101, %103 : vector<8x32xf32>
    %105 = arith.extf %1 : vector<8x32xbf16> to vector<8x32xf32>
    %106 = arith.addf %105, %104 : vector<8x32xf32>
    %c0_37 = arith.constant 0 : index
    %c0_38 = arith.constant 0 : index
    %107 = vector.load %arg9[%c0_37, %c0_38] : memref<1x32xf32, #tpu.memory_space<vmem>>, vector<1x32xf32>
    %c0_39 = arith.constant 0 : index
    %c0_40 = arith.constant 0 : index
    %108 = vector.load %arg10[%c0_39, %c0_40] : memref<1x32xf32, #tpu.memory_space<vmem>>, vector<1x32xf32>
    %cst_41 = arith.constant dense<0.000000e+00> : vector<8xf32>
    %109 = vector.multi_reduction <add>, %106, %cst_41 [1] : vector<8x32xf32> to vector<8xf32>
    %110 = vector.shape_cast %109 : vector<8xf32> to vector<8x1xf32>
    %cst_42 = arith.constant 3.200000e+01 : f32
    %111 = vector.broadcast %cst_42 : f32 to vector<8x1xf32>
    %112 = arith.divf %110, %111 : vector<8x1xf32>
    %113 = vector.broadcast %112 : vector<8x1xf32> to vector<8x32xf32>
    %114 = arith.subf %106, %113 : vector<8x32xf32>
    %115 = arith.mulf %114, %114 : vector<8x32xf32>
    %cst_43 = arith.constant dense<0.000000e+00> : vector<8xf32>
    %116 = vector.multi_reduction <add>, %115, %cst_43 [1] : vector<8x32xf32> to vector<8xf32>
    %117 = vector.shape_cast %116 : vector<8xf32> to vector<8x1xf32>
    %cst_44 = arith.constant 3.200000e+01 : f32
    %118 = vector.broadcast %cst_44 : f32 to vector<8x1xf32>
    %119 = arith.divf %117, %118 : vector<8x1xf32>
    %cst_45 = arith.constant 9.99999974E-6 : f32
    %120 = vector.broadcast %cst_45 : f32 to vector<8x1xf32>
    %121 = arith.addf %119, %120 : vector<8x1xf32>
    %122 = math.rsqrt %121 : vector<8x1xf32>
    %123 = vector.broadcast %122 : vector<8x1xf32> to vector<8x32xf32>
    %124 = arith.mulf %114, %123 : vector<8x32xf32>
    %125 = vector.broadcast %107 : vector<1x32xf32> to vector<8x32xf32>
    %126 = arith.mulf %124, %125 : vector<8x32xf32>
    %127 = vector.broadcast %108 : vector<1x32xf32> to vector<8x32xf32>
    %128 = arith.addf %126, %127 : vector<8x32xf32>
    %129 = arith.truncf %128 : vector<8x32xf32> to vector<8x32xbf16>
    %c0_46 = arith.constant 0 : index
    %c0_47 = arith.constant 0 : index
    %130 = vector.load %arg11[%c0_46, %c0_47] : memref<32x32xbf16, #tpu.memory_space<vmem>>, vector<32x32xbf16>
    %cst_48 = arith.constant dense<0.000000e+00> : vector<8x32xf32>
    %131 = tpu.matmul %129, %130, %cst_48 {dimension_numbers = #tpu.dot_dimension_numbers<[1], [0], [0], [1], [0, 0, 1, 1], [], []>} : vector<8x32xbf16>, vector<32x32xbf16>, vector<8x32xf32> -> vector<8x32xf32>
    %c0_49 = arith.constant 0 : index
    %c0_50 = arith.constant 0 : index
    %132 = vector.load %arg12[%c0_49, %c0_50] : memref<1x32xf32, #tpu.memory_space<vmem>>, vector<1x32xf32>
    %133 = vector.broadcast %132 : vector<1x32xf32> to vector<8x32xf32>
    %134 = arith.addf %131, %133 : vector<8x32xf32>
    %c0_51 = arith.constant 0 : index
    %c0_52 = arith.constant 0 : index
    %135 = vector.load %arg13[%c0_51, %c0_52] : memref<32x64xbf16, #tpu.memory_space<vmem>>, vector<32x64xbf16>
    %cst_53 = arith.constant dense<0.000000e+00> : vector<8x64xf32>
    %136 = tpu.matmul %3, %135, %cst_53 {dimension_numbers = #tpu.dot_dimension_numbers<[1], [0], [0], [1], [0, 0, 1, 1], [], []>} : vector<8x32xbf16>, vector<32x64xbf16>, vector<8x64xf32> -> vector<8x64xf32>
    %c0_54 = arith.constant 0 : index
    %c0_55 = arith.constant 0 : index
    %137 = vector.load %arg14[%c0_54, %c0_55] : memref<1x64xf32, #tpu.memory_space<vmem>>, vector<1x64xf32>
    %138 = vector.broadcast %137 : vector<1x64xf32> to vector<8x64xf32>
    %139 = arith.addf %136, %138 : vector<8x64xf32>
    %140 = vector.extract_strided_slice %139 {offsets = [0, 0], sizes = [8, 32], strides = [1, 1]} : vector<8x64xf32> to vector<8x32xf32>
    %141 = vector.extract_strided_slice %139 {offsets = [0, 32], sizes = [8, 32], strides = [1, 1]} : vector<8x64xf32> to vector<8x32xf32>
    %c0_56 = arith.constant 0 : index
    %c0_57 = arith.constant 0 : index
    %142 = vector.load %arg15[%c0_56, %c0_57] : memref<32x32xbf16, #tpu.memory_space<vmem>>, vector<32x32xbf16>
    %c0_58 = arith.constant 0 : index
    %c0_59 = arith.constant 0 : index
    %c0_60 = arith.constant 0 : index
    %143 = vector.load %arg4[%c0_58, %c0_59, %c0_60] : memref<1x1x8xf32, #tpu.memory_space<vmem>>, vector<1x1x8xf32>
    %144 = vector.shape_cast %143 : vector<1x1x8xf32> to vector<1x8xf32>
    %cst_61 = arith.constant 5.000000e-01 : f32
    %145 = vector.broadcast %cst_61 : f32 to vector<1x8xf32>
    %146 = arith.cmpf ogt, %144, %145 : vector<1x8xf32>
    %147 = vector.shape_cast %146 : vector<1x8xi1> to vector<1x8xi1>
    %148 = vector.broadcast %147 : vector<1x8xi1> to vector<8x8xi1>
    %cst_62 = arith.constant -1.000000e+30 : f32
    %cst_63 = arith.constant 0.000000e+00 : f32
    %149 = vector.broadcast %cst_62 : f32 to vector<8x8xf32>
    %150 = vector.broadcast %cst_63 : f32 to vector<8x8xf32>
    %151 = arith.select %148, %149, %150 : vector<8x8xi1>, vector<8x8xf32>
    %cst_64 = arith.constant 0.353553385 : f32
    %152 = vector.broadcast %cst_64 : f32 to vector<8x32xf32>
    %153 = arith.mulf %134, %152 : vector<8x32xf32>
    %154 = arith.truncf %153 : vector<8x32xf32> to vector<8x32xbf16>
    %155 = arith.truncf %140 : vector<8x32xf32> to vector<8x32xbf16>
    %156 = arith.truncf %141 : vector<8x32xf32> to vector<8x32xbf16>
    %157 = vector.extract_strided_slice %154 {offsets = [0, 0], sizes = [8, 8], strides = [1, 1]} : vector<8x32xbf16> to vector<8x8xbf16>
    %158 = vector.extract_strided_slice %155 {offsets = [0, 0], sizes = [8, 8], strides = [1, 1]} : vector<8x32xbf16> to vector<8x8xbf16>
    %159 = vector.extract_strided_slice %156 {offsets = [0, 0], sizes = [8, 8], strides = [1, 1]} : vector<8x32xbf16> to vector<8x8xbf16>
    %cst_65 = arith.constant dense<0.000000e+00> : vector<8x8xf32>
    %160 = tpu.matmul %157, %158, %cst_65 {dimension_numbers = #tpu.dot_dimension_numbers<[1], [1], [0], [0], [0, 0, 1, 0], [], []>} : vector<8x8xbf16>, vector<8x8xbf16>, vector<8x8xf32> -> vector<8x8xf32>
    %161 = arith.addf %160, %151 : vector<8x8xf32>
    %cst_66 = arith.constant dense<0xFF800000> : vector<8xf32>
    %162 = vector.multi_reduction <maximumf>, %161, %cst_66 [1] : vector<8x8xf32> to vector<8xf32>
    %163 = vector.shape_cast %162 : vector<8xf32> to vector<8x1xf32>
    %164 = vector.broadcast %163 : vector<8x1xf32> to vector<8x8xf32>
    %165 = arith.subf %161, %164 : vector<8x8xf32>
    %166 = math.exp %165 : vector<8x8xf32>
    %cst_67 = arith.constant dense<0.000000e+00> : vector<8xf32>
    %167 = vector.multi_reduction <add>, %166, %cst_67 [1] : vector<8x8xf32> to vector<8xf32>
    %168 = vector.shape_cast %167 : vector<8xf32> to vector<8x1xf32>
    %169 = tpu.reciprocal %168 : vector<8x1xf32> -> vector<8x1xf32>
    %170 = vector.broadcast %169 : vector<8x1xf32> to vector<8x8xf32>
    %171 = arith.mulf %166, %170 : vector<8x8xf32>
    %172 = arith.truncf %171 : vector<8x8xf32> to vector<8x8xbf16>
    %cst_68 = arith.constant dense<0.000000e+00> : vector<8x8xf32>
    %173 = tpu.matmul %172, %159, %cst_68 {dimension_numbers = #tpu.dot_dimension_numbers<[1], [0], [0], [1], [0, 0, 1, 1], [], []>} : vector<8x8xbf16>, vector<8x8xbf16>, vector<8x8xf32> -> vector<8x8xf32>
    %174 = vector.extract_strided_slice %154 {offsets = [0, 8], sizes = [8, 8], strides = [1, 1]} : vector<8x32xbf16> to vector<8x8xbf16>
    %175 = vector.extract_strided_slice %155 {offsets = [0, 8], sizes = [8, 8], strides = [1, 1]} : vector<8x32xbf16> to vector<8x8xbf16>
    %176 = vector.extract_strided_slice %156 {offsets = [0, 8], sizes = [8, 8], strides = [1, 1]} : vector<8x32xbf16> to vector<8x8xbf16>
    %cst_69 = arith.constant dense<0.000000e+00> : vector<8x8xf32>
    %177 = tpu.matmul %174, %175, %cst_69 {dimension_numbers = #tpu.dot_dimension_numbers<[1], [1], [0], [0], [0, 0, 1, 0], [], []>} : vector<8x8xbf16>, vector<8x8xbf16>, vector<8x8xf32> -> vector<8x8xf32>
    %178 = arith.addf %177, %151 : vector<8x8xf32>
    %cst_70 = arith.constant dense<0xFF800000> : vector<8xf32>
    %179 = vector.multi_reduction <maximumf>, %178, %cst_70 [1] : vector<8x8xf32> to vector<8xf32>
    %180 = vector.shape_cast %179 : vector<8xf32> to vector<8x1xf32>
    %181 = vector.broadcast %180 : vector<8x1xf32> to vector<8x8xf32>
    %182 = arith.subf %178, %181 : vector<8x8xf32>
    %183 = math.exp %182 : vector<8x8xf32>
    %cst_71 = arith.constant dense<0.000000e+00> : vector<8xf32>
    %184 = vector.multi_reduction <add>, %183, %cst_71 [1] : vector<8x8xf32> to vector<8xf32>
    %185 = vector.shape_cast %184 : vector<8xf32> to vector<8x1xf32>
    %186 = tpu.reciprocal %185 : vector<8x1xf32> -> vector<8x1xf32>
    %187 = vector.broadcast %186 : vector<8x1xf32> to vector<8x8xf32>
    %188 = arith.mulf %183, %187 : vector<8x8xf32>
    %189 = arith.truncf %188 : vector<8x8xf32> to vector<8x8xbf16>
    %cst_72 = arith.constant dense<0.000000e+00> : vector<8x8xf32>
    %190 = tpu.matmul %189, %176, %cst_72 {dimension_numbers = #tpu.dot_dimension_numbers<[1], [0], [0], [1], [0, 0, 1, 1], [], []>} : vector<8x8xbf16>, vector<8x8xbf16>, vector<8x8xf32> -> vector<8x8xf32>
    %191 = vector.extract_strided_slice %154 {offsets = [0, 16], sizes = [8, 8], strides = [1, 1]} : vector<8x32xbf16> to vector<8x8xbf16>
    %192 = vector.extract_strided_slice %155 {offsets = [0, 16], sizes = [8, 8], strides = [1, 1]} : vector<8x32xbf16> to vector<8x8xbf16>
    %193 = vector.extract_strided_slice %156 {offsets = [0, 16], sizes = [8, 8], strides = [1, 1]} : vector<8x32xbf16> to vector<8x8xbf16>
    %cst_73 = arith.constant dense<0.000000e+00> : vector<8x8xf32>
    %194 = tpu.matmul %191, %192, %cst_73 {dimension_numbers = #tpu.dot_dimension_numbers<[1], [1], [0], [0], [0, 0, 1, 0], [], []>} : vector<8x8xbf16>, vector<8x8xbf16>, vector<8x8xf32> -> vector<8x8xf32>
    %195 = arith.addf %194, %151 : vector<8x8xf32>
    %cst_74 = arith.constant dense<0xFF800000> : vector<8xf32>
    %196 = vector.multi_reduction <maximumf>, %195, %cst_74 [1] : vector<8x8xf32> to vector<8xf32>
    %197 = vector.shape_cast %196 : vector<8xf32> to vector<8x1xf32>
    %198 = vector.broadcast %197 : vector<8x1xf32> to vector<8x8xf32>
    %199 = arith.subf %195, %198 : vector<8x8xf32>
    %200 = math.exp %199 : vector<8x8xf32>
    %cst_75 = arith.constant dense<0.000000e+00> : vector<8xf32>
    %201 = vector.multi_reduction <add>, %200, %cst_75 [1] : vector<8x8xf32> to vector<8xf32>
    %202 = vector.shape_cast %201 : vector<8xf32> to vector<8x1xf32>
    %203 = tpu.reciprocal %202 : vector<8x1xf32> -> vector<8x1xf32>
    %204 = vector.broadcast %203 : vector<8x1xf32> to vector<8x8xf32>
    %205 = arith.mulf %200, %204 : vector<8x8xf32>
    %206 = arith.truncf %205 : vector<8x8xf32> to vector<8x8xbf16>
    %cst_76 = arith.constant dense<0.000000e+00> : vector<8x8xf32>
    %207 = tpu.matmul %206, %193, %cst_76 {dimension_numbers = #tpu.dot_dimension_numbers<[1], [0], [0], [1], [0, 0, 1, 1], [], []>} : vector<8x8xbf16>, vector<8x8xbf16>, vector<8x8xf32> -> vector<8x8xf32>
    %208 = vector.extract_strided_slice %154 {offsets = [0, 24], sizes = [8, 8], strides = [1, 1]} : vector<8x32xbf16> to vector<8x8xbf16>
    %209 = vector.extract_strided_slice %155 {offsets = [0, 24], sizes = [8, 8], strides = [1, 1]} : vector<8x32xbf16> to vector<8x8xbf16>
    %210 = vector.extract_strided_slice %156 {offsets = [0, 24], sizes = [8, 8], strides = [1, 1]} : vector<8x32xbf16> to vector<8x8xbf16>
    %cst_77 = arith.constant dense<0.000000e+00> : vector<8x8xf32>
    %211 = tpu.matmul %208, %209, %cst_77 {dimension_numbers = #tpu.dot_dimension_numbers<[1], [1], [0], [0], [0, 0, 1, 0], [], []>} : vector<8x8xbf16>, vector<8x8xbf16>, vector<8x8xf32> -> vector<8x8xf32>
    %212 = arith.addf %211, %151 : vector<8x8xf32>
    %cst_78 = arith.constant dense<0xFF800000> : vector<8xf32>
    %213 = vector.multi_reduction <maximumf>, %212, %cst_78 [1] : vector<8x8xf32> to vector<8xf32>
    %214 = vector.shape_cast %213 : vector<8xf32> to vector<8x1xf32>
    %215 = vector.broadcast %214 : vector<8x1xf32> to vector<8x8xf32>
    %216 = arith.subf %212, %215 : vector<8x8xf32>
    %217 = math.exp %216 : vector<8x8xf32>
    %cst_79 = arith.constant dense<0.000000e+00> : vector<8xf32>
    %218 = vector.multi_reduction <add>, %217, %cst_79 [1] : vector<8x8xf32> to vector<8xf32>
    %219 = vector.shape_cast %218 : vector<8xf32> to vector<8x1xf32>
    %220 = tpu.reciprocal %219 : vector<8x1xf32> -> vector<8x1xf32>
    %221 = vector.broadcast %220 : vector<8x1xf32> to vector<8x8xf32>
    %222 = arith.mulf %217, %221 : vector<8x8xf32>
    %223 = arith.truncf %222 : vector<8x8xf32> to vector<8x8xbf16>
    %cst_80 = arith.constant dense<0.000000e+00> : vector<8x8xf32>
    %224 = tpu.matmul %223, %210, %cst_80 {dimension_numbers = #tpu.dot_dimension_numbers<[1], [0], [0], [1], [0, 0, 1, 1], [], []>} : vector<8x8xbf16>, vector<8x8xbf16>, vector<8x8xf32> -> vector<8x8xf32>
    %225 = tpu.concatenate %173, %190, %207, %224 in 1 : vector<8x8xf32>, vector<8x8xf32>, vector<8x8xf32>, vector<8x8xf32> -> vector<8x32xf32>
    %226 = arith.truncf %225 : vector<8x32xf32> to vector<8x32xbf16>
    %cst_81 = arith.constant dense<0.000000e+00> : vector<8x32xf32>
    %227 = tpu.matmul %226, %142, %cst_81 {dimension_numbers = #tpu.dot_dimension_numbers<[1], [0], [0], [1], [0, 0, 1, 1], [], []>} : vector<8x32xbf16>, vector<32x32xbf16>, vector<8x32xf32> -> vector<8x32xf32>
    %c0_82 = arith.constant 0 : index
    %c0_83 = arith.constant 0 : index
    %228 = vector.load %arg16[%c0_82, %c0_83] : memref<1x32xf32, #tpu.memory_space<vmem>>, vector<1x32xf32>
    %229 = vector.broadcast %228 : vector<1x32xf32> to vector<8x32xf32>
    %230 = arith.addf %227, %229 : vector<8x32xf32>
    %231 = arith.addf %128, %230 : vector<8x32xf32>
    %c0_84 = arith.constant 0 : index
    %c0_85 = arith.constant 0 : index
    %232 = vector.load %arg17[%c0_84, %c0_85] : memref<1x32xf32, #tpu.memory_space<vmem>>, vector<1x32xf32>
    %c0_86 = arith.constant 0 : index
    %c0_87 = arith.constant 0 : index
    %233 = vector.load %arg18[%c0_86, %c0_87] : memref<1x32xf32, #tpu.memory_space<vmem>>, vector<1x32xf32>
    %cst_88 = arith.constant dense<0.000000e+00> : vector<8xf32>
    %234 = vector.multi_reduction <add>, %231, %cst_88 [1] : vector<8x32xf32> to vector<8xf32>
    %235 = vector.shape_cast %234 : vector<8xf32> to vector<8x1xf32>
    %cst_89 = arith.constant 3.200000e+01 : f32
    %236 = vector.broadcast %cst_89 : f32 to vector<8x1xf32>
    %237 = arith.divf %235, %236 : vector<8x1xf32>
    %238 = vector.broadcast %237 : vector<8x1xf32> to vector<8x32xf32>
    %239 = arith.subf %231, %238 : vector<8x32xf32>
    %240 = arith.mulf %239, %239 : vector<8x32xf32>
    %cst_90 = arith.constant dense<0.000000e+00> : vector<8xf32>
    %241 = vector.multi_reduction <add>, %240, %cst_90 [1] : vector<8x32xf32> to vector<8xf32>
    %242 = vector.shape_cast %241 : vector<8xf32> to vector<8x1xf32>
    %cst_91 = arith.constant 3.200000e+01 : f32
    %243 = vector.broadcast %cst_91 : f32 to vector<8x1xf32>
    %244 = arith.divf %242, %243 : vector<8x1xf32>
    %cst_92 = arith.constant 9.99999974E-6 : f32
    %245 = vector.broadcast %cst_92 : f32 to vector<8x1xf32>
    %246 = arith.addf %244, %245 : vector<8x1xf32>
    %247 = math.rsqrt %246 : vector<8x1xf32>
    %248 = vector.broadcast %247 : vector<8x1xf32> to vector<8x32xf32>
    %249 = arith.mulf %239, %248 : vector<8x32xf32>
    %250 = vector.broadcast %232 : vector<1x32xf32> to vector<8x32xf32>
    %251 = arith.mulf %249, %250 : vector<8x32xf32>
    %252 = vector.broadcast %233 : vector<1x32xf32> to vector<8x32xf32>
    %253 = arith.addf %251, %252 : vector<8x32xf32>
    %254 = arith.truncf %253 : vector<8x32xf32> to vector<8x32xbf16>
    %c0_93 = arith.constant 0 : index
    %c0_94 = arith.constant 0 : index
    %255 = vector.load %arg19[%c0_93, %c0_94] : memref<32x64xbf16, #tpu.memory_space<vmem>>, vector<32x64xbf16>
    %cst_95 = arith.constant dense<0.000000e+00> : vector<8x64xf32>
    %256 = tpu.matmul %254, %255, %cst_95 {dimension_numbers = #tpu.dot_dimension_numbers<[1], [0], [0], [1], [0, 0, 1, 1], [], []>} : vector<8x32xbf16>, vector<32x64xbf16>, vector<8x64xf32> -> vector<8x64xf32>
    %c0_96 = arith.constant 0 : index
    %c0_97 = arith.constant 0 : index
    %257 = vector.load %arg20[%c0_96, %c0_97] : memref<1x64xf32, #tpu.memory_space<vmem>>, vector<1x64xf32>
    %258 = vector.broadcast %257 : vector<1x64xf32> to vector<8x64xf32>
    %259 = arith.addf %256, %258 : vector<8x64xf32>
    %cst_98 = arith.constant 0.000000e+00 : f32
    %260 = vector.broadcast %cst_98 : f32 to vector<8x64xf32>
    %261 = arith.maximumf %259, %260 : vector<8x64xf32>
    %262 = arith.truncf %261 : vector<8x64xf32> to vector<8x64xbf16>
    %c0_99 = arith.constant 0 : index
    %c0_100 = arith.constant 0 : index
    %263 = vector.load %arg21[%c0_99, %c0_100] : memref<64x32xbf16, #tpu.memory_space<vmem>>, vector<64x32xbf16>
    %cst_101 = arith.constant dense<0.000000e+00> : vector<8x32xf32>
    %264 = tpu.matmul %262, %263, %cst_101 {dimension_numbers = #tpu.dot_dimension_numbers<[1], [0], [0], [1], [0, 0, 1, 1], [], []>} : vector<8x64xbf16>, vector<64x32xbf16>, vector<8x32xf32> -> vector<8x32xf32>
    %c0_102 = arith.constant 0 : index
    %c0_103 = arith.constant 0 : index
    %265 = vector.load %arg22[%c0_102, %c0_103] : memref<1x32xf32, #tpu.memory_space<vmem>>, vector<1x32xf32>
    %266 = vector.broadcast %265 : vector<1x32xf32> to vector<8x32xf32>
    %267 = arith.addf %264, %266 : vector<8x32xf32>
    %268 = arith.addf %253, %267 : vector<8x32xf32>
    %c0_104 = arith.constant 0 : index
    %c0_105 = arith.constant 0 : index
    %269 = vector.load %arg23[%c0_104, %c0_105] : memref<1x32xf32, #tpu.memory_space<vmem>>, vector<1x32xf32>
    %c0_106 = arith.constant 0 : index
    %c0_107 = arith.constant 0 : index
    %270 = vector.load %arg24[%c0_106, %c0_107] : memref<1x32xf32, #tpu.memory_space<vmem>>, vector<1x32xf32>
    %cst_108 = arith.constant dense<0.000000e+00> : vector<8xf32>
    %271 = vector.multi_reduction <add>, %268, %cst_108 [1] : vector<8x32xf32> to vector<8xf32>
    %272 = vector.shape_cast %271 : vector<8xf32> to vector<8x1xf32>
    %cst_109 = arith.constant 3.200000e+01 : f32
    %273 = vector.broadcast %cst_109 : f32 to vector<8x1xf32>
    %274 = arith.divf %272, %273 : vector<8x1xf32>
    %275 = vector.broadcast %274 : vector<8x1xf32> to vector<8x32xf32>
    %276 = arith.subf %268, %275 : vector<8x32xf32>
    %277 = arith.mulf %276, %276 : vector<8x32xf32>
    %cst_110 = arith.constant dense<0.000000e+00> : vector<8xf32>
    %278 = vector.multi_reduction <add>, %277, %cst_110 [1] : vector<8x32xf32> to vector<8xf32>
    %279 = vector.shape_cast %278 : vector<8xf32> to vector<8x1xf32>
    %cst_111 = arith.constant 3.200000e+01 : f32
    %280 = vector.broadcast %cst_111 : f32 to vector<8x1xf32>
    %281 = arith.divf %279, %280 : vector<8x1xf32>
    %cst_112 = arith.constant 9.99999974E-6 : f32
    %282 = vector.broadcast %cst_112 : f32 to vector<8x1xf32>
    %283 = arith.addf %281, %282 : vector<8x1xf32>
    %284 = math.rsqrt %283 : vector<8x1xf32>
    %285 = vector.broadcast %284 : vector<8x1xf32> to vector<8x32xf32>
    %286 = arith.mulf %276, %285 : vector<8x32xf32>
    %287 = vector.broadcast %269 : vector<1x32xf32> to vector<8x32xf32>
    %288 = arith.mulf %286, %287 : vector<8x32xf32>
    %289 = vector.broadcast %270 : vector<1x32xf32> to vector<8x32xf32>
    %290 = arith.addf %288, %289 : vector<8x32xf32>
    %291 = arith.truncf %290 : vector<8x32xf32> to vector<8x32xbf16>
    %c0_113 = arith.constant 0 : index
    %c0_114 = arith.constant 0 : index
    %c0_115 = arith.constant 0 : index
    %292 = vector.load %arg25[%c0_113, %c0_114, %c0_115] : memref<1x8x32xbf16, #tpu.memory_space<vmem>>, vector<1x8x32xbf16>
    %293 = vector.shape_cast %292 : vector<1x8x32xbf16> to vector<8x32xbf16>
    %294 = vector.shape_cast %291 : vector<8x32xbf16> to vector<1x8x32xbf16>
    tpu.vector_store %arg25[%c0_113, %c0_114, %c0_115], %294 {strides = array<i32>} : memref<1x8x32xbf16, #tpu.memory_space<vmem>>, vector<1x8x32xbf16>,
    return
  }
  func.func @transform_0(%arg0: i32) -> (i32, i32, i32) {
    %c0_i32 = arith.constant 0 : i32
    %c0_i32_0 = arith.constant 0 : i32
    %c0_i32_1 = arith.constant 0 : i32
    return %arg0, %c0_i32, %c0_i32_0 : i32, i32, i32
  }
  func.func @transform_1(%arg0: i32) -> (i32, i32, i32) {
    %c0_i32 = arith.constant 0 : i32
    %c0_i32_0 = arith.constant 0 : i32
    %c0_i32_1 = arith.constant 0 : i32
    return %arg0, %c0_i32, %c0_i32_0 : i32, i32, i32
  }
  func.func @transform_2(%arg0: i32) -> (i32, i32, i32) {
    %c0_i32 = arith.constant 0 : i32
    %c0_i32_0 = arith.constant 0 : i32
    %c0_i32_1 = arith.constant 0 : i32
    return %arg0, %c0_i32, %c0_i32_0 : i32, i32, i32
  }
  func.func @transform_3(%arg0: i32) -> (i32, i32, i32) {
    %c0_i32 = arith.constant 0 : i32
    %c0_i32_0 = arith.constant 0 : i32
    %c0_i32_1 = arith.constant 0 : i32
    return %arg0, %c0_i32, %c0_i32_0 : i32, i32, i32
  }
  func.func @transform_4(%arg0: i32) -> (i32, i32) {
    %c0_i32 = arith.constant 0 : i32
    %c0_i32_0 = arith.constant 0 : i32
    %c0_i32_1 = arith.constant 0 : i32
    return %c0_i32, %c0_i32_0 : i32, i32
  }
  func.func @transform_5(%arg0: i32) -> (i32, i32) {
    %c0_i32 = arith.constant 0 : i32
    %c0_i32_0 = arith.constant 0 : i32
    %c0_i32_1 = arith.constant 0 : i32
    return %c0_i32, %c0_i32_0 : i32, i32
  }
  func.func @transform_6(%arg0: i32) -> (i32, i32) {
    %c0_i32 = arith.constant 0 : i32
    %c0_i32_0 = arith.constant 0 : i32
    %c0_i32_1 = arith.constant 0 : i32
    return %c0_i32, %c0_i32_0 : i32, i32
  }
  func.func @transform_7(%arg0: i32) -> (i32, i32) {
    %c0_i32 = arith.constant 0 : i32
    %c0_i32_0 = arith.constant 0 : i32
    %c0_i32_1 = arith.constant 0 : i32
    return %c0_i32, %c0_i32_0 : i32, i32
  }
  func.func @transform_8(%arg0: i32) -> (i32, i32) {
    %c0_i32 = arith.constant 0 : i32
    %c0_i32_0 = arith.constant 0 : i32
    %c0_i32_1 = arith.constant 0 : i32
    return %c0_i32, %c0_i32_0 : i32, i32
  }
  func.func @transform_9(%arg0: i32) -> (i32, i32) {
    %c0_i32 = arith.constant 0 : i32
    %c0_i32_0 = arith.constant 0 : i32
    %c0_i32_1 = arith.constant 0 : i32
    return %c0_i32, %c0_i32_0 : i32, i32
  }
  func.func @transform_10(%arg0: i32) -> (i32, i32) {
    %c0_i32 = arith.constant 0 : i32
    %c0_i32_0 = arith.constant 0 : i32
    %c0_i32_1 = arith.constant 0 : i32
    return %c0_i32, %c0_i32_0 : i32, i32
  }
  func.func @transform_11(%arg0: i32) -> (i32, i32) {
    %c0_i32 = arith.constant 0 : i32
    %c0_i32_0 = arith.constant 0 : i32
    %c0_i32_1 = arith.constant 0 : i32
    return %c0_i32, %c0_i32_0 : i32, i32
  }
  func.func @transform_12(%arg0: i32) -> (i32, i32) {
    %c0_i32 = arith.constant 0 : i32
    %c0_i32_0 = arith.constant 0 : i32
    %c0_i32_1 = arith.constant 0 : i32
    return %c0_i32, %c0_i32_0 : i32, i32
  }
  func.func @transform_13(%arg0: i32) -> (i32, i32) {
    %c0_i32 = arith.constant 0 : i32
    %c0_i32_0 = arith.constant 0 : i32
    %c0_i32_1 = arith.constant 0 : i32
    return %c0_i32, %c0_i32_0 : i32, i32
  }
  func.func @transform_14(%arg0: i32) -> (i32, i32) {
    %c0_i32 = arith.constant 0 : i32
    %c0_i32_0 = arith.constant 0 : i32
    %c0_i32_1 = arith.constant 0 : i32
    return %c0_i32, %c0_i32_0 : i32, i32
  }
  func.func @transform_15(%arg0: i32) -> (i32, i32) {
    %c0_i32 = arith.constant 0 : i32
    %c0_i32_0 = arith.constant 0 : i32
    %c0_i32_1 = arith.constant 0 : i32
    return %c0_i32, %c0_i32_0 : i32, i32
  }
  func.func @transform_16(%arg0: i32) -> (i32, i32) {
    %c0_i32 = arith.constant 0 : i32
    %c0_i32_0 = arith.constant 0 : i32
    %c0_i32_1 = arith.constant 0 : i32
    return %c0_i32, %c0_i32_0 : i32, i32
  }
  func.func @transform_17(%arg0: i32) -> (i32, i32) {
    %c0_i32 = arith.constant 0 : i32
    %c0_i32_0 = arith.constant 0 : i32
    %c0_i32_1 = arith.constant 0 : i32
    return %c0_i32, %c0_i32_0 : i32, i32
  }
  func.func @transform_18(%arg0: i32) -> (i32, i32) {
    %c0_i32 = arith.constant 0 : i32
    %c0_i32_0 = arith.constant 0 : i32
    %c0_i32_1 = arith.constant 0 : i32
    return %c0_i32, %c0_i32_0 : i32, i32
  }
  func.func @transform_19(%arg0: i32) -> (i32, i32) {
    %c0_i32 = arith.constant 0 : i32
    %c0_i32_0 = arith.constant 0 : i32
    %c0_i32_1 = arith.constant 0 : i32
    return %c0_i32, %c0_i32_0 : i32, i32
  }
  func.func @transform_20(%arg0: i32) -> (i32, i32) {
    %c0_i32 = arith.constant 0 : i32
    %c0_i32_0 = arith.constant 0 : i32
    %c0_i32_1 = arith.constant 0 : i32
    return %c0_i32, %c0_i32_0 : i32, i32
  }
  func.func @transform_21(%arg0: i32) -> (i32, i32) {
    %c0_i32 = arith.constant 0 : i32
    %c0_i32_0 = arith.constant 0 : i32
    %c0_i32_1 = arith.constant 0 : i32
    return %c0_i32, %c0_i32_0 : i32, i32
  }
  func.func @transform_22(%arg0: i32) -> (i32, i32) {
    %c0_i32 = arith.constant 0 : i32
    %c0_i32_0 = arith.constant 0 : i32
    %c0_i32_1 = arith.constant 0 : i32
    return %c0_i32, %c0_i32_0 : i32, i32
  }
  func.func @transform_23(%arg0: i32) -> (i32, i32) {
    %c0_i32 = arith.constant 0 : i32
    %c0_i32_0 = arith.constant 0 : i32
    %c0_i32_1 = arith.constant 0 : i32
    return %c0_i32, %c0_i32_0 : i32, i32
  }
  func.func @transform_24(%arg0: i32) -> (i32, i32, i32) {
    %c0_i32 = arith.constant 0 : i32
    %c0_i32_0 = arith.constant 0 : i32
    %c0_i32_1 = arith.constant 0 : i32
    return %arg0, %c0_i32, %c0_i32_0 : i32, i32, i32
  }
}

module attributes {stable_mosaic.version = 11 : i64} {
  func.func @_decoder_layer_kernel(%arg0: i32, %arg1: memref<1x8x32xbf16, #tpu.memory_space<vmem>>, %arg2: memref<1x8x32xbf16, #tpu.memory_space<vmem>>, %arg3: memref<1x1x8xf32, #tpu.memory_space<vmem>>, %arg4: memref<1x1x8xf32, #tpu.memory_space<vmem>>, %arg5: memref<32x96xbf16, #tpu.memory_space<vmem>>, %arg6: memref<1x96xf32, #tpu.memory_space<vmem>>, %arg7: memref<32x32xbf16, #tpu.memory_space<vmem>>, %arg8: memref<1x32xf32, #tpu.memory_space<vmem>>, %arg9: memref<1x32xf32, #tpu.memory_space<vmem>>, %arg10: memref<1x32xf32, #tpu.memory_space<vmem>>, %arg11: memref<32x32xbf16, #tpu.memory_space<vmem>>, %arg12: memref<1x32xf32, #tpu.memory_space<vmem>>, %arg13: memref<32x64xbf16, #tpu.memory_space<vmem>>, %arg14: memref<1x64xf32, #tpu.memory_space<vmem>>, %arg15: memref<32x32xbf16, #tpu.memory_space<vmem>>, %arg16: memref<1x32xf32, #tpu.memory_space<vmem>>, %arg17: memref<1x32xf32, #tpu.memory_space<vmem>>, %arg18: memref<1x32xf32, #tpu.memory_space<vmem>>, %arg19: memref<32x64xbf16, #tpu.memory_space<vmem>>, %arg20: memref<1x64xf32, #tpu.memory_space<vmem>>, %arg21: memref<64x32xbf16, #tpu.memory_space<vmem>>, %arg22: memref<1x32xf32, #tpu.memory_space<vmem>>, %arg23: memref<1x32xf32, #tpu.memory_space<vmem>>, %arg24: memref<1x32xf32, #tpu.memory_space<vmem>>, %arg25: memref<1x8x32xbf16, #tpu.memory_space<vmem>>) attributes {dimension_semantics = [#tpu.dimension_semantics<parallel>], iteration_bounds = array<i64: 2>, scalar_prefetch = 0 : i64, scratch_operands = 0 : i64, tpu.core_type = #tpu.core_type<tc>, window_params = [{transform_indices = @transform_0, window_bounds = array<i64: 1, 8, 32>}, {transform_indices = @transform_1, window_bounds = array<i64: 1, 8, 32>}, {transform_indices = @transform_2, window_bounds = array<i64: 1, 1, 8>}, {transform_indices = @transform_3, window_bounds = array<i64: 1, 1, 8>}, {pipeline_mode = #tpu.pipeline_mode<synchronous>, transform_indices = @transform_4, window_bounds = array<i64: 32, 96>}, {pipeline_mode = #tpu.pipeline_mode<synchronous>, transform_indices = @transform_5, window_bounds = array<i64: 1, 96>}, {pipeline_mode = #tpu.pipeline_mode<synchronous>, transform_indices = @transform_6, window_bounds = array<i64: 32, 32>}, {pipeline_mode = #tpu.pipeline_mode<synchronous>, transform_indices = @transform_7, window_bounds = array<i64: 1, 32>}, {pipeline_mode = #tpu.pipeline_mode<synchronous>, transform_indices = @transform_8, window_bounds = array<i64: 1, 32>}, {pipeline_mode = #tpu.pipeline_mode<synchronous>, transform_indices = @transform_9, window_bounds = array<i64: 1, 32>}, {pipeline_mode = #tpu.pipeline_mode<synchronous>, transform_indices = @transform_10, window_bounds = array<i64: 32, 32>}, {pipeline_mode = #tpu.pipeline_mode<synchronous>, transform_indices = @transform_11, window_bounds = array<i64: 1, 32>}, {pipeline_mode = #tpu.pipeline_mode<synchronous>, transform_indices = @transform_12, window_bounds = array<i64: 32, 64>}, {pipeline_mode = #tpu.pipeline_mode<synchronous>, transform_indices = @transform_13, window_bounds = array<i64: 1, 64>}, {pipeline_mode = #tpu.pipeline_mode<synchronous>, transform_indices = @transform_14, window_bounds = array<i64: 32, 32>}, {pipeline_mode = #tpu.pipeline_mode<synchronous>, transform_indices = @transform_15, window_bounds = array<i64: 1, 32>}, {pipeline_mode = #tpu.pipeline_mode<synchronous>, transform_indices = @transform_16, window_bounds = array<i64: 1, 32>}, {pipeline_mode = #tpu.pipeline_mode<synchronous>, transform_indices = @transform_17, window_bounds = array<i64: 1, 32>}, {pipeline_mode = #tpu.pipeline_mode<synchronous>, transform_indices = @transform_18, window_bounds = array<i64: 32, 64>}, {pipeline_mode = #tpu.pipeline_mode<synchronous>, transform_indices = @transform_19, window_bounds = array<i64: 1, 64>}, {pipeline_mode = #tpu.pipeline_mode<synchronous>, transform_indices = @transform_20, window_bounds = array<i64: 64, 32>}, {pipeline_mode = #tpu.pipeline_mode<synchronous>, transform_indices = @transform_21, window_bounds = array<i64: 1, 32>}, {pipeline_mode = #tpu.pipeline_mode<synchronous>, transform_indices = @transform_22, window_bounds = array<i64: 1, 32>}, {pipeline_mode = #tpu.pipeline_mode<synchronous>, transform_indices = @transform_23, window_bounds = array<i64: 1, 32>}, {transform_indices = @transform_24, window_bounds = array<i64: 1, 8, 32>}]} {
    %c0 = arith.constant 0 : index
    %c0_0 = arith.constant 0 : index
    %c0_1 = arith.constant 0 : index
    %0 = vector.load %arg1[%c0, %c0_0, %c0_1] : memref<1x8x32xbf16, #tpu.memory_space<vmem>>, vector<1x8x32xbf16>
    %1 = vector.shape_cast %0 : vector<1x8x32xbf16> to vector<8x32xbf16>
    %c0_2 = arith.constant 0 : index
    %c0_3 = arith.constant 0 : index
    %c0_4 = arith.constant 0 : index
    %2 = vector.load %arg2[%c0_2, %c0_3, %c0_4] : memref<1x8x32xbf16, #tpu.memory_space<vmem>>, vector<1x8x32xbf16>
    %3 = vector.shape_cast %2 : vector<1x8x32xbf16> to vector<8x32xbf16>
    %c0_5 = arith.constant 0 : index
    %c0_6 = arith.constant 0 : index
    %4 = vector.load %arg5[%c0_5, %c0_6] : memref<32x96xbf16, #tpu.memory_space<vmem>>, vector<32x96xbf16>
    %cst = arith.constant dense<0.000000e+00> : vector<8x96xf32>
    %5 = tpu.matmul %1, %4, %cst {dimension_numbers = #tpu.dot_dimension_numbers<[1], [0], [0], [1], [0, 0, 1, 1], [], []>} : vector<8x32xbf16>, vector<32x96xbf16>, vector<8x96xf32> -> vector<8x96xf32>
    %c0_7 = arith.constant 0 : index
    %c0_8 = arith.constant 0 : index
    %6 = vector.load %arg6[%c0_7, %c0_8] : memref<1x96xf32, #tpu.memory_space<vmem>>, vector<1x96xf32>
    %7 = vector.broadcast %6 : vector<1x96xf32> to vector<8x96xf32>
    %8 = arith.addf %5, %7 : vector<8x96xf32>
    %9 = vector.extract_strided_slice %8 {offsets = [0, 0], sizes = [8, 32], strides = [1, 1]} : vector<8x96xf32> to vector<8x32xf32>
    %10 = vector.extract_strided_slice %8 {offsets = [0, 32], sizes = [8, 32], strides = [1, 1]} : vector<8x96xf32> to vector<8x32xf32>
    %11 = vector.extract_strided_slice %8 {offsets = [0, 64], sizes = [8, 32], strides = [1, 1]} : vector<8x96xf32> to vector<8x32xf32>
    %c0_9 = arith.constant 0 : index
    %c0_10 = arith.constant 0 : index
    %12 = vector.load %arg7[%c0_9, %c0_10] : memref<32x32xbf16, #tpu.memory_space<vmem>>, vector<32x32xbf16>
    %c0_11 = arith.constant 0 : index
    %c0_12 = arith.constant 0 : index
    %c0_13 = arith.constant 0 : index
    %13 = vector.load %arg3[%c0_11, %c0_12, %c0_13] : memref<1x1x8xf32, #tpu.memory_space<vmem>>, vector<1x1x8xf32>
    %14 = vector.shape_cast %13 : vector<1x1x8xf32> to vector<1x8xf32>
    %cst_14 = arith.constant 5.000000e-01 : f32
    %15 = vector.broadcast %cst_14 : f32 to vector<1x8xf32>
    %16 = arith.cmpf ogt, %14, %15 : vector<1x8xf32>
    %17 = vector.shape_cast %16 : vector<1x8xi1> to vector<1x8xi1>
    %18 = vector.broadcast %17 : vector<1x8xi1> to vector<8x8xi1>
    %19 = tpu.iota {dimensions = array<i32: 0>} : vector<8x8xi32>
    %20 = tpu.iota {dimensions = array<i32: 1>} : vector<8x8xi32>
    %21 = arith.cmpi sgt, %20, %19 : vector<8x8xi32>
    %22 = arith.ori %18, %21 : vector<8x8xi1>
    %cst_15 = arith.constant -1.000000e+30 : f32
    %cst_16 = arith.constant 0.000000e+00 : f32
    %23 = vector.broadcast %cst_15 : f32 to vector<8x8xf32>
    %24 = vector.broadcast %cst_16 : f32 to vector<8x8xf32>
    %25 = arith.select %22, %23, %24 : vector<8x8xi1>, vector<8x8xf32>
    %cst_17 = arith.constant 0.353553385 : f32
    %26 = vector.broadcast %cst_17 : f32 to vector<8x32xf32>
    %27 = arith.mulf %9, %26 : vector<8x32xf32>
    %28 = arith.truncf %27 : vector<8x32xf32> to vector<8x32xbf16>
    %29 = arith.truncf %10 : vector<8x32xf32> to vector<8x32xbf16>
    %30 = arith.truncf %11 : vector<8x32xf32> to vector<8x32xbf16>
    %31 = vector.extract_strided_slice %28 {offsets = [0, 0], sizes = [8, 8], strides = [1, 1]} : vector<8x32xbf16> to vector<8x8xbf16>
    %32 = vector.extract_strided_slice %29 {offsets = [0, 0], sizes = [8, 8], strides = [1, 1]} : vector<8x32xbf16> to vector<8x8xbf16>
    %33 = vector.extract_strided_slice %30 {offsets = [0, 0], sizes = [8, 8], strides = [1, 1]} : vector<8x32xbf16> to vector<8x8xbf16>
    %cst_18 = arith.constant dense<0.000000e+00> : vector<8x8xf32>
    %34 = tpu.matmul %31, %32, %cst_18 {dimension_numbers = #tpu.dot_dimension_numbers<[1], [1], [0], [0], [0, 0, 1, 0], [], []>} : vector<8x8xbf16>, vector<8x8xbf16>, vector<8x8xf32> -> vector<8x8xf32>
    %35 = arith.addf %34, %25 : vector<8x8xf32>
    %cst_19 = arith.constant dense<0xFF800000> : vector<8xf32>
    %36 = vector.multi_reduction <maximumf>, %35, %cst_19 [1] : vector<8x8xf32> to vector<8xf32>
    %37 = vector.shape_cast %36 : vector<8xf32> to vector<8x1xf32>
    %38 = vector.broadcast %37 : vector<8x1xf32> to vector<8x8xf32>
    %39 = arith.subf %35, %38 : vector<8x8xf32>
    %40 = math.exp %39 : vector<8x8xf32>
    %cst_20 = arith.constant dense<0.000000e+00> : vector<8xf32>
    %41 = vector.multi_reduction <add>, %40, %cst_20 [1] : vector<8x8xf32> to vector<8xf32>
    %42 = vector.shape_cast %41 : vector<8xf32> to vector<8x1xf32>
    %43 = tpu.reciprocal %42 : vector<8x1xf32> -> vector<8x1xf32>
    %44 = vector.broadcast %43 : vector<8x1xf32> to vector<8x8xf32>
    %45 = arith.mulf %40, %44 : vector<8x8xf32>
    %46 = arith.truncf %45 : vector<8x8xf32> to vector<8x8xbf16>
    %cst_21 = arith.constant dense<0.000000e+00> : vector<8x8xf32>
    %47 = tpu.matmul %46, %33, %cst_21 {dimension_numbers = #tpu.dot_dimension_numbers<[1], [0], [0], [1], [0, 0, 1, 1], [], []>} : vector<8x8xbf16>, vector<8x8xbf16>, vector<8x8xf32> -> vector<8x8xf32>
    %48 = vector.extract_strided_slice %28 {offsets = [0, 8], sizes = [8, 8], strides = [1, 1]} : vector<8x32xbf16> to vector<8x8xbf16>
    %49 = vector.extract_strided_slice %29 {offsets = [0, 8], sizes = [8, 8], strides = [1, 1]} : vector<8x32xbf16> to vector<8x8xbf16>
    %50 = vector.extract_strided_slice %30 {offsets = [0, 8], sizes = [8, 8], strides = [1, 1]} : vector<8x32xbf16> to vector<8x8xbf16>
    %cst_22 = arith.constant dense<0.000000e+00> : vector<8x8xf32>
    %51 = tpu.matmul %48, %49, %cst_22 {dimension_numbers = #tpu.dot_dimension_numbers<[1], [1], [0], [0], [0, 0, 1, 0], [], []>} : vector<8x8xbf16>, vector<8x8xbf16>, vector<8x8xf32> -> vector<8x8xf32>
    %52 = arith.addf %51, %25 : vector<8x8xf32>
    %cst_23 = arith.constant dense<0xFF800000> : vector<8xf32>
    %53 = vector.multi_reduction <maximumf>, %52, %cst_23 [1] : vector<8x8xf32> to vector<8xf32>
    %54 = vector.shape_cast %53 : vector<8xf32> to vector<8x1xf32>
    %55 = vector.broadcast %54 : vector<8x1xf32> to vector<8x8xf32>
    %56 = arith.subf %52, %55 : vector<8x8xf32>
    %57 = math.exp %56 : vector<8x8xf32>
    %cst_24 = arith.constant dense<0.000000e+00> : vector<8xf32>
    %58 = vector.multi_reduction <add>, %57, %cst_24 [1] : vector<8x8xf32> to vector<8xf32>
    %59 = vector.shape_cast %58 : vector<8xf32> to vector<8x1xf32>
    %60 = tpu.reciprocal %59 : vector<8x1xf32> -> vector<8x1xf32>
    %61 = vector.broadcast %60 : vector<8x1xf32> to vector<8x8xf32>
    %62 = arith.mulf %57, %61 : vector<8x8xf32>
    %63 = arith.truncf %62 : vector<8x8xf32> to vector<8x8xbf16>
    %cst_25 = arith.constant dense<0.000000e+00> : vector<8x8xf32>
    %64 = tpu.matmul %63, %50, %cst_25 {dimension_numbers = #tpu.dot_dimension_numbers<[1], [0], [0], [1], [0, 0, 1, 1], [], []>} : vector<8x8xbf16>, vector<8x8xbf16>, vector<8x8xf32> -> vector<8x8xf32>
    %65 = vector.extract_strided_slice %28 {offsets = [0, 16], sizes = [8, 8], strides = [1, 1]} : vector<8x32xbf16> to vector<8x8xbf16>
    %66 = vector.extract_strided_slice %29 {offsets = [0, 16], sizes = [8, 8], strides = [1, 1]} : vector<8x32xbf16> to vector<8x8xbf16>
    %67 = vector.extract_strided_slice %30 {offsets = [0, 16], sizes = [8, 8], strides = [1, 1]} : vector<8x32xbf16> to vector<8x8xbf16>
    %cst_26 = arith.constant dense<0.000000e+00> : vector<8x8xf32>
    %68 = tpu.matmul %65, %66, %cst_26 {dimension_numbers = #tpu.dot_dimension_numbers<[1], [1], [0], [0], [0, 0, 1, 0], [], []>} : vector<8x8xbf16>, vector<8x8xbf16>, vector<8x8xf32> -> vector<8x8xf32>
    %69 = arith.addf %68, %25 : vector<8x8xf32>
    %cst_27 = arith.constant dense<0xFF800000> : vector<8xf32>
    %70 = vector.multi_reduction <maximumf>, %69, %cst_27 [1] : vector<8x8xf32> to vector<8xf32>
    %71 = vector.shape_cast %70 : vector<8xf32> to vector<8x1xf32>
    %72 = vector.broadcast %71 : vector<8x1xf32> to vector<8x8xf32>
    %73 = arith.subf %69, %72 : vector<8x8xf32>
    %74 = math.exp %73 : vector<8x8xf32>
    %cst_28 = arith.constant dense<0.000000e+00> : vector<8xf32>
    %75 = vector.multi_reduction <add>, %74, %cst_28 [1] : vector<8x8xf32> to vector<8xf32>
    %76 = vector.shape_cast %75 : vector<8xf32> to vector<8x1xf32>
    %77 = tpu.reciprocal %76 : vector<8x1xf32> -> vector<8x1xf32>
    %78 = vector.broadcast %77 : vector<8x1xf32> to vector<8x8xf32>
    %79 = arith.mulf %74, %78 : vector<8x8xf32>
    %80 = arith.truncf %79 : vector<8x8xf32> to vector<8x8xbf16>
    %cst_29 = arith.constant dense<0.000000e+00> : vector<8x8xf32>
    %81 = tpu.matmul %80, %67, %cst_29 {dimension_numbers = #tpu.dot_dimension_numbers<[1], [0], [0], [1], [0, 0, 1, 1], [], []>} : vector<8x8xbf16>, vector<8x8xbf16>, vector<8x8xf32> -> vector<8x8xf32>
    %82 = vector.extract_strided_slice %28 {offsets = [0, 24], sizes = [8, 8], strides = [1, 1]} : vector<8x32xbf16> to vector<8x8xbf16>
    %83 = vector.extract_strided_slice %29 {offsets = [0, 24], sizes = [8, 8], strides = [1, 1]} : vector<8x32xbf16> to vector<8x8xbf16>
    %84 = vector.extract_strided_slice %30 {offsets = [0, 24], sizes = [8, 8], strides = [1, 1]} : vector<8x32xbf16> to vector<8x8xbf16>
    %cst_30 = arith.constant dense<0.000000e+00> : vector<8x8xf32>
    %85 = tpu.matmul %82, %83, %cst_30 {dimension_numbers = #tpu.dot_dimension_numbers<[1], [1], [0], [0], [0, 0, 1, 0], [], []>} : vector<8x8xbf16>, vector<8x8xbf16>, vector<8x8xf32> -> vector<8x8xf32>
    %86 = arith.addf %85, %25 : vector<8x8xf32>
    %cst_31 = arith.constant dense<0xFF800000> : vector<8xf32>
    %87 = vector.multi_reduction <maximumf>, %86, %cst_31 [1] : vector<8x8xf32> to vector<8xf32>
    %88 = vector.shape_cast %87 : vector<8xf32> to vector<8x1xf32>
    %89 = vector.broadcast %88 : vector<8x1xf32> to vector<8x8xf32>
    %90 = arith.subf %86, %89 : vector<8x8xf32>
    %91 = math.exp %90 : vector<8x8xf32>
    %cst_32 = arith.constant dense<0.000000e+00> : vector<8xf32>
    %92 = vector.multi_reduction <add>, %91, %cst_32 [1] : vector<8x8xf32> to vector<8xf32>
    %93 = vector.shape_cast %92 : vector<8xf32> to vector<8x1xf32>
    %94 = tpu.reciprocal %93 : vector<8x1xf32> -> vector<8x1xf32>
    %95 = vector.broadcast %94 : vector<8x1xf32> to vector<8x8xf32>
    %96 = arith.mulf %91, %95 : vector<8x8xf32>
    %97 = arith.truncf %96 : vector<8x8xf32> to vector<8x8xbf16>
    %cst_33 = arith.constant dense<0.000000e+00> : vector<8x8xf32>
    %98 = tpu.matmul %97, %84, %cst_33 {dimension_numbers = #tpu.dot_dimension_numbers<[1], [0], [0], [1], [0, 0, 1, 1], [], []>} : vector<8x8xbf16>, vector<8x8xbf16>, vector<8x8xf32> -> vector<8x8xf32>
    %99 = tpu.concatenate %47, %64, %81, %98 in 1 : vector<8x8xf32>, vector<8x8xf32>, vector<8x8xf32>, vector<8x8xf32> -> vector<8x32xf32>
    %100 = arith.truncf %99 : vector<8x32xf32> to vector<8x32xbf16>
    %cst_34 = arith.constant dense<0.000000e+00> : vector<8x32xf32>
    %101 = tpu.matmul %100, %12, %cst_34 {dimension_numbers = #tpu.dot_dimension_numbers<[1], [0], [0], [1], [0, 0, 1, 1], [], []>} : vector<8x32xbf16>, vector<32x32xbf16>, vector<8x32xf32> -> vector<8x32xf32>
    %c0_35 = arith.constant 0 : index
    %c0_36 = arith.constant 0 : index
    %102 = vector.load %arg8[%c0_35, %c0_36] : memref<1x32xf32, #tpu.memory_space<vmem>>, vector<1x32xf32>
    %103 = vector.broadcast %102 : vector<1x32xf32> to vector<8x32xf32>
    %104 = arith.addf %101, %103 : vector<8x32xf32>
    %105 = arith.extf %1 : vector<8x32xbf16> to vector<8x32xf32>
    %106 = arith.addf %105, %104 : vector<8x32xf32>
    %c0_37 = arith.constant 0 : index
    %c0_38 = arith.constant 0 : index
    %107 = vector.load %arg9[%c0_37, %c0_38] : memref<1x32xf32, #tpu.memory_space<vmem>>, vector<1x32xf32>
    %c0_39 = arith.constant 0 : index
    %c0_40 = arith.constant 0 : index
    %108 = vector.load %arg10[%c0_39, %c0_40] : memref<1x32xf32, #tpu.memory_space<vmem>>, vector<1x32xf32>
    %cst_41 = arith.constant dense<0.000000e+00> : vector<8xf32>
    %109 = vector.multi_reduction <add>, %106, %cst_41 [1] : vector<8x32xf32> to vector<8xf32>
    %110 = vector.shape_cast %109 : vector<8xf32> to vector<8x1xf32>
    %cst_42 = arith.constant 3.200000e+01 : f32
    %111 = vector.broadcast %cst_42 : f32 to vector<8x1xf32>
    %112 = arith.divf %110, %111 : vector<8x1xf32>
    %113 = vector.broadcast %112 : vector<8x1xf32> to vector<8x32xf32>
    %114 = arith.subf %106, %113 : vector<8x32xf32>
    %115 = arith.mulf %114, %114 : vector<8x32xf32>
    %cst_43 = arith.constant dense<0.000000e+00> : vector<8xf32>
    %116 = vector.multi_reduction <add>, %115, %cst_43 [1] : vector<8x32xf32> to vector<8xf32>
    %117 = vector.shape_cast %116 : vector<8xf32> to vector<8x1xf32>
    %cst_44 = arith.constant 3.200000e+01 : f32
    %118 = vector.broadcast %cst_44 : f32 to vector<8x1xf32>
    %119 = arith.divf %117, %118 : vector<8x1xf32>
    %cst_45 = arith.constant 9.99999974E-6 : f32
    %120 = vector.broadcast %cst_45 : f32 to vector<8x1xf32>
    %121 = arith.addf %119, %120 : vector<8x1xf32>
    %122 = math.rsqrt %121 : vector<8x1xf32>
    %123 = vector.broadcast %122 : vector<8x1xf32> to vector<8x32xf32>
    %124 = arith.mulf %114, %123 : vector<8x32xf32>
    %125 = vector.broadcast %107 : vector<1x32xf32> to vector<8x32xf32>
    %126 = arith.mulf %124, %125 : vector<8x32xf32>
    %127 = vector.broadcast %108 : vector<1x32xf32> to vector<8x32xf32>
    %128 = arith.addf %126, %127 : vector<8x32xf32>
    %129 = arith.truncf %128 : vector<8x32xf32> to vector<8x32xbf16>
    %c0_46 = arith.constant 0 : index
    %c0_47 = arith.constant 0 : index
    %130 = vector.load %arg11[%c0_46, %c0_47] : memref<32x32xbf16, #tpu.memory_space<vmem>>, vector<32x32xbf16>
    %cst_48 = arith.constant dense<0.000000e+00> : vector<8x32xf32>
    %131 = tpu.matmul %129, %130, %cst_48 {dimension_numbers = #tpu.dot_dimension_numbers<[1], [0], [0], [1], [0, 0, 1, 1], [], []>} : vector<8x32xbf16>, vector<32x32xbf16>, vector<8x32xf32> -> vector<8x32xf32>
    %c0_49 = arith.constant 0 : index
    %c0_50 = arith.constant 0 : index
    %132 = vector.load %arg12[%c0_49, %c0_50] : memref<1x32xf32, #tpu.memory_space<vmem>>, vector<1x32xf32>
    %133 = vector.broadcast %132 : vector<1x32xf32> to vector<8x32xf32>
    %134 = arith.addf %131, %133 : vector<8x32xf32>
    %c0_51 = arith.constant 0 : index
    %c0_52 = arith.constant 0 : index
    %135 = vector.load %arg13[%c0_51, %c0_52] : memref<32x64xbf16, #tpu.memory_space<vmem>>, vector<32x64xbf16>
    %cst_53 = arith.constant dense<0.000000e+00> : vector<8x64xf32>
    %136 = tpu.matmul %3, %135, %cst_53 {dimension_numbers = #tpu.dot_dimension_numbers<[1], [0], [0], [1], [0, 0, 1, 1], [], []>} : vector<8x32xbf16>, vector<32x64xbf16>, vector<8x64xf32> -> vector<8x64xf32>
    %c0_54 = arith.constant 0 : index
    %c0_55 = arith.constant 0 : index
    %137 = vector.load %arg14[%c0_54, %c0_55] : memref<1x64xf32, #tpu.memory_space<vmem>>, vector<1x64xf32>
    %138 = vector.broadcast %137 : vector<1x64xf32> to vector<8x64xf32>
    %139 = arith.addf %136, %138 : vector<8x64xf32>
    %140 = vector.extract_strided_slice %139 {offsets = [0, 0], sizes = [8, 32], strides = [1, 1]} : vector<8x64xf32> to vector<8x32xf32>
    %141 = vector.extract_strided_slice %139 {offsets = [0, 32], sizes = [8, 32], strides = [1, 1]} : vector<8x64xf32> to vector<8x32xf32>
    %c0_56 = arith.constant 0 : index
    %c0_57 = arith.constant 0 : index
    %142 = vector.load %arg15[%c0_56, %c0_57] : memref<32x32xbf16, #tpu.memory_space<vmem>>, vector<32x32xbf16>
    %c0_58 = arith.constant 0 : index
    %c0_59 = arith.constant 0 : index
    %c0_60 = arith.constant 0 : index
    %143 = vector.load %arg4[%c0_58, %c0_59, %c0_60] : memref<1x1x8xf32, #tpu.memory_space<vmem>>, vector<1x1x8xf32>
    %144 = vector.shape_cast %143 : vector<1x1x8xf32> to vector<1x8xf32>
    %cst_61 = arith.constant 5.000000e-01 : f32
    %145 = vector.broadcast %cst_61 : f32 to vector<1x8xf32>
    %146 = arith.cmpf ogt, %144, %145 : vector<1x8xf32>
    %147 = vector.shape_cast %146 : vector<1x8xi1> to vector<1x8xi1>
    %148 = vector.broadcast %147 : vector<1x8xi1> to vector<8x8xi1>
    %cst_62 = arith.constant -1.000000e+30 : f32
    %cst_63 = arith.constant 0.000000e+00 : f32
    %149 = vector.broadcast %cst_62 : f32 to vector<8x8xf32>
    %150 = vector.broadcast %cst_63 : f32 to vector<8x8xf32>
    %151 = arith.select %148, %149, %150 : vector<8x8xi1>, vector<8x8xf32>
    %cst_64 = arith.constant 0.353553385 : f32
    %152 = vector.broadcast %cst_64 : f32 to vector<8x32xf32>
    %153 = arith.mulf %134, %152 : vector<8x32xf32>
    %154 = arith.truncf %153 : vector<8x32xf32> to vector<8x32xbf16>
    %155 = arith.truncf %140 : vector<8x32xf32> to vector<8x32xbf16>
    %156 = arith.truncf %141 : vector<8x32xf32> to vector<8x32xbf16>
    %157 = vector.extract_strided_slice %154 {offsets = [0, 0], sizes = [8, 8], strides = [1, 1]} : vector<8x32xbf16> to vector<8x8xbf16>
    %158 = vector.extract_strided_slice %155 {offsets = [0, 0], sizes = [8, 8], strides = [1, 1]} : vector<8x32xbf16> to vector<8x8xbf16>
    %159 = vector.extract_strided_slice %156 {offsets = [0, 0], sizes = [8, 8], strides = [1, 1]} : vector<8x32xbf16> to vector<8x8xbf16>
    %cst_65 = arith.constant dense<0.000000e+00> : vector<8x8xf32>
    %160 = tpu.matmul %157, %158, %cst_65 {dimension_numbers = #tpu.dot_dimension_numbers<[1], [1], [0], [0], [0, 0, 1, 0], [], []>} : vector<8x8xbf16>, vector<8x8xbf16>, vector<8x8xf32> -> vector<8x8xf32>
    %161 = arith.addf %160, %151 : vector<8x8xf32>
    %cst_66 = arith.constant dense<0xFF800000> : vector<8xf32>
    %162 = vector.multi_reduction <maximumf>, %161, %cst_66 [1] : vector<8x8xf32> to vector<8xf32>
    %163 = vector.shape_cast %162 : vector<8xf32> to vector<8x1xf32>
    %164 = vector.broadcast %163 : vector<8x1xf32> to vector<8x8xf32>
    %165 = arith.subf %161, %164 : vector<8x8xf32>
    %166 = math.exp %165 : vector<8x8xf32>
    %cst_67 = arith.constant dense<0.000000e+00> : vector<8xf32>
    %167 = vector.multi_reduction <add>, %166, %cst_67 [1] : vector<8x8xf32> to vector<8xf32>
    %168 = vector.shape_cast %167 : vector<8xf32> to vector<8x1xf32>
    %169 = tpu.reciprocal %168 : vector<8x1xf32> -> vector<8x1xf32>
    %170 = vector.broadcast %169 : vector<8x1xf32> to vector<8x8xf32>
    %171 = arith.mulf %166, %170 : vector<8x8xf32>
    %172 = arith.truncf %171 : vector<8x8xf32> to vector<8x8xbf16>
    %cst_68 = arith.constant dense<0.000000e+00> : vector<8x8xf32>
    %173 = tpu.matmul %172, %159, %cst_68 {dimension_numbers = #tpu.dot_dimension_numbers<[1], [0], [0], [1], [0, 0, 1, 1], [], []>} : vector<8x8xbf16>, vector<8x8xbf16>, vector<8x8xf32> -> vector<8x8xf32>
    %174 = vector.extract_strided_slice %154 {offsets = [0, 8], sizes = [8, 8], strides = [1, 1]} : vector<8x32xbf16> to vector<8x8xbf16>
    %175 = vector.extract_strided_slice %155 {offsets = [0, 8], sizes = [8, 8], strides = [1, 1]} : vector<8x32xbf16> to vector<8x8xbf16>
    %176 = vector.extract_strided_slice %156 {offsets = [0, 8], sizes = [8, 8], strides = [1, 1]} : vector<8x32xbf16> to vector<8x8xbf16>
    %cst_69 = arith.constant dense<0.000000e+00> : vector<8x8xf32>
    %177 = tpu.matmul %174, %175, %cst_69 {dimension_numbers = #tpu.dot_dimension_numbers<[1], [1], [0], [0], [0, 0, 1, 0], [], []>} : vector<8x8xbf16>, vector<8x8xbf16>, vector<8x8xf32> -> vector<8x8xf32>
    %178 = arith.addf %177, %151 : vector<8x8xf32>
    %cst_70 = arith.constant dense<0xFF800000> : vector<8xf32>
    %179 = vector.multi_reduction <maximumf>, %178, %cst_70 [1] : vector<8x8xf32> to vector<8xf32>
    %180 = vector.shape_cast %179 : vector<8xf32> to vector<8x1xf32>
    %181 = vector.broadcast %180 : vector<8x1xf32> to vector<8x8xf32>
    %182 = arith.subf %178, %181 : vector<8x8xf32>
    %183 = math.exp %182 : vector<8x8xf32>
    %cst_71 = arith.constant dense<0.000000e+00> : vector<8xf32>
    %184 = vector.multi_reduction <add>, %183, %cst_71 [1] : vector<8x8xf32> to vector<8xf32>
    %185 = vector.shape_cast %184 : vector<8xf32> to vector<8x1xf32>
    %186 = tpu.reciprocal %185 : vector<8x1xf32> -> vector<8x1xf32>
    %187 = vector.broadcast %186 : vector<8x1xf32> to vector<8x8xf32>
    %188 = arith.mulf %183, %187 : vector<8x8xf32>
    %189 = arith.truncf %188 : vector<8x8xf32> to vector<8x8xbf16>
    %cst_72 = arith.constant dense<0.000000e+00> : vector<8x8xf32>
    %190 = tpu.matmul %189, %176, %cst_72 {dimension_numbers = #tpu.dot_dimension_numbers<[1], [0], [0], [1], [0, 0, 1, 1], [], []>} : vector<8x8xbf16>, vector<8x8xbf16>, vector<8x8xf32> -> vector<8x8xf32>
    %191 = vector.extract_strided_slice %154 {offsets = [0, 16], sizes = [8, 8], strides = [1, 1]} : vector<8x32xbf16> to vector<8x8xbf16>
    %192 = vector.extract_strided_slice %155 {offsets = [0, 16], sizes = [8, 8], strides = [1, 1]} : vector<8x32xbf16> to vector<8x8xbf16>
    %193 = vector.extract_strided_slice %156 {offsets = [0, 16], sizes = [8, 8], strides = [1, 1]} : vector<8x32xbf16> to vector<8x8xbf16>
    %cst_73 = arith.constant dense<0.000000e+00> : vector<8x8xf32>
    %194 = tpu.matmul %191, %192, %cst_73 {dimension_numbers = #tpu.dot_dimension_numbers<[1], [1], [0], [0], [0, 0, 1, 0], [], []>} : vector<8x8xbf16>, vector<8x8xbf16>, vector<8x8xf32> -> vector<8x8xf32>
    %195 = arith.addf %194, %151 : vector<8x8xf32>
    %cst_74 = arith.constant dense<0xFF800000> : vector<8xf32>
    %196 = vector.multi_reduction <maximumf>, %195, %cst_74 [1] : vector<8x8xf32> to vector<8xf32>
    %197 = vector.shape_cast %196 : vector<8xf32> to vector<8x1xf32>
    %198 = vector.broadcast %197 : vector<8x1xf32> to vector<8x8xf32>
    %199 = arith.subf %195, %198 : vector<8x8xf32>
    %200 = math.exp %199 : vector<8x8xf32>
    %cst_75 = arith.constant dense<0.000000e+00> : vector<8xf32>
    %201 = vector.multi_reduction <add>, %200, %cst_75 [1] : vector<8x8xf32> to vector<8xf32>
    %202 = vector.shape_cast %201 : vector<8xf32> to vector<8x1xf32>
    %203 = tpu.reciprocal %202 : vector<8x1xf32> -> vector<8x1xf32>
    %204 = vector.broadcast %203 : vector<8x1xf32> to vector<8x8xf32>
    %205 = arith.mulf %200, %204 : vector<8x8xf32>
    %206 = arith.truncf %205 : vector<8x8xf32> to vector<8x8xbf16>
    %cst_76 = arith.constant dense<0.000000e+00> : vector<8x8xf32>
    %207 = tpu.matmul %206, %193, %cst_76 {dimension_numbers = #tpu.dot_dimension_numbers<[1], [0], [0], [1], [0, 0, 1, 1], [], []>} : vector<8x8xbf16>, vector<8x8xbf16>, vector<8x8xf32> -> vector<8x8xf32>
    %208 = vector.extract_strided_slice %154 {offsets = [0, 24], sizes = [8, 8], strides = [1, 1]} : vector<8x32xbf16> to vector<8x8xbf16>
    %209 = vector.extract_strided_slice %155 {offsets = [0, 24], sizes = [8, 8], strides = [1, 1]} : vector<8x32xbf16> to vector<8x8xbf16>
    %210 = vector.extract_strided_slice %156 {offsets = [0, 24], sizes = [8, 8], strides = [1, 1]} : vector<8x32xbf16> to vector<8x8xbf16>
    %cst_77 = arith.constant dense<0.000000e+00> : vector<8x8xf32>
    %211 = tpu.matmul %208, %209, %cst_77 {dimension_numbers = #tpu.dot_dimension_numbers<[1], [1], [0], [0], [0, 0, 1, 0], [], []>} : vector<8x8xbf16>, vector<8x8xbf16>, vector<8x8xf32> -> vector<8x8xf32>
    %212 = arith.addf %211, %151 : vector<8x8xf32>
    %cst_78 = arith.constant dense<0xFF800000> : vector<8xf32>
    %213 = vector.multi_reduction <maximumf>, %212, %cst_78 [1] : vector<8x8xf32> to vector<8xf32>
    %214 = vector.shape_cast %213 : vector<8xf32> to vector<8x1xf32>
    %215 = vector.broadcast %214 : vector<8x1xf32> to vector<8x8xf32>
    %216 = arith.subf %212, %215 : vector<8x8xf32>
    %217 = math.exp %216 : vector<8x8xf32>
    %cst_79 = arith.constant dense<0.000000e+00> : vector<8xf32>
    %218 = vector.multi_reduction <add>, %217, %cst_79 [1] : vector<8x8xf32> to vector<8xf32>
    %219 = vector.shape_cast %218 : vector<8xf32> to vector<8x1xf32>
    %220 = tpu.reciprocal %219 : vector<8x1xf32> -> vector<8x1xf32>
    %221 = vector.broadcast %220 : vector<8x1xf32> to vector<8x8xf32>
    %222 = arith.mulf %217, %221 : vector<8x8xf32>
    %223 = arith.truncf %222 : vector<8x8xf32> to vector<8x8xbf16>
    %cst_80 = arith.constant dense<0.000000e+00> : vector<8x8xf32>
    %224 = tpu.matmul %223, %210, %cst_80 {dimension_numbers = #tpu.dot_dimension_numbers<[1], [0], [0], [1], [0, 0, 1, 1], [], []>} : vector<8x8xbf16>, vector<8x8xbf16>, vector<8x8xf32> -> vector<8x8xf32>
    %225 = tpu.concatenate %173, %190, %207, %224 in 1 : vector<8x8xf32>, vector<8x8xf32>, vector<8x8xf32>, vector<8x8xf32> -> vector<8x32xf32>
    %226 = arith.truncf %225 : vector<8x32xf32> to vector<8x32xbf16>
    %cst_81 = arith.constant dense<0.000000e+00> : vector<8x32xf32>
    %227 = tpu.matmul %226, %142, %cst_81 {dimension_numbers = #tpu.dot_dimension_numbers<[1], [0], [0], [1], [0, 0, 1, 1], [], []>} : vector<8x32xbf16>, vector<32x32xbf16>, vector<8x32xf32> -> vector<8x32xf32>
    %c0_82 = arith.constant 0 : index
    %c0_83 = arith.constant 0 : index
    %228 = vector.load %arg16[%c0_82, %c0_83] : memref<1x32xf32, #tpu.memory_space<vmem>>, vector<1x32xf32>
    %229 = vector.broadcast %228 : vector<1x32xf32> to vector<8x32xf32>
    %230 = arith.addf %227, %229 : vector<8x32xf32>
    %231 = arith.addf %128, %230 : vector<8x32xf32>
    %c0_84 = arith.constant 0 : index
    %c0_85 = arith.constant 0 : index
    %232 = vector.load %arg17[%c0_84, %c0_85] : memref<1x32xf32, #tpu.memory_space<vmem>>, vector<1x32xf32>
    %c0_86 = arith.constant 0 : index
    %c0_87 = arith.constant 0 : index
    %233 = vector.load %arg18[%c0_86, %c0_87] : memref<1x32xf32, #tpu.memory_space<vmem>>, vector<1x32xf32>
    %cst_88 = arith.constant dense<0.000000e+00> : vector<8xf32>
    %234 = vector.multi_reduction <add>, %231, %cst_88 [1] : vector<8x32xf32> to vector<8xf32>
    %235 = vector.shape_cast %234 : vector<8xf32> to vector<8x1xf32>
    %cst_89 = arith.constant 3.200000e+01 : f32
    %236 = vector.broadcast %cst_89 : f32 to vector<8x1xf32>
    %237 = arith.divf %235, %236 : vector<8x1xf32>
    %238 = vector.broadcast %237 : vector<8x1xf32> to vector<8x32xf32>
    %239 = arith.subf %231, %238 : vector<8x32xf32>
    %240 = arith.mulf %239, %239 : vector<8x32xf32>
    %cst_90 = arith.constant dense<0.000000e+00> : vector<8xf32>
    %241 = vector.multi_reduction <add>, %240, %cst_90 [1] : vector<8x32xf32> to vector<8xf32>
    %242 = vector.shape_cast %241 : vector<8xf32> to vector<8x1xf32>
    %cst_91 = arith.constant 3.200000e+01 : f32
    %243 = vector.broadcast %cst_91 : f32 to vector<8x1xf32>
    %244 = arith.divf %242, %243 : vector<8x1xf32>
    %cst_92 = arith.constant 9.99999974E-6 : f32
    %245 = vector.broadcast %cst_92 : f32 to vector<8x1xf32>
    %246 = arith.addf %244, %245 : vector<8x1xf32>
    %247 = math.rsqrt %246 : vector<8x1xf32>
    %248 = vector.broadcast %247 : vector<8x1xf32> to vector<8x32xf32>
    %249 = arith.mulf %239, %248 : vector<8x32xf32>
    %250 = vector.broadcast %232 : vector<1x32xf32> to vector<8x32xf32>
    %251 = arith.mulf %249, %250 : vector<8x32xf32>
    %252 = vector.broadcast %233 : vector<1x32xf32> to vector<8x32xf32>
    %253 = arith.addf %251, %252 : vector<8x32xf32>
    %254 = arith.truncf %253 : vector<8x32xf32> to vector<8x32xbf16>
    %c0_93 = arith.constant 0 : index
    %c0_94 = arith.constant 0 : index
    %255 = vector.load %arg19[%c0_93, %c0_94] : memref<32x64xbf16, #tpu.memory_space<vmem>>, vector<32x64xbf16>
    %cst_95 = arith.constant dense<0.000000e+00> : vector<8x64xf32>
    %256 = tpu.matmul %254, %255, %cst_95 {dimension_numbers = #tpu.dot_dimension_numbers<[1], [0], [0], [1], [0, 0, 1, 1], [], []>} : vector<8x32xbf16>, vector<32x64xbf16>, vector<8x64xf32> -> vector<8x64xf32>
    %c0_96 = arith.constant 0 : index
    %c0_97 = arith.constant 0 : index
    %257 = vector.load %arg20[%c0_96, %c0_97] : memref<1x64xf32, #tpu.memory_space<vmem>>, vector<1x64xf32>
    %258 = vector.broadcast %257 : vector<1x64xf32> to vector<8x64xf32>
    %259 = arith.addf %256, %258 : vector<8x64xf32>
    %cst_98 = arith.constant 0.000000e+00 : f32
    %260 = vector.broadcast %cst_98 : f32 to vector<8x64xf32>
    %261 = arith.maximumf %259, %260 : vector<8x64xf32>
    %262 = arith.truncf %261 : vector<8x64xf32> to vector<8x64xbf16>
    %c0_99 = arith.constant 0 : index
    %c0_100 = arith.constant 0 : index
    %263 = vector.load %arg21[%c0_99, %c0_100] : memref<64x32xbf16, #tpu.memory_space<vmem>>, vector<64x32xbf16>
    %cst_101 = arith.constant dense<0.000000e+00> : vector<8x32xf32>
    %264 = tpu.matmul %262, %263, %cst_101 {dimension_numbers = #tpu.dot_dimension_numbers<[1], [0], [0], [1], [0, 0, 1, 1], [], []>} : vector<8x64xbf16>, vector<64x32xbf16>, vector<8x32xf32> -> vector<8x32xf32>
    %c0_102 = arith.constant 0 : index
    %c0_103 = arith.constant 0 : index
    %265 = vector.load %arg22[%c0_102, %c0_103] : memref<1x32xf32, #tpu.memory_space<vmem>>, vector<1x32xf32>
    %266 = vector.broadcast %265 : vector<1x32xf32> to vector<8x32xf32>
    %267 = arith.addf %264, %266 : vector<8x32xf32>
    %268 = arith.addf %253, %267 : vector<8x32xf32>
    %c0_104 = arith.constant 0 : index
    %c0_105 = arith.constant 0 : index
    %269 = vector.load %arg23[%c0_104, %c0_105] : memref<1x32xf32, #tpu.memory_space<vmem>>, vector<1x32xf32>
    %c0_106 = arith.constant 0 : index
    %c0_107 = arith.constant 0 : index
    %270 = vector.load %arg24[%c0_106, %c0_107] : memref<1x32xf32, #tpu.memory_space<vmem>>, vector<1x32xf32>
    %cst_108 = arith.constant dense<0.000000e+00> : vector<8xf32>
    %271 = vector.multi_reduction <add>, %268, %cst_108 [1] : vector<8x32xf32> to vector<8xf32>
    %272 = vector.shape_cast %271 : vector<8xf32> to vector<8x1xf32>
    %cst_109 = arith.constant 3.200000e+01 : f32
    %273 = vector.broadcast %cst_109 : f32 to vector<8x1xf32>
    %274 = arith.divf %272, %273 : vector<8x1xf32>
    %275 = vector.broadcast %274 : vector<8x1xf32> to vector<8x32xf32>
    %276 = arith.subf %268, %275 : vector<8x32xf32>
    %277 = arith.mulf %276, %276 : vector<8x32xf32>
    %cst_110 = arith.constant dense<0.000000e+00> : vector<8xf32>
    %278 = vector.multi_reduction <add>, %277, %cst_110 [1] : vector<8x32xf32> to vector<8xf32>
    %279 = vector.shape_cast %278 : vector<8xf32> to vector<8x1xf32>
    %cst_111 = arith.constant 3.200000e+01 : f32
    %280 = vector.broadcast %cst_111 : f32 to vector<8x1xf32>
    %281 = arith.divf %279, %280 : vector<8x1xf32>
    %cst_112 = arith.constant 9.99999974E-6 : f32
    %282 = vector.broadcast %cst_112 : f32 to vector<8x1xf32>
    %283 = arith.addf %281, %282 : vector<8x1xf32>
    %284 = math.rsqrt %283 : vector<8x1xf32>
    %285 = vector.broadcast %284 : vector<8x1xf32> to vector<8x32xf32>
    %286 = arith.mulf %276, %285 : vector<8x32xf32>
    %287 = vector.broadcast %269 : vector<1x32xf32> to vector<8x32xf32>
    %288 = arith.mulf %286, %287 : vector<8x32xf32>
    %289 = vector.broadcast %270 : vector<1x32xf32> to vector<8x32xf32>
    %290 = arith.addf %288, %289 : vector<8x32xf32>
    %291 = arith.truncf %290 : vector<8x32xf32> to vector<8x32xbf16>
    %c0_113 = arith.constant 0 : index
    %c0_114 = arith.constant 0 : index
    %c0_115 = arith.constant 0 : index
    %292 = vector.load %arg25[%c0_113, %c0_114, %c0_115] : memref<1x8x32xbf16, #tpu.memory_space<vmem>>, vector<1x8x32xbf16>
    %293 = vector.shape_cast %292 : vector<1x8x32xbf16> to vector<8x32xbf16>
    %294 = vector.shape_cast %291 : vector<8x32xbf16> to vector<1x8x32xbf16>
    tpu.vector_store %arg25[%c0_113, %c0_114, %c0_115], %294 {strides = array<i32>} : memref<1x8x32xbf16, #tpu.memory_space<vmem>>, vector<1x8x32xbf16>,
    return
  }
  func.func @transform_0(%arg0: i32) -> (i32, i32, i32) {
    %c0_i32 = arith.constant 0 : i32
    %c0_i32_0 = arith.constant 0 : i32
    %c0_i32_1 = arith.constant 0 : i32
    return %arg0, %c0_i32, %c0_i32_0 : i32, i32, i32
  }
  func.func @transform_1(%arg0: i32) -> (i32, i32, i32) {
    %c0_i32 = arith.constant 0 : i32
    %c0_i32_0 = arith.constant 0 : i32
    %c0_i32_1 = arith.constant 0 : i32
    return %arg0, %c0_i32, %c0_i32_0 : i32, i32, i32
  }
  func.func @transform_2(%arg0: i32) -> (i32, i32, i32) {
    %c0_i32 = arith.constant 0 : i32
    %c0_i32_0 = arith.constant 0 : i32
    %c0_i32_1 = arith.constant 0 : i32
    return %arg0, %c0_i32, %c0_i32_0 : i32, i32, i32
  }
  func.func @transform_3(%arg0: i32) -> (i32, i32, i32) {
    %c0_i32 = arith.constant 0 : i32
    %c0_i32_0 = arith.constant 0 : i32
    %c0_i32_1 = arith.constant 0 : i32
    return %arg0, %c0_i32, %c0_i32_0 : i32, i32, i32
  }
  func.func @transform_4(%arg0: i32) -> (i32, i32) {
    %c0_i32 = arith.constant 0 : i32
    %c0_i32_0 = arith.constant 0 : i32
    %c0_i32_1 = arith.constant 0 : i32
    return %c0_i32, %c0_i32_0 : i32, i32
  }
  func.func @transform_5(%arg0: i32) -> (i32, i32) {
    %c0_i32 = arith.constant 0 : i32
    %c0_i32_0 = arith.constant 0 : i32
    %c0_i32_1 = arith.constant 0 : i32
    return %c0_i32, %c0_i32_0 : i32, i32
  }
  func.func @transform_6(%arg0: i32) -> (i32, i32) {
    %c0_i32 = arith.constant 0 : i32
    %c0_i32_0 = arith.constant 0 : i32
    %c0_i32_1 = arith.constant 0 : i32
    return %c0_i32, %c0_i32_0 : i32, i32
  }
  func.func @transform_7(%arg0: i32) -> (i32, i32) {
    %c0_i32 = arith.constant 0 : i32
    %c0_i32_0 = arith.constant 0 : i32
    %c0_i32_1 = arith.constant 0 : i32
    return %c0_i32, %c0_i32_0 : i32, i32
  }
  func.func @transform_8(%arg0: i32) -> (i32, i32) {
    %c0_i32 = arith.constant 0 : i32
    %c0_i32_0 = arith.constant 0 : i32
    %c0_i32_1 = arith.constant 0 : i32
    return %c0_i32, %c0_i32_0 : i32, i32
  }
  func.func @transform_9(%arg0: i32) -> (i32, i32) {
    %c0_i32 = arith.constant 0 : i32
    %c0_i32_0 = arith.constant 0 : i32
    %c0_i32_1 = arith.constant 0 : i32
    return %c0_i32, %c0_i32_0 : i32, i32
  }
  func.func @transform_10(%arg0: i32) -> (i32, i32) {
    %c0_i32 = arith.constant 0 : i32
    %c0_i32_0 = arith.constant 0 : i32
    %c0_i32_1 = arith.constant 0 : i32
    return %c0_i32, %c0_i32_0 : i32, i32
  }
  func.func @transform_11(%arg0: i32) -> (i32, i32) {
    %c0_i32 = arith.constant 0 : i32
    %c0_i32_0 = arith.constant 0 : i32
    %c0_i32_1 = arith.constant 0 : i32
    return %c0_i32, %c0_i32_0 : i32, i32
  }
  func.func @transform_12(%arg0: i32) -> (i32, i32) {
    %c0_i32 = arith.constant 0 : i32
    %c0_i32_0 = arith.constant 0 : i32
    %c0_i32_1 = arith.constant 0 : i32
    return %c0_i32, %c0_i32_0 : i32, i32
  }
  func.func @transform_13(%arg0: i32) -> (i32, i32) {
    %c0_i32 = arith.constant 0 : i32
    %c0_i32_0 = arith.constant 0 : i32
    %c0_i32_1 = arith.constant 0 : i32
    return %c0_i32, %c0_i32_0 : i32, i32
  }
  func.func @transform_14(%arg0: i32) -> (i32, i32) {
    %c0_i32 = arith.constant 0 : i32
    %c0_i32_0 = arith.constant 0 : i32
    %c0_i32_1 = arith.constant 0 : i32
    return %c0_i32, %c0_i32_0 : i32, i32
  }
  func.func @transform_15(%arg0: i32) -> (i32, i32) {
    %c0_i32 = arith.constant 0 : i32
    %c0_i32_0 = arith.constant 0 : i32
    %c0_i32_1 = arith.constant 0 : i32
    return %c0_i32, %c0_i32_0 : i32, i32
  }
  func.func @transform_16(%arg0: i32) -> (i32, i32) {
    %c0_i32 = arith.constant 0 : i32
    %c0_i32_0 = arith.constant 0 : i32
    %c0_i32_1 = arith.constant 0 : i32
    return %c0_i32, %c0_i32_0 : i32, i32
  }
  func.func @transform_17(%arg0: i32) -> (i32, i32) {
    %c0_i32 = arith.constant 0 : i32
    %c0_i32_0 = arith.constant 0 : i32
    %c0_i32_1 = arith.constant 0 : i32
    return %c0_i32, %c0_i32_0 : i32, i32
  }
  func.func @transform_18(%arg0: i32) -> (i32, i32) {
    %c0_i32 = arith.constant 0 : i32
    %c0_i32_0 = arith.constant 0 : i32
    %c0_i32_1 = arith.constant 0 : i32
    return %c0_i32, %c0_i32_0 : i32, i32
  }
  func.func @transform_19(%arg0: i32) -> (i32, i32) {
    %c0_i32 = arith.constant 0 : i32
    %c0_i32_0 = arith.constant 0 : i32
    %c0_i32_1 = arith.constant 0 : i32
    return %c0_i32, %c0_i32_0 : i32, i32
  }
  func.func @transform_20(%arg0: i32) -> (i32, i32) {
    %c0_i32 = arith.constant 0 : i32
    %c0_i32_0 = arith.constant 0 : i32
    %c0_i32_1 = arith.constant 0 : i32
    return %c0_i32, %c0_i32_0 : i32, i32
  }
  func.func @transform_21(%arg0: i32) -> (i32, i32) {
    %c0_i32 = arith.constant 0 : i32
    %c0_i32_0 = arith.constant 0 : i32
    %c0_i32_1 = arith.constant 0 : i32
    return %c0_i32, %c0_i32_0 : i32, i32
  }
  func.func @transform_22(%arg0: i32) -> (i32, i32) {
    %c0_i32 = arith.constant 0 : i32
    %c0_i32_0 = arith.constant 0 : i32
    %c0_i32_1 = arith.constant 0 : i32
    return %c0_i32, %c0_i32_0 : i32, i32
  }
  func.func @transform_23(%arg0: i32) -> (i32, i32) {
    %c0_i32 = arith.constant 0 : i32
    %c0_i32_0 = arith.constant 0 : i32
    %c0_i32_1 = arith.constant 0 : i32
    return %c0_i32, %c0_i32_0 : i32, i32
  }
  func.func @transform_24(%arg0: i32) -> (i32, i32, i32) {
    %c0_i32 = arith.constant 0 : i32
    %c0_i32_0 = arith.constant 0 : i32
    %c0_i32_1 = arith.constant 0 : i32
    return %arg0, %c0_i32, %c0_i32_0 : i32, i32, i32
  }
}

module attributes {stable_mosaic.version = 11 : i64} {
  func.func @_final_kernel(%arg0: i32, %arg1: memref<16x32xbf16, #tpu.memory_space<vmem>>, %arg2: memref<1x32xf32, #tpu.memory_space<vmem>>, %arg3: memref<1x32xf32, #tpu.memory_space<vmem>>, %arg4: memref<32x128xbf16, #tpu.memory_space<vmem>>, %arg5: memref<1x128xf32, #tpu.memory_space<vmem>>, %arg6: memref<16x128xf32, #tpu.memory_space<vmem>>) attributes {dimension_semantics = [#tpu.dimension_semantics<parallel>], iteration_bounds = array<i64: 1>, scalar_prefetch = 0 : i64, scratch_operands = 0 : i64, tpu.core_type = #tpu.core_type<tc>, window_params = [{pipeline_mode = #tpu.pipeline_mode<synchronous>, transform_indices = @transform_0, window_bounds = array<i64: 16, 32>}, {pipeline_mode = #tpu.pipeline_mode<synchronous>, transform_indices = @transform_1, window_bounds = array<i64: 1, 32>}, {pipeline_mode = #tpu.pipeline_mode<synchronous>, transform_indices = @transform_2, window_bounds = array<i64: 1, 32>}, {transform_indices = @transform_3, window_bounds = array<i64: 32, 128>}, {transform_indices = @transform_4, window_bounds = array<i64: 1, 128>}, {transform_indices = @transform_5, window_bounds = array<i64: 16, 128>}]} {
    %c0 = arith.constant 0 : index
    %c0_0 = arith.constant 0 : index
    %0 = vector.load %arg1[%c0, %c0_0] : memref<16x32xbf16, #tpu.memory_space<vmem>>, vector<16x32xbf16>
    %1 = arith.extf %0 : vector<16x32xbf16> to vector<16x32xf32>
    %c0_1 = arith.constant 0 : index
    %c0_2 = arith.constant 0 : index
    %2 = vector.load %arg2[%c0_1, %c0_2] : memref<1x32xf32, #tpu.memory_space<vmem>>, vector<1x32xf32>
    %c0_3 = arith.constant 0 : index
    %c0_4 = arith.constant 0 : index
    %3 = vector.load %arg3[%c0_3, %c0_4] : memref<1x32xf32, #tpu.memory_space<vmem>>, vector<1x32xf32>
    %cst = arith.constant dense<0.000000e+00> : vector<16xf32>
    %4 = vector.multi_reduction <add>, %1, %cst [1] : vector<16x32xf32> to vector<16xf32>
    %5 = vector.shape_cast %4 : vector<16xf32> to vector<16x1xf32>
    %cst_5 = arith.constant 3.200000e+01 : f32
    %6 = vector.broadcast %cst_5 : f32 to vector<16x1xf32>
    %7 = arith.divf %5, %6 : vector<16x1xf32>
    %8 = vector.broadcast %7 : vector<16x1xf32> to vector<16x32xf32>
    %9 = arith.subf %1, %8 : vector<16x32xf32>
    %10 = arith.mulf %9, %9 : vector<16x32xf32>
    %cst_6 = arith.constant dense<0.000000e+00> : vector<16xf32>
    %11 = vector.multi_reduction <add>, %10, %cst_6 [1] : vector<16x32xf32> to vector<16xf32>
    %12 = vector.shape_cast %11 : vector<16xf32> to vector<16x1xf32>
    %cst_7 = arith.constant 3.200000e+01 : f32
    %13 = vector.broadcast %cst_7 : f32 to vector<16x1xf32>
    %14 = arith.divf %12, %13 : vector<16x1xf32>
    %cst_8 = arith.constant 9.99999974E-6 : f32
    %15 = vector.broadcast %cst_8 : f32 to vector<16x1xf32>
    %16 = arith.addf %14, %15 : vector<16x1xf32>
    %17 = math.rsqrt %16 : vector<16x1xf32>
    %18 = vector.broadcast %17 : vector<16x1xf32> to vector<16x32xf32>
    %19 = arith.mulf %9, %18 : vector<16x32xf32>
    %20 = vector.broadcast %2 : vector<1x32xf32> to vector<16x32xf32>
    %21 = arith.mulf %19, %20 : vector<16x32xf32>
    %22 = vector.broadcast %3 : vector<1x32xf32> to vector<16x32xf32>
    %23 = arith.addf %21, %22 : vector<16x32xf32>
    %24 = arith.truncf %23 : vector<16x32xf32> to vector<16x32xbf16>
    %c0_9 = arith.constant 0 : index
    %c0_10 = arith.constant 0 : index
    %25 = vector.load %arg4[%c0_9, %c0_10] : memref<32x128xbf16, #tpu.memory_space<vmem>>, vector<32x128xbf16>
    %cst_11 = arith.constant dense<0.000000e+00> : vector<16x128xf32>
    %26 = tpu.matmul %24, %25, %cst_11 {dimension_numbers = #tpu.dot_dimension_numbers<[1], [0], [0], [1], [0, 0, 1, 1], [], []>} : vector<16x32xbf16>, vector<32x128xbf16>, vector<16x128xf32> -> vector<16x128xf32>
    %c0_12 = arith.constant 0 : index
    %c0_13 = arith.constant 0 : index
    %27 = vector.load %arg5[%c0_12, %c0_13] : memref<1x128xf32, #tpu.memory_space<vmem>>, vector<1x128xf32>
    %28 = vector.broadcast %27 : vector<1x128xf32> to vector<16x128xf32>
    %29 = arith.addf %26, %28 : vector<16x128xf32>
    %c0_14 = arith.constant 0 : index
    %c0_15 = arith.constant 0 : index
    %30 = vector.load %arg6[%c0_14, %c0_15] : memref<16x128xf32, #tpu.memory_space<vmem>>, vector<16x128xf32>
    tpu.vector_store %arg6[%c0_14, %c0_15], %29 {strides = array<i32>} : memref<16x128xf32, #tpu.memory_space<vmem>>, vector<16x128xf32>,
    return
  }
  func.func @transform_0(%arg0: i32) -> (i32, i32) {
    %c0_i32 = arith.constant 0 : i32
    %c0_i32_0 = arith.constant 0 : i32
    %c0_i32_1 = arith.constant 0 : i32
    return %c0_i32, %c0_i32_0 : i32, i32
  }
  func.func @transform_1(%arg0: i32) -> (i32, i32) {
    %c0_i32 = arith.constant 0 : i32
    %c0_i32_0 = arith.constant 0 : i32
    %c0_i32_1 = arith.constant 0 : i32
    return %c0_i32, %c0_i32_0 : i32, i32
  }
  func.func @transform_2(%arg0: i32) -> (i32, i32) {
    %c0_i32 = arith.constant 0 : i32
    %c0_i32_0 = arith.constant 0 : i32
    %c0_i32_1 = arith.constant 0 : i32
    return %c0_i32, %c0_i32_0 : i32, i32
  }
  func.func @transform_3(%arg0: i32) -> (i32, i32) {
    %c0_i32 = arith.constant 0 : i32
    %c0_i32_0 = arith.constant 0 : i32
    return %c0_i32, %arg0 : i32, i32
  }
  func.func @transform_4(%arg0: i32) -> (i32, i32) {
    %c0_i32 = arith.constant 0 : i32
    %c0_i32_0 = arith.constant 0 : i32
    return %c0_i32, %arg0 : i32, i32
  }
  func.func @transform_5(%arg0: i32) -> (i32, i32) {
    %c0_i32 = arith.constant 0 : i32
    %c0_i32_0 = arith.constant 0 : i32
    return %c0_i32, %arg0 : i32, i32
  }
}

</mosaic_0001>

<bundles_post_ra>
// kernel: transformer_forward.8
= control target key start
LH: loop header
LB: loop body
LE: loop exit
PB: predicated region body
PF: predicated region fallthrough
CT: control target
= control target key end

     0   :  { %s304_s12 = smov 0   ;;  %s327_s0 = inlined_call_operand.vmem [shape: bf16[2,8,32], index: 0, kind: input, shape index: {}]   ;;  %s328_s1 = inlined_call_operand.vmem [shape: f32[1,32], index: 1, kind: input, shape index: {}]   ;;  %s329_s2 = inlined_call_operand.vmem [shape: f32[1,32], index: 2, kind: input, shape index: {}]   ;;  %s330_s3 = inlined_call_operand.vmem [shape: bf16[2,8,32], index: 3, kind: output, shape index: {}]  }
   0x1 LB: > { %s255_s13 = sadd.s32 4294967295, %s282_s12   ;;  %p259_p0 = scmp.ge.s32.totalorder %s282_s12, 1  ;;  %s282_s12 = sphi %s304_s12, %s13_s12  }
   0x2   : > { %p136_p1 = scmp.lt.s32.totalorder %s282_s12, 3 }
   0x4   : > { %p137_p2 = pnand %p259_p0, %p136_p1 }
   0x5   : > { %p158_p3 = scmp.lt.s32.totalorder (!%p137_p2), %s255_s13, 1  ;;  %vm170_vm0 = vcmask (!%p137_p2), 261120   ;;  %v262_v12 = vld [vmem:[%s328_s1] ss:$0 sm:$0xff] (!%p137_p2)  ;;  %vm200_vm1 = vcmask (!%p137_p2), 257024  }
   0x6   : > { %140 = sbr.rel (%p137_p2) target bundleno = 335 (0x14f), region = 32  ;;  %v263_v14 = vld [vmem:[%s329_s2] ss:$0 sm:$0xff] (!%p137_p2) }
   0xd   : > { %s332_s13 = smov (!%p158_p3, %s255_s13), 1 }
   0xe   : > { %s260_s14 = sshll.u32 %s332_s13, 2 }
   0xf   : > { %s161_s17 = scalar_lea.vmem %s327_s0, %s260_s14  ;;  %s165_s24 = scalar_lea.vmem %s330_s3, %s260_s14 }
  0x10   : > { %v166_v0 = vld [vmem:[%s161_s17] sm:$0xf] }
  0x11   : > { %v167_v1 = vunpack.c.l.bf16 %v166_v0 }
  0x13   : > { %v171_v2 = vsel %vm170_vm0, %v167_v1, 0.0 }
  0x14   : > { %172 = vadd.xlane.f32.xlu0 %v171_v2 }
  0xa1   : > { %v173_v3 = vpop.xlane.xlu0 %172 }
  0xa2   : > { %v175_v4 = vmul.f32 0.03125, %v173_v3 }
  0xa4   : > { %v176_v5 = vsub.f32 %v167_v1, %v175_v4 }
  0xa6   : > { %v177_v6 = vmul.f32 %v176_v5, %v176_v5 }
  0xa8   : > { %v178_v7 = vsel %vm170_vm0, %v177_v6, 0.0 }
  0xa9   : > { %179 = vadd.xlane.f32.xlu0 %v178_v7 }
 0x136   : > { %v180_v8 = vpop.xlane.xlu0 %179 }
 0x137   : > { %v181_v9 = vmul.f32 0.03125, %v180_v8 }
 0x139   : > { %v182_v10 = vadd.f32 1e-05, %v181_v9 }
 0x13b   : > { %274 = vrsqrt.f32 %v182_v10 }
 0x145   : > { %v275_v11 = vpop.eup %274 }
 0x146   : > { %v184_v13 = vmul.f32 %v275_v11, %v176_v5 }
 0x148   : > { %v191_v15 = vmul.f32 %v262_v12, %v184_v13 }
 0x14a   : > { %v198_v16 = vadd.f32 %v263_v14, %v191_v15 }
 0x14c   : > { %v199_v17 = vpack.c.bf16 %v198_v16, %v198_v16 }
 0x14e   : > { %201 = vst.msk [vmem:[%s165_s24] sm:$0xf] %vm200_vm1, %v199_v17 }
 0x14f PF: > { %s13_s12 = sadd.s32 1, %s282_s12  }
 0x150   : > { %p10_p4 = scmp.ge.s32.totalorder %s13_s12, 4  }
 0x152   :  { %12 = sbr.rel (!%p10_p4) target bundleno = 1 (0x1), region = 62 }

// kernel: transformer_forward.6
= control target key start
LH: loop header
LB: loop body
LE: loop exit
PB: predicated region body
PF: predicated region fallthrough
CT: control target
= control target key end

     0   :  { %s1671_s29 = smov 0   ;;  %s1842_s0 = inlined_call_operand.vmem [shape: bf16[2,8,32], index: 0, kind: input, shape index: {}, may-alias: {0,14}]   ;;  %s1843_s1 = inlined_call_operand.vmem [shape: f32[2,1,8], index: 1, kind: input, shape index: {}]   ;;  %s1844_s2 = inlined_call_operand.vmem [shape: bf16[32,96], index: 2, kind: input, shape index: {}]   ;;  %s1845_s3 = inlined_call_operand.vmem [shape: f32[1,96], index: 3, kind: input, shape index: {}]   ;;  %s1846_s4 = inlined_call_operand.vmem [shape: bf16[32,32], index: 4, kind: input, shape index: {}]   ;;  %s1847_s5 = inlined_call_operand.vmem [shape: f32[1,32], index: 5, kind: input, shape index: {}]   ;;  %s1848_s6 = inlined_call_operand.vmem [shape: f32[1,32], index: 6, kind: input, shape index: {}]   ;;  %s1849_s7 = inlined_call_operand.vmem [shape: f32[1,32], index: 7, kind: input, shape index: {}]   ;;  %s1850_s8 = inlined_call_operand.vmem [shape: bf16[32,64], index: 8, kind: input, shape index: {}]   ;;  %s1851_s9 = inlined_call_operand.vmem [shape: f32[1,64], index: 9, kind: input, shape index: {}]   ;;  %s1852_s10 = inlined_call_operand.vmem [shape: bf16[64,32], index: 10, kind: input, shape index: {}]   ;;  %s1853_s11 = inlined_call_operand.vmem [shape: f32[1,32], index: 11, kind: input, shape index: {}]   ;;  %s1854_s12 = inlined_call_operand.vmem [shape: f32[1,32], index: 12, kind: input, shape index: {}]   ;;  %s1855_s13 = inlined_call_operand.vmem [shape: f32[1,32], index: 13, kind: input, shape index: {}]   ;;  %s1856_s14 = inlined_call_operand.vmem [shape: bf16[2,8,32], index: 14, kind: output, shape index: {}, may-alias: {0,14}]  }
   0x1 LB: > { %s1363_s30 = sadd.s32 4294967295, %s1577_s29   ;;  %p1367_p0 = scmp.ge.s32.totalorder %s1577_s29, 1  ;;  %s1577_s29 = sphi %s1671_s29, %s24_s29  }
   0x2   : > { %p419_p1 = scmp.lt.s32.totalorder %s1577_s29, 3 }
   0x4   : > { %p420_p2 = pnand %p1367_p0, %p419_p1 }
   0x5   : > { %v1541_v0 = vld [vmem:[%s1844_s2] sm:$0xff] (!%p420_p2)   ;;  %v1579_v1 = vmov (!%p420_p2), 0.0   ;;  %v1542_v2 = vld [vmem:[%s1844_s2 + $0x8] sm:$0xff] (!%p420_p2)   ;;  %vm1580_vm0 = vmmov (!%p420_p2), 0   ;;  %p466_p3 = scmp.lt.s32.totalorder (!%p420_p2), %s1363_s30, 1  ;;  %vm502_vm1 = vcmask (!%p420_p2), 261120   ;;  %v553_v24 = vlaneseq (!%p420_p2) }
   0x6   : > { %423 = sbr.rel (%p420_p2) target bundleno = 2559 (0x9ff), region = 76  ;;  %1432 = vmatprep.subr.bf16.mxu0 (!%p420_p2), %v1579_v1  ;;  %1440 = vmatprep.subr.bf16.mxu1 (!%p420_p2), %v1579_v1  ;;  %v1370_v4 = vld [vmem:[%s1845_s3] ss:$0 sm:$0xff] (!%p420_p2)  ;;  %s1581_s25 = smov (!%p420_p2), 96   ;;  %vm565_vm2 = vcmask (!%p420_p2), 64512   ;;  %v1588_v28 = vmov (!%p420_p2), 0  }
   0x7   : > { %1433 = vmatpush3.bf16.msra.mxu0 (!%p420_p2), %v1541_v0  ;;  %1436 = vmatprep.mubr.msk.bf16.mxu0 (!%p420_p2), %vm1580_vm0, %v1579_v1  ;;  %s1582_s26 = smov (!%p420_p2), 120   ;;  %s1583_s27 = smov (!%p420_p2), 88   ;;  %v554_v26 = vshrl.u32 (!%p420_p2), %v553_v24, 7  ;;  %vm629_vm5 = vcmask (!%p420_p2), 1043456   ;;  %vm1017_vm6 = vcmask (!%p420_p2), 130048   ;;  %vm1019_vm7 = vcmask (!%p420_p2), 195584  }
   0x8   : > { %1434 = vmatprep.subr.bf16.mxu0 (!%p420_p2), %v1579_v1  ;;  %1442 = vmatprep.mubr.msk.bf16.mxu1 (!%p420_p2), %vm1580_vm0, %v1579_v1  ;;  %s1584_s28 = smov (!%p420_p2), 80   ;;  %s1585_s15 = smov (!%p420_p2), 112   ;;  %vm1224_vm8 = vcmask (!%p420_p2), 523264   ;;  %vm1299_vm9 = vcmask (!%p420_p2), 257024  }
   0x9   : > { %s1586_s16 = smov (!%p420_p2), 72   ;;  %s1587_s17 = smov (!%p420_p2), 104   ;;  %v555_v27 = vsub.s32 (!%p420_p2), 0, %v554_v26 }
   0xa   : > { %s1590_s23 = smov (!%p420_p2), 64   ;;  %s1591_s24 = smov (!%p420_p2), 40  }
   0xb   : > { %1435 = vmatpush3.bf16.msra.mxu0 (!%p420_p2), %v1542_v2  ;;  %s1595_s18 = smov (!%p420_p2), 24  }
   0xc   : > { %1446 = vmatprep.subr.bf16.mxu0 (!%p420_p2), %v1579_v1 }
   0xd   : > { %s1858_s30 = smov (!%p466_p3, %s1363_s30), 1 }
   0xe   : > { %s1368_s19 = sshll.u32 %s1858_s30, 2  ;;  %s472_s21 = scalar_lea.vmem %s1843_s1, %s1858_s30 }
   0xf   : > { %s469_s22 = scalar_lea.vmem %s1842_s0, %s1368_s19  ;;  %v550_v25 = vld [vmem:[%s472_s21] sm:$0x1] }
  0x10   : > { %v1701_v3 = vld [vmem:[%s469_s22] sm:$0xf]  ;;  %vm551_vm3 = vcmp.gt.f32.partialorder %v550_v25, 0.5  ;;  %s1589_s22 = smov 56  }
  0x11   : > { %1437 = vmatmul.mubr.msk.bf16.vlgmr.msra.gmra.mrb[0].mxu0 %vm502_vm1, %v1701_v3  ;;  %v552_v29 = vsel %vm551_vm3, 1, %v1588_v28 }
  0x12   : > { %1448 = vmatprep.mubr.msk.bf16.mxu0 %vm1580_vm0, %v1579_v1  ;;  %v556_v30 = vrot.slane %v552_v29, %v555_v27 }
  0x14   : > { %vm557_vm4 = vcmp.eq.s32.totalorder %v556_v30, 1 }
  0x15   : > { %v558_v31 = vsel %vm557_vm4, -1e+30, %v1579_v1 }
  0xe4   : > { %v540_v5 = vpop.f32.mrb[0].mxu0 }
  0xe5   : > { %v541_v6 = vadd.f32 %v1370_v4, %v540_v5  ;;  %v1438_v7 = vpop.f32.mrb[1].mxu0 }
  0xe6   : > { %v543_v8 = vpop.f32.mrb[2].mxu0 }
  0xe7   : > { %v559_v9 = vmul.f32 0.35355338, %v541_v6  ;;  %v1710_v10 = vpack.c.bf16 %v541_v6, %v541_v6  ;;  %v1439_v11 = vpop.f32.mrb[3].mxu0 }
  0xe9   : > { %v560_v12 = vpack.c.bf16 %v559_v9, %v559_v9  ;;  %563 = vrot.lane.b32.xlu0 %v1710_v10, %s1581_s25  ;;  %s1592_s25 = smov 48  }
  0xeb   : > { %674 = vrot.lane.b32.xlu1 %v560_v12, %s1582_s26  ;;  %s1593_s26 = smov 8  }
  0xed   : > { %676 = vrot.lane.b32.xlu0 %v1710_v10, %s1583_s27 }
  0xef   : > { %786 = vrot.lane.b32.xlu1 %v1710_v10, %s1584_s28 }
  0xf1   : > { %784 = vrot.lane.b32.xlu0 %v560_v12, %s1585_s15 }
  0xf3   : > { %896 = vrot.lane.b32.xlu1 %v1710_v10, %s1586_s16 }
  0xf5   : > { %894 = vrot.lane.b32.xlu0 %v560_v12, %s1587_s17  ;;  %s1594_s17 = smov 16  }
 0x15b   : > { %v564_v13 = vpop.permute.xlu0 %563 }
 0x15c   : > { %v570_v14 = vsel %vm565_vm2, %v564_v13, 0 }
 0x15d   : > { %1441 = vmatpush3.bf16.xpose.msra.mxu1 %v570_v14  ;;  %v675_v16 = vpop.permute.xlu1 %674 }
 0x15e   : > { %1452 = vmatprep.subr.bf16.mxu1 %v1579_v1 }
 0x15f   : > { %v677_v15 = vpop.permute.xlu0 %676 }
 0x160   : > { %v682_v17 = vsel %vm565_vm2, %v677_v15, 0 }
 0x161   : > { %v787_v18 = vpop.permute.xlu1 %786 }
 0x162   : > { %v792_v19 = vsel %vm565_vm2, %v787_v18, 0 }
 0x163   : > { %v785_v21 = vpop.permute.xlu0 %784 }
 0x164   : > { %1443 = vmatmul.mubr.msk.bf16.vlgmr.msra.gmra.mrb[0].mxu1 %vm565_vm2, %v560_v12 }
 0x165   : > { %1453 = vmatpush3.bf16.xpose.msra.mxu1 %v682_v17  ;;  %1454 = vmatprep.mubr.msk.bf16.mxu1 %vm1580_vm0, %v1579_v1  ;;  %v897_v20 = vpop.permute.xlu1 %896 }
 0x166   : > { %1464 = vmatprep.subr.bf16.mxu1 %v1579_v1  ;;  %v902_v22 = vsel %vm565_vm2, %v897_v20, 0 }
 0x167   : > { %v895_v23 = vpop.permute.xlu0 %894 }
 0x16c   : > { %1455 = vmatmul.mubr.msk.bf16.vlgmr.msra.gmra.mrb[4].mxu1 %vm565_vm2, %v675_v16 }
 0x16d   : > { %1465 = vmatpush3.bf16.xpose.msra.mxu1 %v792_v19  ;;  %1466 = vmatprep.mubr.msk.bf16.mxu1 %vm1580_vm0, %v1579_v1 }
 0x16e   : > { %1476 = vmatprep.subr.bf16.mxu1 %v1579_v1 }
 0x174   : > { %1467 = vmatmul.mubr.msk.bf16.vlgmr.msra.gmra.mrb[8].mxu1 %vm565_vm2, %v785_v21 }
 0x175   : > { %1477 = vmatpush3.bf16.xpose.msra.mxu1 %v902_v22  ;;  %1478 = vmatprep.mubr.msk.bf16.mxu1 %vm1580_vm0, %v1579_v1 }
 0x176   : > { %1488 = vmatprep.subr.bf16.mxu1 %v1579_v1 }
 0x17c   : > { %1479 = vmatmul.mubr.msk.bf16.vlgmr.msra.gmra.mrb[12].mxu1 %vm565_vm2, %v895_v23 }
 0x17d   : > { %1492 = vmatprep.mubr.msk.bf16.mxu1 %vm1580_vm0, %v1579_v1 }
 0x237   : > { %v606_v32 = vpop.f32.mrb[0].mxu1 }
 0x238   : > { %v607_v33 = vadd.f32 %v606_v32, %v558_v31  ;;  %v1444_v34 = vpop.f32.mrb[1].mxu1 }
 0x239   : > { %v609_v35 = vpop.f32.mrb[2].mxu1 }
 0x23a   : > { %v1445_v36 = vpop.f32.mrb[3].mxu1  ;;  %v612_v37 = vsel %vm565_vm2, %v607_v33, -inf }
 0x23b   : > { %613 = vmax.xlane.f32.xlu1 %v612_v37 }
 0x23f   : > { %v718_v38 = vpop.f32.mrb[4].mxu1 }
 0x240   : > { %v719_v39 = vadd.f32 %v718_v38, %v558_v31  ;;  %v1456_v40 = vpop.f32.mrb[5].mxu1 }
 0x241   : > { %v721_v41 = vpop.f32.mrb[6].mxu1 }
 0x242   : > { %v1457_v42 = vpop.f32.mrb[7].mxu1  ;;  %v724_v43 = vsel %vm565_vm2, %v719_v39, -inf }
 0x243   : > { %725 = vmax.xlane.f32.xlu0 %v724_v43 }
 0x247   : > { %v828_v44 = vpop.f32.mrb[8].mxu1 }
 0x248   : > { %v829_v45 = vadd.f32 %v828_v44, %v558_v31  ;;  %v1468_v46 = vpop.f32.mrb[9].mxu1 }
 0x249   : > { %v831_v47 = vpop.f32.mrb[10].mxu1  ;;  %v1543_v46 = vld [vmem:[%s1846_s4] sm:$0xff]  }
 0x24a   : > { %v1469_v48 = vpop.f32.mrb[11].mxu1  ;;  %v834_v49 = vsel %vm565_vm2, %v829_v45, -inf  ;;  %1489 = vmatpush3.bf16.msra.mxu1 %v1543_v46  ;;  %v1544_v47 = vld [vmem:[%s1846_s4 + $0x8] sm:$0xff]  }
 0x24b   : > { %835 = vmax.xlane.f32.xlu0 %v834_v49  ;;  %1490 = vmatprep.subr.bf16.mxu1 %v1579_v1 }
 0x24e   : > { %1491 = vmatpush3.bf16.msra.mxu1 %v1544_v47 }
 0x24f   : > { %v938_v50 = vpop.f32.mrb[12].mxu1  ;;  %1504 = vmatprep.subr.bf16.mxu1 %v1579_v1 }
 0x250   : > { %v939_v51 = vadd.f32 %v938_v50, %v558_v31  ;;  %v1480_v52 = vpop.f32.mrb[13].mxu1 }
 0x251   : > { %v941_v53 = vpop.f32.mrb[14].mxu1 }
 0x252   : > { %v1481_v54 = vpop.f32.mrb[15].mxu1  ;;  %v944_v55 = vsel %vm565_vm2, %v939_v51, -inf }
 0x253   : > { %945 = vmax.xlane.f32.xlu1 %v944_v55 }
 0x2c8   : > { %v614_v56 = vpop.xlane.xlu1 %613 }
 0x2c9   : > { %v615_v57 = vsub.f32 %v607_v33, %v614_v56 }
 0x2cb   : > { %v616_v58 = vmul.f32 1.442695, %v615_v57 }
 0x2cd   : > { %1551 = vpow2.f32 %v616_v58 }
 0x2d0   : > { %v726_v59 = vpop.xlane.xlu0 %725 }
 0x2d1   : > { %v727_v60 = vsub.f32 %v719_v39, %v726_v59 }
 0x2d3   : > { %v728_v61 = vmul.f32 1.442695, %v727_v60 }
 0x2d5   : > { %1553 = vpow2.f32 %v728_v61 }
 0x2d7   : > { %v1552_v62 = vpop.eup %1551 }
 0x2d8   : > { %v836_v63 = vpop.xlane.xlu0 %835  ;;  %v618_v0 = vsel %vm565_vm2, %v1552_v62, 0.0 }
 0x2d9   : > { %v837_v2 = vsub.f32 %v829_v45, %v836_v63  ;;  %619 = vadd.xlane.f32.xlu0 %v618_v0  ;;  %v1382_v63 = vld [vmem:[%s1847_s5] ss:$0 sm:$0xff]  ;;  %v1084_v0 = vunpack.c.l.bf16 %v1701_v3 }
 0x2da   : > { %v1545_v3 = vld [vmem:[%s1850_s8] sm:$0xff]  }
 0x2db   : > { %v838_v4 = vmul.f32 1.442695, %v837_v2 }
 0x2dd   : > { %1555 = vpow2.f32 %v838_v4 }
 0x2df   : > { %v1554_v5 = vpop.eup %1553 }
 0x2e0   : > { %v730_v6 = vsel %vm565_vm2, %v1554_v5, 0.0  ;;  %v946_v9 = vpop.xlane.xlu1 %945 }
 0x2e1   : > { %731 = vadd.xlane.f32.xlu1 %v730_v6  ;;  %v947_v11 = vsub.f32 %v939_v51, %v946_v9 }
 0x2e3   : > { %v948_v12 = vmul.f32 1.442695, %v947_v11 }
 0x2e5   : > { %1557 = vpow2.f32 %v948_v12 }
 0x2e7   : > { %v1556_v7 = vpop.eup %1555 }
 0x2e8   : > { %v840_v8 = vsel %vm565_vm2, %v1556_v7, 0.0 }
 0x2e9   : > { %841 = vadd.xlane.f32.xlu0 %v840_v8 }
 0x2ef   : > { %v1558_v13 = vpop.eup %1557 }
 0x2f0   : > { %v950_v14 = vsel %vm565_vm2, %v1558_v13, 0.0 }
 0x2f2   : > { %736 = vrot.lane.b32.xlu1 %v1710_v10, %s1589_s22  ;;  %s476_s22 = scalar_lea.vmem %s1856_s14, %s1368_s19 }
 0x2ff   : > { %624 = vrot.lane.b32.xlu0 %v1710_v10, %s1590_s23 }
 0x303   : > { %956 = vrot.lane.b32.xlu0 %v1710_v10, %s1591_s24 }
 0x316   : > { %951 = vadd.xlane.f32.xlu1 %v950_v14 }
 0x327   : > { %846 = vrot.lane.b32.xlu1 %v1710_v10, %s1592_s25 }
 0x366   : > { %v620_v15 = vpop.xlane.xlu0 %619 }
 0x367   : > { %1559 = vrcp.f32 %v620_v15 }
 0x36e   : > { %v732_v16 = vpop.xlane.xlu1 %731 }
 0x36f   : > { %1561 = vrcp.f32 %v732_v16  ;;  %v1546_v16 = vld [vmem:[%s1850_s8 + $0x8] sm:$0xff]  }
 0x371   : > { %v1560_v17 = vpop.eup %1559 }
 0x372   : > { %v622_v19 = vmul.f32 %v1560_v17, %v1552_v62  ;;  %v737_v22 = vpop.permute.xlu1 %736  ;;  %v1547_v17 = vld [vmem:[%s1852_s10] sm:$0xff]  }
 0x373   : > { %v742_v25 = vsel %vm629_vm5, %v737_v22, 0 }
 0x374   : > { %v623_v23 = vpack.c.bf16 %v622_v19, %v622_v19 }
 0x376   : > { %v842_v18 = vpop.xlane.xlu0 %841 }
 0x377   : > { %1563 = vrcp.f32 %v842_v18  ;;  %v1548_v18 = vld [vmem:[%s1852_s10 + $0x8] sm:$0xff]  }
 0x379   : > { %v1562_v24 = vpop.eup %1561 }
 0x37a   : > { %v625_v20 = vpop.permute.xlu0 %624  ;;  %v734_v10 = vmul.f32 %v1562_v24, %v1554_v5 }
 0x37b   : > { %v631_v21 = vsel %vm629_vm5, %v625_v20, 0 }
 0x37c   : > { %1447 = vmatpush3.bf16.msra.mxu0 %v631_v21  ;;  %v735_v26 = vpack.c.bf16 %v734_v10, %v734_v10 }
 0x37d   : > { %1458 = vmatprep.subr.bf16.mxu0 %v1579_v1 }
 0x37e   : > { %v957_v32 = vpop.permute.xlu0 %956 }
 0x37f   : > { %1449 = vmatmul.mubr.msk.bf16.vlgmr.msra.gmra.mrb[4].mxu0 %vm565_vm2, %v623_v23  ;;  %v962_v34 = vsel %vm629_vm5, %v957_v32, 0  ;;  %v1386_v23 = vld [vmem:[%s1848_s6] ss:$0 sm:$0xff] }
 0x380   : > { %1459 = vmatpush3.bf16.msra.mxu0 %v742_v25  ;;  %1460 = vmatprep.mubr.msk.bf16.mxu0 %vm1580_vm0, %v1579_v1  ;;  %v1387_v25 = vld [vmem:[%s1849_s7] ss:$0 sm:$0xff] }
 0x381   : > { %1470 = vmatprep.subr.bf16.mxu0 %v1579_v1  ;;  %v1564_v27 = vpop.eup %1563 }
 0x382   : > { %v844_v29 = vmul.f32 %v1564_v27, %v1556_v7 }
 0x384   : > { %v845_v33 = vpack.c.bf16 %v844_v29, %v844_v29  ;;  %v1550_v29 = vld [vmem:[%s1852_s10 + $0x18] sm:$0xff]  }
 0x387   : > { %1461 = vmatmul.mubr.msk.bf16.vlgmr.msra.gmra.mrb[8].mxu0 %vm565_vm2, %v735_v26 }
 0x388   : > { %1472 = vmatprep.mubr.msk.bf16.mxu0 %vm1580_vm0, %v1579_v1 }
 0x3a3   : > { %v952_v28 = vpop.xlane.xlu1 %951 }
 0x3a4   : > { %1565 = vrcp.f32 %v952_v28  ;;  %v1549_v28 = vld [vmem:[%s1852_s10 + $0x10] sm:$0xff]  }
 0x3a7   : > { %v847_v30 = vpop.permute.xlu1 %846 }
 0x3a8   : > { %v852_v31 = vsel %vm629_vm5, %v847_v30, 0  ;;  %v1388_v30 = vld [vmem:[%s1851_s9] ss:$0 sm:$0xff] }
 0x3a9   : > { %1471 = vmatpush3.bf16.msra.mxu0 %v852_v31 }
 0x3aa   : > { %1482 = vmatprep.subr.bf16.mxu0 %v1579_v1 }
 0x3ac   : > { %1473 = vmatmul.mubr.msk.bf16.vlgmr.msra.gmra.mrb[12].mxu0 %vm565_vm2, %v845_v33 }
 0x3ad   : > { %1483 = vmatpush3.bf16.msra.mxu0 %v962_v34  ;;  %1484 = vmatprep.mubr.msk.bf16.mxu0 %vm1580_vm0, %v1579_v1 }
 0x3ae   : > { %v1566_v35 = vpop.eup %1565  ;;  %1496 = vmatprep.subr.bf16.mxu0 %v1579_v1 }
 0x3af   : > { %v954_v36 = vmul.f32 %v1566_v35, %v1558_v13 }
 0x3b1   : > { %v955_v37 = vpack.c.bf16 %v954_v36, %v954_v36 }
 0x3b4   : > { %1485 = vmatmul.mubr.msk.bf16.vlgmr.msra.gmra.mrb[16].mxu0 %vm565_vm2, %v955_v37 }
 0x3b5   : > { %1500 = vmatprep.mubr.msk.bf16.mxu0 %vm1580_vm0, %v1579_v1  ;;  %1497 = vmatpush3.bf16.msra.mxu0 %v1545_v3 }
 0x3b6   : > { %1498 = vmatprep.subr.bf16.mxu0 %v1579_v1 }
 0x3b9   : > { %1499 = vmatpush3.bf16.msra.mxu0 %v1546_v16 }
 0x452   : > { %v667_v38 = vpop.f32.mrb[4].mxu0 }
 0x453   : > { %v1450_v39 = vpop.f32.mrb[5].mxu0 }
 0x454   : > { %v670_v40 = vpop.f32.mrb[6].mxu0 }
 0x455   : > { %v1451_v41 = vpop.f32.mrb[7].mxu0 }
 0x45a   : > { %v778_v42 = vpop.f32.mrb[8].mxu0 }
 0x45b   : > { %1005 = vrot.lane.b32.xlu1 %v778_v42, %s1593_s26  ;;  %v1462_v43 = vpop.f32.mrb[9].mxu0 }
 0x45c   : > { %v781_v44 = vpop.f32.mrb[10].mxu0 }
 0x45d   : > { %v1463_v45 = vpop.f32.mrb[11].mxu0 }
 0x47f   : > { %v888_v48 = vpop.f32.mrb[12].mxu0 }
 0x480   : > { %1009 = vrot.lane.b32.xlu0 %v888_v48, %s1594_s17  ;;  %v1474_v49 = vpop.f32.mrb[13].mxu0 }
 0x481   : > { %v891_v50 = vpop.f32.mrb[14].mxu0 }
 0x482   : > { %v1475_v51 = vpop.f32.mrb[15].mxu0 }
 0x487   : > { %v998_v52 = vpop.f32.mrb[16].mxu0 }
 0x488   : > { %1013 = vrot.lane.b32.xlu1 %v998_v52, %s1595_s18  ;;  %v1486_v53 = vpop.f32.mrb[17].mxu0 }
 0x489   : > { %v1001_v54 = vpop.f32.mrb[18].mxu0 }
 0x48a   : > { %v1487_v55 = vpop.f32.mrb[19].mxu0  ;;  %v1398_v54 = vld [vmem:[%s1854_s12] ss:$0 sm:$0xff] }
 0x4cd   : > { %v1006_v56 = vpop.permute.xlu1 %1005 }
 0x4ce   : > { %v1016_v58 = vsel %vm565_vm2, %v667_v38, %v1006_v56  ;;  %v1399_v56 = vld [vmem:[%s1855_s13] ss:$0 sm:$0xff] }
 0x4f2   : > { %v1010_v57 = vpop.permute.xlu0 %1009 }
 0x4f3   : > { %v1018_v59 = vsel %vm1017_vm6, %v1016_v58, %v1010_v57 }
 0x4fa   : > { %v1014_v60 = vpop.permute.xlu1 %1013 }
 0x4fb   : > { %v1020_v61 = vsel %vm1019_vm7, %v1018_v59, %v1014_v60 }
 0x4fc   : > { %v1021_v62 = vpack.c.bf16 %v1020_v61, %v1020_v61 }
 0x4fe   : > { %1493 = vmatmul.mubr.msk.bf16.vlgmr.msra.gmra.mrb[16].mxu1 %vm502_vm1, %v1021_v62 }
 0x4ff   : > { %1512 = vmatprep.mubr.msk.bf16.mxu1 %vm1580_vm0, %v1579_v1  ;;  %1505 = vmatpush3.bf16.msra.mxu1 %v1547_v17 }
 0x500   : > { %1506 = vmatprep.subr.bf16.mxu1 %v1579_v1 }
 0x503   : > { %1507 = vmatpush3.bf16.msra.mxu1 %v1548_v18 }
 0x504   : > { %1508 = vmatprep.subr.bf16.mxu1 %v1579_v1 }
 0x507   : > { %1509 = vmatpush3.bf16.msra.mxu1 %v1549_v28 }
 0x508   : > { %1510 = vmatprep.subr.bf16.mxu1 %v1579_v1  ;;  %v1392_v1 = vld [vmem:[%s1853_s11] ss:$0 sm:$0xff] }
 0x50b   : > { %1511 = vmatpush3.bf16.msra.mxu1 %v1550_v29 }
 0x5d1   : > { %v1078_v2 = vpop.f32.mrb[16].mxu1 }
 0x5d2   : > { %v1079_v4 = vadd.f32 %v1382_v63, %v1078_v2  ;;  %v1494_v5 = vpop.f32.mrb[17].mxu1 }
 0x5d3   : > { %v1081_v6 = vpop.f32.mrb[18].mxu1 }
 0x5d4   : > { %v1495_v7 = vpop.f32.mrb[19].mxu1  ;;  %v1085_v8 = vadd.f32 %v1084_v0, %v1079_v4 }
 0x5d6   : > { %v1088_v9 = vsel %vm502_vm1, %v1085_v8, 0.0 }
 0x5d7   : > { %1089 = vadd.xlane.f32.xlu0 %v1088_v9 }
 0x664   : > { %v1090_v11 = vpop.xlane.xlu0 %1089 }
 0x665   : > { %v1092_v12 = vmul.f32 0.03125, %v1090_v11 }
 0x667   : > { %v1093_v13 = vsub.f32 %v1085_v8, %v1092_v12 }
 0x669   : > { %v1094_v14 = vmul.f32 %v1093_v13, %v1093_v13 }
 0x66b   : > { %v1095_v15 = vsel %vm502_vm1, %v1094_v14, 0.0 }
 0x66c   : > { %1096 = vadd.xlane.f32.xlu1 %v1095_v15 }
 0x6f9   : > { %v1097_v19 = vpop.xlane.xlu1 %1096 }
 0x6fa   : > { %v1098_v20 = vmul.f32 0.03125, %v1097_v19 }
 0x6fc   : > { %v1099_v21 = vadd.f32 1e-05, %v1098_v20 }
 0x6fe   : > { %1567 = vrsqrt.f32 %v1099_v21 }
 0x708   : > { %v1568_v22 = vpop.eup %1567 }
 0x709   : > { %v1101_v24 = vmul.f32 %v1568_v22, %v1093_v13 }
 0x70b   : > { %v1108_v10 = vmul.f32 %v1386_v23, %v1101_v24 }
 0x70d   : > { %v1115_v26 = vadd.f32 %v1387_v25, %v1108_v10 }
 0x70f   : > { %v1116_v27 = vpack.c.bf16 %v1115_v26, %v1115_v26 }
 0x711   : > { %1501 = vmatmul.mubr.msk.bf16.vlgmr.msra.gmra.mrb[20].mxu0 %vm502_vm1, %v1116_v27 }
 0x7e4   : > { %v1177_v31 = vpop.f32.mrb[20].mxu0 }
 0x7e5   : > { %v1178_v32 = vadd.f32 %v1388_v30, %v1177_v31  ;;  %v1502_v33 = vpop.f32.mrb[21].mxu0 }
 0x7e6   : > { %v1180_v34 = vpop.f32.mrb[22].mxu0 }
 0x7e7   : > { %v1183_v35 = vmax.f32 %v1178_v32, 0.0  ;;  %v1503_v36 = vpop.f32.mrb[23].mxu0 }
 0x7e9   : > { %v1184_v37 = vpack.c.bf16 %v1183_v35, %v1183_v35 }
 0x7eb   : > { %1513 = vmatmul.mubr.msk.bf16.vlgmr.msra.gmra.mrb[20].mxu1 %vm1224_vm8, %v1184_v37 }
 0x8be   : > { %v1262_v38 = vpop.f32.mrb[20].mxu1 }
 0x8bf   : > { %v1263_v39 = vadd.f32 %v1392_v1, %v1262_v38  ;;  %v1514_v40 = vpop.f32.mrb[21].mxu1 }
 0x8c0   : > { %v1265_v41 = vpop.f32.mrb[22].mxu1 }
 0x8c1   : > { %v1515_v42 = vpop.f32.mrb[23].mxu1  ;;  %v1268_v43 = vadd.f32 %v1263_v39, %v1115_v26 }
 0x8c3   : > { %v1271_v44 = vsel %vm502_vm1, %v1268_v43, 0.0 }
 0x8c4   : > { %1272 = vadd.xlane.f32.xlu0 %v1271_v44 }
 0x951   : > { %v1273_v45 = vpop.xlane.xlu0 %1272 }
 0x952   : > { %v1274_v46 = vmul.f32 0.03125, %v1273_v45 }
 0x954   : > { %v1275_v47 = vsub.f32 %v1268_v43, %v1274_v46 }
 0x956   : > { %v1276_v48 = vmul.f32 %v1275_v47, %v1275_v47 }
 0x958   : > { %v1277_v49 = vsel %vm502_vm1, %v1276_v48, 0.0 }
 0x959   : > { %1278 = vadd.xlane.f32.xlu0 %v1277_v49 }
 0x9e6   : > { %v1279_v50 = vpop.xlane.xlu0 %1278 }
 0x9e7   : > { %v1280_v51 = vmul.f32 0.03125, %v1279_v50 }
 0x9e9   : > { %v1281_v52 = vadd.f32 1e-05, %v1280_v51 }
 0x9eb   : > { %1569 = vrsqrt.f32 %v1281_v52 }
 0x9f5   : > { %v1570_v53 = vpop.eup %1569 }
 0x9f6   : > { %v1283_v55 = vmul.f32 %v1570_v53, %v1275_v47 }
 0x9f8   : > { %v1290_v57 = vmul.f32 %v1398_v54, %v1283_v55 }
 0x9fa   : > { %v1297_v58 = vadd.f32 %v1399_v56, %v1290_v57 }
 0x9fc   : > { %v1298_v59 = vpack.c.bf16 %v1297_v58, %v1297_v58 }
 0x9fe   : > { %1300 = vst.msk [vmem:[%s476_s22] sm:$0xf] %vm1299_vm9, %v1298_v59 }
 0x9ff PF: > { %s24_s29 = sadd.s32 1, %s1577_s29  }
 0xa00   : > { %p21_p4 = scmp.ge.s32.totalorder %s24_s29, 4  }
 0xa02   :  { %23 = sbr.rel (!%p21_p4) target bundleno = 1 (0x1), region = 109 }

// kernel: transformer_forward.11
= control target key start
LH: loop header
LB: loop body
LE: loop exit
PB: predicated region body
PF: predicated region fallthrough
CT: control target
= control target key end

     0   :  { %vm27_vm0 = vcmask 261120   ;;  %v174_v16 = vmov 0.0   ;;  %vm175_vm1 = vmmov 0   ;;  %s235_s0 = inlined_call_operand.vmem [shape: bf16[16,32], index: 0, kind: input, shape index: {}]   ;;  %s236_s3 = inlined_call_operand.vmem [shape: bf16[32,128], index: 3, kind: input, shape index: {}]   ;;  %s237_s1 = inlined_call_operand.vmem [shape: f32[1,32], index: 1, kind: input, shape index: {}]   ;;  %s238_s2 = inlined_call_operand.vmem [shape: f32[1,32], index: 2, kind: input, shape index: {}]   ;;  %s239_s4 = inlined_call_operand.vmem [shape: f32[1,128], index: 4, kind: input, shape index: {}]   ;;  %s240_s5 = inlined_call_operand.vmem [shape: f32[16,128], index: 5, kind: output, shape index: {}]  }
   0x1   :  { %v152_v0 = vld [vmem:[%s235_s0] sm:$0xff]   ;;  %158 = vmatprep.subr.bf16.mxu0 %v174_v16  ;;  %v169_v17 = vld [vmem:[%s236_s3 + $0x8] sm:$0xff]   ;;  %162 = vmatprep.mubr.msk.bf16.mxu0 %vm175_vm1, %v174_v16 }
   0x2   :  { %v153_v1 = vunpack.c.l.bf16 %v152_v0  ;;  %v154_v2 = vunpack.c.h.bf16 %v152_v0  ;;  %v168_v15 = vld [vmem:[%s236_s3] sm:$0xff]  }
   0x3   :  { %159 = vmatpush3.bf16.msra.mxu0 %v168_v15  ;;  %v145_v26 = vld [vmem:[%s237_s1] ss:$0 sm:$0xff] }
   0x4   :  { %v28_v3 = vsel %vm27_vm0, %v153_v1, 0.0  ;;  %v31_v4 = vsel %vm27_vm0, %v154_v2, 0.0  ;;  %160 = vmatprep.subr.bf16.mxu0 %v174_v16  ;;  %v146_v30 = vld [vmem:[%s238_s2] ss:$0 sm:$0xff] }
   0x5   :  { %29 = vadd.xlane.f32.xlu0 %v28_v3  ;;  %v147_v35 = vld [vmem:[%s239_s4] ss:$0 sm:$0xff] }
   0x7   :  { %161 = vmatpush3.bf16.msra.mxu0 %v169_v17 }
   0x9   :  { %32 = vadd.xlane.f32.xlu0 %v31_v4 }
  0x92   :  { %v30_v5 = vpop.xlane.xlu0 %29 }
  0x93   :  { %v35_v6 = vmul.f32 0.03125, %v30_v5 }
  0x95   :  { %v37_v7 = vsub.f32 %v153_v1, %v35_v6 }
  0x96   :  { %v33_v8 = vpop.xlane.xlu0 %32 }
  0x97   :  { %v36_v9 = vmul.f32 0.03125, %v33_v8  ;;  %v39_v10 = vmul.f32 %v37_v7, %v37_v7 }
  0x99   :  { %v38_v11 = vsub.f32 %v154_v2, %v36_v9  ;;  %v41_v12 = vsel %vm27_vm0, %v39_v10, 0.0 }
  0x9a   :  { %42 = vadd.xlane.f32.xlu1 %v41_v12 }
  0x9b   :  { %v40_v13 = vmul.f32 %v38_v11, %v38_v11 }
  0x9d   :  { %v44_v14 = vsel %vm27_vm0, %v40_v13, 0.0 }
  0x9e   :  { %45 = vadd.xlane.f32.xlu1 %v44_v14 }
 0x127   :  { %v43_v18 = vpop.xlane.xlu1 %42 }
 0x128   :  { %v47_v19 = vmul.f32 0.03125, %v43_v18 }
 0x12a   :  { %v49_v20 = vadd.f32 1e-05, %v47_v19 }
 0x12b   :  { %v46_v21 = vpop.xlane.xlu1 %45 }
 0x12c   :  { %170 = vrsqrt.f32 %v49_v20  ;;  %v48_v22 = vmul.f32 0.03125, %v46_v21 }
 0x12e   :  { %v50_v23 = vadd.f32 1e-05, %v48_v22 }
 0x130   :  { %172 = vrsqrt.f32 %v50_v23 }
 0x136   :  { %v171_v24 = vpop.eup %170 }
 0x137   :  { %v53_v25 = vmul.f32 %v171_v24, %v37_v7 }
 0x139   :  { %v61_v29 = vmul.f32 %v145_v26, %v53_v25 }
 0x13a   :  { %v173_v27 = vpop.eup %172 }
 0x13b   :  { %v54_v28 = vmul.f32 %v173_v27, %v38_v11  ;;  %v69_v32 = vadd.f32 %v146_v30, %v61_v29 }
 0x13d   :  { %v62_v31 = vmul.f32 %v145_v26, %v54_v28 }
 0x13f   :  { %v70_v33 = vadd.f32 %v146_v30, %v62_v31 }
 0x141   :  { %v71_v34 = vpack.c.bf16 %v70_v33, %v69_v32 }
 0x143   :  { %163 = vmatmul.mubr.msk.bf16.vlgmr.msra.gmra.mrb[0].mxu0 %vm27_vm0, %v71_v34 }
 0x216   :  { %v132_v36 = vpop.f32.mrb[0].mxu0 }
 0x217   :  { %v133_v37 = vadd.f32 %v147_v35, %v132_v36  ;;  %v164_v38 = vpop.f32.mrb[1].mxu0 }
 0x218   :  { %v135_v39 = vpop.f32.mrb[2].mxu0 }
 0x219   :  { %139 = vst [vmem:[%s240_s5] sm:$0xff] %v133_v37  ;;  %v136_v40 = vadd.f32 %v147_v35, %v135_v39  ;;  %v165_v41 = vpop.f32.mrb[3].mxu0 }
 0x21b   :  { %140 = vst [vmem:[%s240_s5 + $0x8] sm:$0xff] %v136_v40 }

// kernel: transformer_forward.10
= control target key start
LH: loop header
LB: loop body
LE: loop exit
PB: predicated region body
PF: predicated region fallthrough
CT: control target
= control target key end

     0   :  { %s3327_s0 = inlined_call_operand.vmem [shape: bf16[2,8,32], index: 0, kind: input, shape index: {}, may-alias: {0,24}]   ;;  %s3328_s1 = inlined_call_operand.vmem [shape: bf16[2,8,32], index: 1, kind: input, shape index: {}]   ;;  %s3329_s2 = inlined_call_operand.vmem [shape: f32[2,1,8], index: 2, kind: input, shape index: {}]   ;;  %s3330_s3 = inlined_call_operand.vmem [shape: f32[2,1,8], index: 3, kind: input, shape index: {}]   ;;  %s3331_s4 = inlined_call_operand.vmem [shape: bf16[32,96], index: 4, kind: input, shape index: {}]   ;;  %s3332_s5 = inlined_call_operand.vmem [shape: f32[1,96], index: 5, kind: input, shape index: {}]   ;;  %s3333_s6 = inlined_call_operand.vmem [shape: bf16[32,32], index: 6, kind: input, shape index: {}]   ;;  %s3334_s7 = inlined_call_operand.vmem [shape: f32[1,32], index: 7, kind: input, shape index: {}]   ;;  %s3335_s8 = inlined_call_operand.vmem [shape: f32[1,32], index: 8, kind: input, shape index: {}]   ;;  %s3336_s9 = inlined_call_operand.vmem [shape: f32[1,32], index: 9, kind: input, shape index: {}]   ;;  %s3337_s10 = inlined_call_operand.vmem [shape: bf16[32,32], index: 10, kind: input, shape index: {}]   ;;  %s3338_s11 = inlined_call_operand.vmem [shape: f32[1,32], index: 11, kind: input, shape index: {}]   ;;  %s3339_s12 = inlined_call_operand.vmem [shape: bf16[32,64], index: 12, kind: input, shape index: {}]   ;;  %s3340_s13 = inlined_call_operand.vmem [shape: f32[1,64], index: 13, kind: input, shape index: {}]   ;;  %s3341_s14 = inlined_call_operand.vmem [shape: bf16[32,32], index: 14, kind: input, shape index: {}]   ;;  %s3342_s15 = inlined_call_operand.vmem [shape: f32[1,32], index: 15, kind: input, shape index: {}]   ;;  %s3343_s16 = inlined_call_operand.vmem [shape: f32[1,32], index: 16, kind: input, shape index: {}]   ;;  %s3344_s17 = inlined_call_operand.vmem [shape: f32[1,32], index: 17, kind: input, shape index: {}]   ;;  %s3345_s18 = inlined_call_operand.vmem [shape: bf16[32,64], index: 18, kind: input, shape index: {}]   ;;  %s3346_s19 = inlined_call_operand.vmem [shape: f32[1,64], index: 19, kind: input, shape index: {}]   ;;  %s3347_s20 = inlined_call_operand.vmem [shape: bf16[64,32], index: 20, kind: input, shape index: {}]   ;;  %s3348_s21 = inlined_call_operand.vmem [shape: f32[1,32], index: 21, kind: input, shape index: {}]   ;;  %s3349_s22 = inlined_call_operand.vmem [shape: f32[1,32], index: 22, kind: input, shape index: {}]   ;;  %s3350_s23 = inlined_call_operand.hbm [shape: f32[1,32], index: 23, kind: input, shape index: {}]   ;;  %s3351_s24 = inlined_call_operand.vmem [shape: bf16[2,8,32], index: 24, kind: output, shape index: {}, may-alias: {0,24}]  }
   0x1   :  { %3365 = sst [smem:[#allocation5_spill]] %s3327_s0 }
   0x2   :  { %3366 = sst [smem:[#allocation6_spill]] %s3328_s1 }
   0x3   :  { %3367 = sst [smem:[#allocation7_spill]] %s3329_s2 }
   0x4   :  { %3368 = sst [smem:[#allocation8_spill]] %s3330_s3 }
   0x5   :  { %3369 = sst [smem:[#allocation9_spill]] %s3331_s4 }
   0x6   :  { %3370 = sst [smem:[#allocation10_spill]] %s3332_s5 }
   0x7   :  { %3371 = sst [smem:[#allocation11_spill]] %s3333_s6 }
   0x8   :  { %3372 = sst [smem:[#allocation12_spill]] %s3334_s7 }
   0x9   :  { %3373 = sst [smem:[#allocation13_spill]] %s3335_s8 }
   0xa   :  { %29 = vsyncpa [#allocation3], 0  ;;  %s2960_s5 = smov 0  }
   0xb LB: > { %s2966_s26 = sadd.s32 4294967295, %s2815_s5   ;;  %p2414_p0 = scmp.ge.s32.totalorder %s2815_s5, 1  ;;  %s2815_s5 = sphi %s2960_s5, %s35_s5  }
   0xc   : > { %p590_p1 = scmp.lt.s32.totalorder %s2815_s5, 3  ;;  %p3354_p3 = scmp.eq.s32.totalorder %s2966_s26, 0 }
   0xd   : > { %s2817_s28 = smov [#allocation2]   ;;  %s2777_s7 = scalar_lea.hbm %s3350_s23, 16 }
   0xe   : > { %p2970_p2 = pnand %p2414_p0, %p590_p1  ;;  %s660_s6 = sshll.u32 %s2817_s28, 4  ;;  %s661_s6 = int_to_ptr.vmem [resolvable:$true] %s660_s6 }
   0xf   : > { %p2778_p6 = scmp.ne.s32.totalorder %s3350_s23, %s2777_s7  ;;  %p2784_p10 = scmp.lt.u32.totalorder %s2777_s7, %s3350_s23 }
  0x10   : > { %s3374_s27 = scalar_select %p2970_p2, 1, 0 }
  0x11   : > { %p2691_p4 = pneg %p2970_p2 }
  0x13   : > { %p2979_p5 = pnand %p3354_p3, %p2691_p4 }
  0x15   : > { %p2779_p7 = pneg %p2979_p5 }
  0x17   : > { %p2780_p8 = pnand %p2779_p7, %p2778_p6 }
  0x19   : > { %p2781_p9 = pneg %p2780_p8 }
  0x1b   : > { %p2786_p11 = pnand %p2784_p10, %p2781_p9 }
  0x1d   : > { %2789 = shalt.err (!%p2786_p11)
}
  0x1e   : > { %s2790_s4 = scalar_lea.vmem %s661_s6, 16  ;;  %s2797_s1 = scalar_lea.vmem %s661_s6, 32 }
  0x1f   : > { %p2791_p12 = scmp.ne.s32.totalorder %s661_s6, %s2790_s4  ;;  %p2798_p1 = scmp.lt.s32.totalorder %s661_s6, %s661_s6 }
  0x20   : > { %p2799_p4 = scmp.lt.s32.totalorder %s2797_s1, %s2790_s4 }
  0x21   : > { %p2793_p13 = pnand %p2791_p12, %p2779_p7 }
  0x22   : > { %p2800_p3 = por %p2799_p4, %p2798_p1 }
  0x23   : > { %p2794_p0 = pneg %p2793_p13 }
  0x25   : > { %p2801_p2 = pnand %p2800_p3, %p2794_p0 }
  0x27   : > { %2804 = shalt.err (!%p2801_p2)
}
  0x28   : > { %2694 = dma.hbm_to_vmem [thread:$0]  (!%p2979_p5), %s3350_s23, 16, %s661_s6, [#allocation3]  }
  0x29   : > { %p3376_p6 = scmp.ne.s32.totalorder %s3374_s27, 0 }
  0x2a   : > { %p3377_p8 = scmp.eq.s32.totalorder (!%p3376_p6), %s2966_s26, 0 }
  0x2b   : > { %699 = sbr.rel (%p3376_p6) target bundleno = 4356 (0x1104), region = 116 }
  0x32   : > { %2810 = dma.done.wait (%p3377_p8), [#allocation3], 16   ;;  %p3378_p7 = pmov %p3377_p8 }
  0x33   : > { %p773_p9 = scmp.lt.s32.totalorder %s2966_s26, 1  ;;  %v2818_v0 = vmov 0.0   ;;  %vm2819_vm0 = vmmov 0   ;;  %s3379_s0 = sld [smem:[#allocation9_spill]]  ;;  %vm817_vm1 = vcmask 261120   ;;  %vm886_vm2 = vcmask 64512  }
  0x34   : > { %2812 = vsyncadd (%p3378_p7), [#allocation3], 4294967280  ;;  %2531 = vmatprep.subr.bf16.mxu1 %v2818_v0  ;;  %2535 = vmatprep.mubr.msk.bf16.mxu1 %vm2819_vm0, %v2818_v0  ;;  %s3380_s3 = sld [smem:[#allocation5_spill]]  ;;  %s3381_s29 = sld [smem:[#allocation10_spill]]  ;;  %v868_v24 = vlaneseq  ;;  %v2827_v28 = vmov 0   ;;  %vm950_vm7 = vcmask 1043456  }
  0x35   : > { %s3397_s26 = smov (!%p773_p9, %s2966_s26), 1  ;;  %2545 = vmatprep.subr.bf16.mxu0 %v2818_v0  ;;  %2547 = vmatprep.mubr.msk.bf16.mxu0 %vm2819_vm0, %v2818_v0  ;;  %s3362_s6 = smov 96   ;;  %vm1338_vm8 = vcmask 130048   ;;  %vm1340_vm9 = vcmask 195584   ;;  %vm2240_vm12 = vcmask 523264   ;;  %vm2315_vm13 = vcmask 257024  }
  0x36   : > { %s3016_s27 = sshll.u32 %s3397_s26, 2  ;;  %s2821_s2 = smov 120   ;;  %v3076_v26 = vshrl.u32 %v868_v24, 7  ;;  %v876_v31 = vand.u32 127, %v868_v24 }
  0x37   : > { %s3356_s7 = smov 88   ;;  %s3358_s30 = smov 80  }
  0x38   : > { %s3363_s8 = smov 104   ;;  %s3382_s28 = sld [smem:[#allocation7_spill]]  ;;  %v870_v27 = vsub.s32 0, %v3076_v26  ;;  %vm877_vm5 = vcmp.gt.s32.totalorder %v876_v31, %v3076_v26 }
  0x39   : > { %v2723_v1 = vld [vmem:[%s3379_s0] sm:$0xff]   ;;  %v2724_v2 = vld [vmem:[%s3379_s0 + $0x8] sm:$0xff]   ;;  %s2828_s4 = smov 56   ;;  %s2829_s1 = smov 64  }
  0x3a   : > { %s776_s25 = scalar_lea.vmem %s3380_s3, %s3016_s27  ;;  %2532 = vmatpush3.bf16.msra.mxu1 %v2723_v1  ;;  %v2422_v4 = vld [vmem:[%s3381_s29] ss:$0 sm:$0xff]  ;;  %s2824_s3 = smov 112  }
  0x3b   : > { %2533 = vmatprep.subr.bf16.mxu1 %v2818_v0  ;;  %v3029_v3 = vld [vmem:[%s776_s25] sm:$0xf]  ;;  %s3357_s25 = smov 72  }
  0x3e   : > { %2534 = vmatpush3.bf16.msra.mxu1 %v2724_v2  ;;  %s783_s29 = scalar_lea.vmem %s3382_s28, %s3397_s26  ;;  %s2830_s28 = smov 40  }
  0x3f   : > { %2539 = vmatprep.subr.bf16.mxu1 %v2818_v0  ;;  %v865_v25 = vld [vmem:[%s783_s29] sm:$0x1]  ;;  %s2831_s29 = smov 48  }
  0x40   : > { %vm866_vm3 = vcmp.gt.f32.partialorder %v865_v25, 0.5 }
  0x41   : > { %2536 = vmatmul.mubr.msk.bf16.vlgmr.msra.gmra.mrb[0].mxu1 %vm817_vm1, %v3029_v3  ;;  %v867_v29 = vsel %vm866_vm3, 1, %v2827_v28 }
  0x42   : > { %2541 = vmatprep.mubr.msk.bf16.mxu1 %vm2819_vm0, %v2818_v0  ;;  %v871_v30 = vrot.slane %v867_v29, %v870_v27 }
  0x44   : > { %vm872_vm4 = vcmp.eq.s32.totalorder %v871_v30, 1 }
  0x45   : > { %vm878_vm6 = vmor %vm872_vm4, %vm877_vm5 }
  0x46   : > { %v879_v32 = vsel %vm878_vm6, -1e+30, %v2818_v0 }
 0x114   : > { %v855_v5 = vpop.f32.mrb[0].mxu1 }
 0x115   : > { %v856_v6 = vadd.f32 %v2422_v4, %v855_v5  ;;  %v2537_v7 = vpop.f32.mrb[1].mxu1 }
 0x116   : > { %v858_v8 = vpop.f32.mrb[2].mxu1 }
 0x117   : > { %v880_v9 = vmul.f32 0.35355338, %v856_v6  ;;  %v3039_v10 = vpack.c.bf16 %v856_v6, %v856_v6  ;;  %v2538_v11 = vpop.f32.mrb[3].mxu1 }
 0x119   : > { %v881_v12 = vpack.c.bf16 %v880_v9, %v880_v9  ;;  %884 = vrot.lane.b32.xlu0 %v3039_v10, %s3362_s6  ;;  %s3385_s6 = sld [smem:[#allocation6_spill]] }
 0x11b   : > { %995 = vrot.lane.b32.xlu1 %v881_v12, %s2821_s2 }
 0x11d   : > { %997 = vrot.lane.b32.xlu0 %v3039_v10, %s3356_s7  ;;  %s3390_s7 = smov 80  }
 0x11f   : > { %1107 = vrot.lane.b32.xlu1 %v3039_v10, %s3358_s30  ;;  %s3360_s30 = smov 16  }
 0x121   : > { %1105 = vrot.lane.b32.xlu0 %v881_v12, %s2824_s3 }
 0x123   : > { %1217 = vrot.lane.b32.xlu1 %v3039_v10, %s3357_s25  ;;  %s3391_s25 = smov 72  }
 0x125   : > { %1215 = vrot.lane.b32.xlu0 %v881_v12, %s3363_s8  ;;  %s780_s8 = scalar_lea.vmem %s3385_s6, %s3016_s27 }
 0x18b   : > { %v885_v13 = vpop.permute.xlu0 %884 }
 0x18c   : > { %v891_v14 = vsel %vm886_vm2, %v885_v13, 0 }
 0x18d   : > { %2540 = vmatpush3.bf16.xpose.msra.mxu1 %v891_v14  ;;  %v996_v16 = vpop.permute.xlu1 %995 }
 0x18e   : > { %2551 = vmatprep.subr.bf16.mxu1 %v2818_v0 }
 0x18f   : > { %v998_v15 = vpop.permute.xlu0 %997 }
 0x190   : > { %v1003_v17 = vsel %vm886_vm2, %v998_v15, 0 }
 0x191   : > { %v1108_v18 = vpop.permute.xlu1 %1107 }
 0x192   : > { %v1113_v19 = vsel %vm886_vm2, %v1108_v18, 0 }
 0x193   : > { %v1106_v21 = vpop.permute.xlu0 %1105 }
 0x194   : > { %2542 = vmatmul.mubr.msk.bf16.vlgmr.msra.gmra.mrb[4].mxu1 %vm886_vm2, %v881_v12 }
 0x195   : > { %2552 = vmatpush3.bf16.xpose.msra.mxu1 %v1003_v17  ;;  %2553 = vmatprep.mubr.msk.bf16.mxu1 %vm2819_vm0, %v2818_v0  ;;  %v1218_v20 = vpop.permute.xlu1 %1217 }
 0x196   : > { %2563 = vmatprep.subr.bf16.mxu1 %v2818_v0  ;;  %v1223_v22 = vsel %vm886_vm2, %v1218_v20, 0 }
 0x197   : > { %v1216_v23 = vpop.permute.xlu0 %1215 }
 0x19c   : > { %2554 = vmatmul.mubr.msk.bf16.vlgmr.msra.gmra.mrb[8].mxu1 %vm886_vm2, %v996_v16 }
 0x19d   : > { %2564 = vmatpush3.bf16.xpose.msra.mxu1 %v1113_v19  ;;  %2565 = vmatprep.mubr.msk.bf16.mxu1 %vm2819_vm0, %v2818_v0 }
 0x19e   : > { %2575 = vmatprep.subr.bf16.mxu1 %v2818_v0 }
 0x1a4   : > { %2566 = vmatmul.mubr.msk.bf16.vlgmr.msra.gmra.mrb[12].mxu1 %vm886_vm2, %v1106_v21 }
 0x1a5   : > { %2576 = vmatpush3.bf16.xpose.msra.mxu1 %v1223_v22  ;;  %2577 = vmatprep.mubr.msk.bf16.mxu1 %vm2819_vm0, %v2818_v0 }
 0x1a6   : > { %2587 = vmatprep.subr.bf16.mxu1 %v2818_v0 }
 0x1ac   : > { %2578 = vmatmul.mubr.msk.bf16.vlgmr.msra.gmra.mrb[16].mxu1 %vm886_vm2, %v1216_v23 }
 0x1ad   : > { %2591 = vmatprep.mubr.msk.bf16.mxu1 %vm2819_vm0, %v2818_v0 }
 0x267   : > { %v927_v33 = vpop.f32.mrb[4].mxu1 }
 0x268   : > { %v928_v34 = vadd.f32 %v927_v33, %v879_v32  ;;  %v2543_v35 = vpop.f32.mrb[5].mxu1 }
 0x269   : > { %v930_v36 = vpop.f32.mrb[6].mxu1 }
 0x26a   : > { %v2544_v37 = vpop.f32.mrb[7].mxu1  ;;  %v933_v38 = vsel %vm886_vm2, %v928_v34, -inf }
 0x26b   : > { %934 = vmax.xlane.f32.xlu1 %v933_v38 }
 0x26f   : > { %v1039_v39 = vpop.f32.mrb[8].mxu1 }
 0x270   : > { %v1040_v40 = vadd.f32 %v1039_v39, %v879_v32  ;;  %v2555_v41 = vpop.f32.mrb[9].mxu1 }
 0x271   : > { %v1042_v42 = vpop.f32.mrb[10].mxu1 }
 0x272   : > { %v2556_v43 = vpop.f32.mrb[11].mxu1  ;;  %v1045_v44 = vsel %vm886_vm2, %v1040_v40, -inf }
 0x273   : > { %1046 = vmax.xlane.f32.xlu0 %v1045_v44 }
 0x277   : > { %v1149_v45 = vpop.f32.mrb[12].mxu1 }
 0x278   : > { %v1150_v46 = vadd.f32 %v1149_v45, %v879_v32  ;;  %v2567_v47 = vpop.f32.mrb[13].mxu1 }
 0x279   : > { %v1152_v48 = vpop.f32.mrb[14].mxu1 }
 0x27a   : > { %v2568_v49 = vpop.f32.mrb[15].mxu1  ;;  %v1155_v50 = vsel %vm886_vm2, %v1150_v46, -inf }
 0x27b   : > { %1156 = vmax.xlane.f32.xlu0 %v1155_v50 }
 0x27f   : > { %v1259_v51 = vpop.f32.mrb[16].mxu1 }
 0x280   : > { %v1260_v52 = vadd.f32 %v1259_v51, %v879_v32  ;;  %v2579_v53 = vpop.f32.mrb[17].mxu1 }
 0x281   : > { %v1262_v54 = vpop.f32.mrb[18].mxu1 }
 0x282   : > { %v2580_v55 = vpop.f32.mrb[19].mxu1  ;;  %v1265_v56 = vsel %vm886_vm2, %v1260_v52, -inf }
 0x283   : > { %1266 = vmax.xlane.f32.xlu1 %v1265_v56 }
 0x2f8   : > { %v935_v57 = vpop.xlane.xlu1 %934 }
 0x2f9   : > { %v936_v58 = vsub.f32 %v928_v34, %v935_v57 }
 0x2fb   : > { %v937_v59 = vmul.f32 1.442695, %v936_v58 }
 0x2fd   : > { %2739 = vpow2.f32 %v937_v59 }
 0x300   : > { %v1047_v60 = vpop.xlane.xlu0 %1046 }
 0x301   : > { %v1048_v61 = vsub.f32 %v1040_v40, %v1047_v60 }
 0x303   : > { %v1049_v62 = vmul.f32 1.442695, %v1048_v61 }
 0x305   : > { %2741 = vpow2.f32 %v1049_v62 }
 0x307   : > { %v2740_v63 = vpop.eup %2739 }
 0x308   : > { %v1157_v1 = vpop.xlane.xlu0 %1156  ;;  %v939_v2 = vsel %vm886_vm2, %v2740_v63, 0.0 }
 0x309   : > { %v1158_v4 = vsub.f32 %v1150_v46, %v1157_v1  ;;  %940 = vadd.xlane.f32.xlu0 %v939_v2 }
 0x30b   : > { %v1159_v5 = vmul.f32 1.442695, %v1158_v4 }
 0x30d   : > { %2743 = vpow2.f32 %v1159_v5 }
 0x30f   : > { %v2742_v6 = vpop.eup %2741 }
 0x310   : > { %v1051_v7 = vsel %vm886_vm2, %v2742_v6, 0.0  ;;  %v1267_v11 = vpop.xlane.xlu1 %1266 }
 0x311   : > { %1052 = vadd.xlane.f32.xlu1 %v1051_v7  ;;  %v1268_v12 = vsub.f32 %v1260_v52, %v1267_v11 }
 0x313   : > { %v1269_v13 = vmul.f32 1.442695, %v1268_v12 }
 0x315   : > { %2745 = vpow2.f32 %v1269_v13 }
 0x317   : > { %v2744_v8 = vpop.eup %2743 }
 0x318   : > { %v1161_v9 = vsel %vm886_vm2, %v2744_v8, 0.0 }
 0x319   : > { %1162 = vadd.xlane.f32.xlu0 %v1161_v9 }
 0x31f   : > { %v2746_v14 = vpop.eup %2745 }
 0x320   : > { %v1271_v15 = vsel %vm886_vm2, %v2746_v14, 0.0 }
 0x322   : > { %1057 = vrot.lane.b32.xlu1 %v3039_v10, %s2828_s4  ;;  %s3361_s4 = smov 8  }
 0x32f   : > { %945 = vrot.lane.b32.xlu0 %v3039_v10, %s2829_s1  ;;  %s3359_s1 = smov 24  }
 0x333   : > { %1277 = vrot.lane.b32.xlu0 %v3039_v10, %s2830_s28  ;;  %s3384_s28 = sld [smem:[#allocation12_spill]] }
 0x339   : > { %v2434_v5 = vld [vmem:[%s3384_s28] ss:$0 sm:$0xff]  ;;  %s3387_s28 = smov 104  }
 0x346   : > { %1272 = vadd.xlane.f32.xlu1 %v1271_v15 }
 0x357   : > { %1167 = vrot.lane.b32.xlu1 %v3039_v10, %s2831_s29  ;;  %s3383_s29 = sld [smem:[#allocation11_spill]] }
 0x35d   : > { %v2725_v50 = vld [vmem:[%s3383_s29] sm:$0xff]   ;;  %v2726_v51 = vld [vmem:[%s3383_s29 + $0x8] sm:$0xff]  }
 0x35e   : > { %2588 = vmatpush3.bf16.msra.mxu1 %v2725_v50 }
 0x35f   : > { %2589 = vmatprep.subr.bf16.mxu1 %v2818_v0 }
 0x362   : > { %2590 = vmatpush3.bf16.msra.mxu1 %v2726_v51 }
 0x363   : > { %2603 = vmatprep.subr.bf16.mxu1 %v2818_v0 }
 0x396   : > { %v941_v16 = vpop.xlane.xlu0 %940 }
 0x397   : > { %2747 = vrcp.f32 %v941_v16 }
 0x39e   : > { %v1053_v17 = vpop.xlane.xlu1 %1052 }
 0x39f   : > { %2749 = vrcp.f32 %v1053_v17 }
 0x3a1   : > { %v2748_v18 = vpop.eup %2747 }
 0x3a2   : > { %v943_v20 = vmul.f32 %v2748_v18, %v2740_v63  ;;  %v1058_v23 = vpop.permute.xlu1 %1057 }
 0x3a3   : > { %v1063_v29 = vsel %vm950_vm7, %v1058_v23, 0  ;;  %v2730_v23 = vld [vmem:[%s3337_s10 + $0x8] sm:$0xff]  }
 0x3a4   : > { %v944_v24 = vpack.c.bf16 %v943_v20, %v943_v20  ;;  %v2728_v20 = vld [vmem:[%s3339_s12 + $0x8] sm:$0xff]  }
 0x3a6   : > { %v1163_v19 = vpop.xlane.xlu0 %1162 }
 0x3a7   : > { %2751 = vrcp.f32 %v1163_v19 }
 0x3a9   : > { %v2750_v25 = vpop.eup %2749 }
 0x3aa   : > { %v946_v21 = vpop.permute.xlu0 %945  ;;  %v1055_v10 = vmul.f32 %v2750_v25, %v2742_v6  ;;  %v1405_v6 = vunpack.c.l.bf16 %v3029_v3  ;;  %v2727_v3 = vld [vmem:[%s3339_s12] sm:$0xff]  }
 0x3ab   : > { %v952_v22 = vsel %vm950_vm7, %v946_v21, 0  ;;  %v793_v21 = vld [vmem:[%s780_s8] sm:$0xf]  ;;  %s3386_s8 = sld [smem:[#allocation13_spill]] }
 0x3ac   : > { %2546 = vmatpush3.bf16.msra.mxu0 %v952_v22  ;;  %v1056_v30 = vpack.c.bf16 %v1055_v10, %v1055_v10  ;;  %v2729_v22 = vld [vmem:[%s3337_s10] sm:$0xff]  }
 0x3ad   : > { %2557 = vmatprep.subr.bf16.mxu0 %v2818_v0 }
 0x3ae   : > { %v1278_v36 = vpop.permute.xlu0 %1277 }
 0x3af   : > { %2548 = vmatmul.mubr.msk.bf16.vlgmr.msra.gmra.mrb[0].mxu0 %vm886_vm2, %v944_v24  ;;  %v1283_v38 = vsel %vm950_vm7, %v1278_v36, 0  ;;  %v2444_v36 = vld [vmem:[%s3340_s13] ss:$0 sm:$0xff] }
 0x3b0   : > { %2558 = vmatpush3.bf16.msra.mxu0 %v1063_v29  ;;  %2559 = vmatprep.mubr.msk.bf16.mxu0 %vm2819_vm0, %v2818_v0 }
 0x3b1   : > { %2569 = vmatprep.subr.bf16.mxu0 %v2818_v0  ;;  %v2752_v31 = vpop.eup %2751 }
 0x3b2   : > { %v1165_v33 = vmul.f32 %v2752_v31, %v2744_v8 }
 0x3b4   : > { %v1166_v37 = vpack.c.bf16 %v1165_v33, %v1165_v33 }
 0x3b7   : > { %2560 = vmatmul.mubr.msk.bf16.vlgmr.msra.gmra.mrb[4].mxu0 %vm886_vm2, %v1056_v30  ;;  %v2438_v30 = vld [vmem:[%s3386_s8] ss:$0 sm:$0xff]  ;;  %s3388_s8 = sld [smem:[#allocation8_spill]] }
 0x3b8   : > { %2571 = vmatprep.mubr.msk.bf16.mxu0 %vm2819_vm0, %v2818_v0 }
 0x3d3   : > { %v1273_v32 = vpop.xlane.xlu1 %1272 }
 0x3d4   : > { %2753 = vrcp.f32 %v1273_v32  ;;  %v2439_v32 = vld [vmem:[%s3336_s9] ss:$0 sm:$0xff] }
 0x3d7   : > { %v1168_v34 = vpop.permute.xlu1 %1167 }
 0x3d8   : > { %v1173_v35 = vsel %vm950_vm7, %v1168_v34, 0 }
 0x3d9   : > { %2570 = vmatpush3.bf16.msra.mxu0 %v1173_v35 }
 0x3da   : > { %2581 = vmatprep.subr.bf16.mxu0 %v2818_v0 }
 0x3dc   : > { %2572 = vmatmul.mubr.msk.bf16.vlgmr.msra.gmra.mrb[8].mxu0 %vm886_vm2, %v1166_v37 }
 0x3dd   : > { %2582 = vmatpush3.bf16.msra.mxu0 %v1283_v38  ;;  %2583 = vmatprep.mubr.msk.bf16.mxu0 %vm2819_vm0, %v2818_v0 }
 0x3de   : > { %v2754_v39 = vpop.eup %2753  ;;  %2595 = vmatprep.subr.bf16.mxu0 %v2818_v0 }
 0x3df   : > { %v1275_v40 = vmul.f32 %v2754_v39, %v2746_v14 }
 0x3e1   : > { %v1276_v41 = vpack.c.bf16 %v1275_v40, %v1275_v40 }
 0x3e4   : > { %2584 = vmatmul.mubr.msk.bf16.vlgmr.msra.gmra.mrb[12].mxu0 %vm886_vm2, %v1276_v41 }
 0x3e5   : > { %2599 = vmatprep.mubr.msk.bf16.mxu0 %vm2819_vm0, %v2818_v0  ;;  %2596 = vmatpush3.bf16.msra.mxu0 %v2729_v22 }
 0x3e6   : > { %2597 = vmatprep.subr.bf16.mxu0 %v2818_v0 }
 0x3e9   : > { %2598 = vmatpush3.bf16.msra.mxu0 %v2730_v23 }
 0x3ea   : > { %2611 = vmatprep.subr.bf16.mxu0 %v2818_v0 }
 0x482   : > { %v988_v42 = vpop.f32.mrb[0].mxu0 }
 0x483   : > { %v2549_v43 = vpop.f32.mrb[1].mxu0 }
 0x484   : > { %v991_v44 = vpop.f32.mrb[2].mxu0 }
 0x485   : > { %v2550_v45 = vpop.f32.mrb[3].mxu0  ;;  %v2440_v44 = vld [vmem:[%s3338_s11] ss:$0 sm:$0xff] }
 0x48a   : > { %v1099_v46 = vpop.f32.mrb[4].mxu0 }
 0x48b   : > { %1326 = vrot.lane.b32.xlu1 %v1099_v46, %s3361_s4  ;;  %v2561_v47 = vpop.f32.mrb[5].mxu0  ;;  %s786_s4 = scalar_lea.vmem %s3388_s8, %s3397_s26  ;;  %s3389_s26 = smov 96  }
 0x48c   : > { %v1102_v48 = vpop.f32.mrb[6].mxu0  ;;  %s3394_s8 = smov 16  }
 0x48d   : > { %v2562_v49 = vpop.f32.mrb[7].mxu0 }
 0x4af   : > { %v1209_v52 = vpop.f32.mrb[8].mxu0 }
 0x4b0   : > { %1330 = vrot.lane.b32.xlu0 %v1209_v52, %s3360_s30  ;;  %v2573_v53 = vpop.f32.mrb[9].mxu0  ;;  %s3393_s30 = smov 8  }
 0x4b1   : > { %v1212_v54 = vpop.f32.mrb[10].mxu0 }
 0x4b2   : > { %v2574_v55 = vpop.f32.mrb[11].mxu0 }
 0x4b7   : > { %v1319_v56 = vpop.f32.mrb[12].mxu0 }
 0x4b8   : > { %1334 = vrot.lane.b32.xlu1 %v1319_v56, %s3359_s1  ;;  %v2585_v57 = vpop.f32.mrb[13].mxu0  ;;  %s3392_s1 = smov 88  }
 0x4b9   : > { %v1322_v58 = vpop.f32.mrb[14].mxu0 }
 0x4ba   : > { %v2586_v59 = vpop.f32.mrb[15].mxu0 }
 0x4fd   : > { %v1327_v60 = vpop.permute.xlu1 %1326 }
 0x4fe   : > { %v1337_v62 = vsel %vm886_vm2, %v988_v42, %v1327_v60 }
 0x522   : > { %v1331_v61 = vpop.permute.xlu0 %1330 }
 0x523   : > { %v1339_v63 = vsel %vm1338_vm8, %v1337_v62, %v1331_v61  ;;  %v1574_v61 = vld [vmem:[%s786_s4] sm:$0x1]  ;;  %s3395_s4 = smov 24  }
 0x524   : > { %vm1575_vm10 = vcmp.gt.f32.partialorder %v1574_v61, 0.5 }
 0x525   : > { %v1576_v62 = vsel %vm1575_vm10, 1, %v2827_v28 }
 0x52a   : > { %v1335_v1 = vpop.permute.xlu1 %1334 }
 0x52b   : > { %v1341_v2 = vsel %vm1340_vm9, %v1339_v63, %v1335_v1  ;;  %v1580_v63 = vrot.slane %v1576_v62, %v870_v27 }
 0x52c   : > { %v1342_v4 = vpack.c.bf16 %v1341_v2, %v1341_v2 }
 0x52d   : > { %vm1581_vm11 = vcmp.eq.s32.totalorder %v1580_v63, 1 }
 0x52e   : > { %2592 = vmatmul.mubr.msk.bf16.vlgmr.msra.gmra.mrb[20].mxu1 %vm817_vm1, %v1342_v4  ;;  %v1582_v1 = vsel %vm1581_vm11, -1e+30, %v2818_v0 }
 0x52f   : > { %2607 = vmatprep.mubr.msk.bf16.mxu1 %vm2819_vm0, %v2818_v0  ;;  %2604 = vmatpush3.bf16.msra.mxu1 %v2727_v3 }
 0x530   : > { %2605 = vmatprep.subr.bf16.mxu1 %v2818_v0 }
 0x533   : > { %2606 = vmatpush3.bf16.msra.mxu1 %v2728_v20 }
 0x534   : > { %2617 = vmatprep.subr.bf16.mxu1 %v2818_v0 }
 0x536   : > { %2608 = vmatmul.mubr.msk.bf16.vlgmr.msra.gmra.mrb[24].mxu1 %vm817_vm1, %v793_v21 }
 0x537   : > { %2619 = vmatprep.mubr.msk.bf16.mxu1 %vm2819_vm0, %v2818_v0 }
 0x601   : > { %v1399_v7 = vpop.f32.mrb[20].mxu1 }
 0x602   : > { %v1400_v8 = vadd.f32 %v2434_v5, %v1399_v7  ;;  %v2593_v9 = vpop.f32.mrb[21].mxu1 }
 0x603   : > { %v1402_v11 = vpop.f32.mrb[22].mxu1 }
 0x604   : > { %v2594_v12 = vpop.f32.mrb[23].mxu1  ;;  %v1406_v13 = vadd.f32 %v1405_v6, %v1400_v8 }
 0x606   : > { %v1409_v14 = vsel %vm817_vm1, %v1406_v13, 0.0 }
 0x607   : > { %1410 = vadd.xlane.f32.xlu0 %v1409_v14 }
 0x609   : > { %v1564_v37 = vpop.f32.mrb[24].mxu1 }
 0x60a   : > { %v1565_v38 = vadd.f32 %v2444_v36, %v1564_v37  ;;  %v2609_v39 = vpop.f32.mrb[25].mxu1 }
 0x60b   : > { %v1567_v40 = vpop.f32.mrb[26].mxu1 }
 0x60c   : > { %v3178_v41 = vpack.c.bf16 %v1565_v38, %v1565_v38  ;;  %v2610_v42 = vpop.f32.mrb[27].mxu1 }
 0x60e   : > { %v1590_v43 = vsel %vm886_vm2, %v3178_v41, 0 }
 0x61d   : > { %1696 = vrot.lane.b32.xlu0 %v3178_v41, %s2821_s2 }
 0x621   : > { %1806 = vrot.lane.b32.xlu0 %v3178_v41, %s2824_s3 }
 0x625   : > { %1916 = vrot.lane.b32.xlu0 %v3178_v41, %s3387_s28 }
 0x694   : > { %v1411_v15 = vpop.xlane.xlu0 %1410 }
 0x695   : > { %v1413_v16 = vmul.f32 0.03125, %v1411_v15 }
 0x697   : > { %v1414_v17 = vsub.f32 %v1406_v13, %v1413_v16 }
 0x698   : > { %v1697_v51 = vpop.permute.xlu0 %1696 }
 0x699   : > { %v1415_v18 = vmul.f32 %v1414_v17, %v1414_v17  ;;  %v1702_v53 = vsel %vm886_vm2, %v1697_v51, 0 }
 0x69b   : > { %v1416_v19 = vsel %vm817_vm1, %v1415_v18, 0.0 }
 0x69c   : > { %1417 = vadd.xlane.f32.xlu1 %v1416_v19  ;;  %v1807_v54 = vpop.permute.xlu0 %1806 }
 0x69d   : > { %v1812_v56 = vsel %vm886_vm2, %v1807_v54, 0 }
 0x6a0   : > { %v1917_v57 = vpop.permute.xlu0 %1916 }
 0x6a1   : > { %v1922_v59 = vsel %vm886_vm2, %v1917_v57, 0 }
 0x729   : > { %v1418_v24 = vpop.xlane.xlu1 %1417 }
 0x72a   : > { %v1419_v25 = vmul.f32 0.03125, %v1418_v24 }
 0x72c   : > { %v1420_v29 = vadd.f32 1e-05, %v1419_v25 }
 0x72e   : > { %2755 = vrsqrt.f32 %v1420_v29 }
 0x738   : > { %v2756_v10 = vpop.eup %2755 }
 0x739   : > { %v1422_v31 = vmul.f32 %v2756_v10, %v1414_v17 }
 0x73b   : > { %v1429_v33 = vmul.f32 %v2438_v30, %v1422_v31 }
 0x73d   : > { %v3168_v34 = vadd.f32 %v2439_v32, %v1429_v33 }
 0x73f   : > { %v1437_v35 = vpack.c.bf16 %v3168_v34, %v3168_v34 }
 0x741   : > { %2600 = vmatmul.mubr.msk.bf16.vlgmr.msra.gmra.mrb[16].mxu0 %vm817_vm1, %v1437_v35 }
 0x742   : > { %2613 = vmatprep.mubr.msk.bf16.mxu0 %vm2819_vm0, %v2818_v0  ;;  %2612 = vmatpush3.bf16.xpose.msra.mxu0 %v1590_v43 }
 0x743   : > { %2623 = vmatprep.subr.bf16.mxu0 %v2818_v0 }
 0x814   : > { %v1498_v45 = vpop.f32.mrb[16].mxu0 }
 0x815   : > { %v1499_v46 = vadd.f32 %v2440_v44, %v1498_v45  ;;  %v2601_v47 = vpop.f32.mrb[17].mxu0 }
 0x816   : > { %v1501_v48 = vpop.f32.mrb[18].mxu0 }
 0x817   : > { %v1583_v49 = vmul.f32 0.35355338, %v1499_v46  ;;  %v2602_v50 = vpop.f32.mrb[19].mxu0 }
 0x819   : > { %v1584_v52 = vpack.c.bf16 %v1583_v49, %v1583_v49 }
 0x81b   : > { %1694 = vrot.lane.b32.xlu1 %v1584_v52, %s2821_s2  ;;  %2614 = vmatmul.mubr.msk.bf16.vlgmr.msra.gmra.mrb[20].mxu0 %vm886_vm2, %v1584_v52 }
 0x81c   : > { %2624 = vmatpush3.bf16.xpose.msra.mxu0 %v1702_v53  ;;  %2625 = vmatprep.mubr.msk.bf16.mxu0 %vm2819_vm0, %v2818_v0 }
 0x81d   : > { %2635 = vmatprep.subr.bf16.mxu0 %v2818_v0 }
 0x81f   : > { %1804 = vrot.lane.b32.xlu1 %v1584_v52, %s2824_s3 }
 0x823   : > { %1914 = vrot.lane.b32.xlu1 %v1584_v52, %s3387_s28  ;;  %s790_s28 = scalar_lea.vmem %s3351_s24, %s3016_s27 }
 0x88d   : > { %v1695_v55 = vpop.permute.xlu1 %1694 }
 0x88e   : > { %2626 = vmatmul.mubr.msk.bf16.vlgmr.msra.gmra.mrb[24].mxu0 %vm886_vm2, %v1695_v55 }
 0x88f   : > { %2636 = vmatpush3.bf16.xpose.msra.mxu0 %v1812_v56  ;;  %2637 = vmatprep.mubr.msk.bf16.mxu0 %vm2819_vm0, %v2818_v0 }
 0x890   : > { %2647 = vmatprep.subr.bf16.mxu0 %v2818_v0 }
 0x891   : > { %v1805_v58 = vpop.permute.xlu1 %1804 }
 0x895   : > { %v1915_v60 = vpop.permute.xlu1 %1914 }
 0x896   : > { %2638 = vmatmul.mubr.msk.bf16.vlgmr.msra.gmra.mrb[28].mxu0 %vm886_vm2, %v1805_v58 }
 0x897   : > { %2648 = vmatpush3.bf16.xpose.msra.mxu0 %v1922_v59  ;;  %2649 = vmatprep.mubr.msk.bf16.mxu0 %vm2819_vm0, %v2818_v0 }
 0x898   : > { %2659 = vmatprep.subr.bf16.mxu0 %v2818_v0 }
 0x89e   : > { %2650 = vmatmul.mubr.msk.bf16.vlgmr.msra.gmra.mrb[32].mxu0 %vm886_vm2, %v1915_v60 }
 0x89f   : > { %2663 = vmatprep.mubr.msk.bf16.mxu0 %vm2819_vm0, %v2818_v0 }
 0x8ee   : > { %v1626_v2 = vpop.f32.mrb[20].mxu0 }
 0x8ef   : > { %v1627_v4 = vadd.f32 %v1626_v2, %v1582_v1  ;;  %v2615_v5 = vpop.f32.mrb[21].mxu0 }
 0x8f0   : > { %v1629_v6 = vpop.f32.mrb[22].mxu0 }
 0x8f1   : > { %v2616_v7 = vpop.f32.mrb[23].mxu0  ;;  %v1632_v8 = vsel %vm886_vm2, %v1627_v4, -inf }
 0x8f2   : > { %1633 = vmax.xlane.f32.xlu0 %v1632_v8 }
 0x961   : > { %v1738_v9 = vpop.f32.mrb[24].mxu0 }
 0x962   : > { %v1739_v11 = vadd.f32 %v1738_v9, %v1582_v1  ;;  %v2627_v12 = vpop.f32.mrb[25].mxu0 }
 0x963   : > { %v1741_v13 = vpop.f32.mrb[26].mxu0 }
 0x964   : > { %v2628_v14 = vpop.f32.mrb[27].mxu0  ;;  %v1744_v28 = vsel %vm886_vm2, %v1739_v11, -inf }
 0x965   : > { %1745 = vmax.xlane.f32.xlu1 %v1744_v28  ;;  %v2731_v14 = vld [vmem:[%s3341_s14] sm:$0xff]  }
 0x966   : > { %2660 = vmatpush3.bf16.msra.mxu0 %v2731_v14 }
 0x967   : > { %2661 = vmatprep.subr.bf16.mxu0 %v2818_v0 }
 0x969   : > { %v1848_v26 = vpop.f32.mrb[28].mxu0 }
 0x96a   : > { %v1849_v27 = vadd.f32 %v1848_v26, %v1582_v1  ;;  %v2639_v15 = vpop.f32.mrb[29].mxu0 }
 0x96b   : > { %v1851_v16 = vpop.f32.mrb[30].mxu0 }
 0x96c   : > { %v2640_v17 = vpop.f32.mrb[31].mxu0  ;;  %v1854_v18 = vsel %vm886_vm2, %v1849_v27, -inf  ;;  %v2732_v16 = vld [vmem:[%s3341_s14 + $0x8] sm:$0xff]  }
 0x96d   : > { %1855 = vmax.xlane.f32.xlu0 %v1854_v18  ;;  %2662 = vmatpush3.bf16.msra.mxu0 %v2732_v16 }
 0x96e   : > { %2675 = vmatprep.subr.bf16.mxu0 %v2818_v0 }
 0x971   : > { %v1958_v19 = vpop.f32.mrb[32].mxu0 }
 0x972   : > { %v1959_v3 = vadd.f32 %v1958_v19, %v1582_v1  ;;  %v2651_v20 = vpop.f32.mrb[33].mxu0 }
 0x973   : > { %v1961_v21 = vpop.f32.mrb[34].mxu0 }
 0x974   : > { %v2652_v22 = vpop.f32.mrb[35].mxu0  ;;  %v1964_v23 = vsel %vm886_vm2, %v1959_v3, -inf }
 0x975   : > { %1965 = vmax.xlane.f32.xlu0 %v1964_v23 }
 0x97f   : > { %v1634_v24 = vpop.xlane.xlu0 %1633 }
 0x980   : > { %v1635_v25 = vsub.f32 %v1627_v4, %v1634_v24 }
 0x982   : > { %v1636_v29 = vmul.f32 1.442695, %v1635_v25 }
 0x984   : > { %2757 = vpow2.f32 %v1636_v29 }
 0x98e   : > { %v2758_v10 = vpop.eup %2757 }
 0x98f   : > { %v1638_v30 = vsel %vm886_vm2, %v2758_v10, 0.0 }
 0x990   : > { %1639 = vadd.xlane.f32.xlu1 %v1638_v30 }
 0x9a1   : > { %1645 = vrot.lane.b32.xlu1 %v3178_v41, %s3389_s26 }
 0x9f2   : > { %v1746_v31 = vpop.xlane.xlu1 %1745 }
 0x9f3   : > { %v1747_v32 = vsub.f32 %v1739_v11, %v1746_v31 }
 0x9f5   : > { %v1748_v33 = vmul.f32 1.442695, %v1747_v32 }
 0x9f7   : > { %2759 = vpow2.f32 %v1748_v33  ;;  %v2456_v33 = vld [vmem:[%s3342_s15] ss:$0 sm:$0xff] }
 0x9fa   : > { %v1856_v35 = vpop.xlane.xlu0 %1855 }
 0x9fb   : > { %v1857_v36 = vsub.f32 %v1849_v27, %v1856_v35 }
 0x9fd   : > { %v1858_v37 = vmul.f32 1.442695, %v1857_v36 }
 0x9ff   : > { %2761 = vpow2.f32 %v1858_v37 }
 0xa01   : > { %v2760_v38 = vpop.eup %2759 }
 0xa02   : > { %v1966_v39 = vpop.xlane.xlu0 %1965  ;;  %v1750_v40 = vsel %vm886_vm2, %v2760_v38, 0.0 }
 0xa03   : > { %v1967_v42 = vsub.f32 %v1959_v3, %v1966_v39  ;;  %1751 = vadd.xlane.f32.xlu0 %v1750_v40 }
 0xa05   : > { %v1968_v43 = vmul.f32 1.442695, %v1967_v42 }
 0xa07   : > { %2763 = vpow2.f32 %v1968_v43 }
 0xa09   : > { %v2762_v44 = vpop.eup %2761 }
 0xa0a   : > { %v1860_v45 = vsel %vm886_vm2, %v2762_v44, 0.0 }
 0xa0b   : > { %1861 = vadd.xlane.f32.xlu1 %v1860_v45 }
 0xa11   : > { %v2764_v46 = vpop.eup %2763 }
 0xa12   : > { %v1970_v47 = vsel %vm886_vm2, %v2764_v46, 0.0 }
 0xa13   : > { %1971 = vadd.xlane.f32.xlu0 %v1970_v47 }
 0xa1c   : > { %1866 = vrot.lane.b32.xlu1 %v3178_v41, %s3390_s7 }
 0xa1d   : > { %v1640_v48 = vpop.xlane.xlu1 %1639 }
 0xa1e   : > { %2765 = vrcp.f32 %v1640_v48  ;;  %v2733_v48 = vld [vmem:[%s3345_s18] sm:$0xff]  }
 0xa20   : > { %1976 = vrot.lane.b32.xlu1 %v3178_v41, %s3391_s25 }
 0xa21   : > { %v1646_v49 = vpop.permute.xlu1 %1645 }
 0xa22   : > { %v1651_v50 = vsel %vm950_vm7, %v1646_v49, 0  ;;  %v2734_v49 = vld [vmem:[%s3345_s18 + $0x8] sm:$0xff]  }
 0xa23   : > { %2618 = vmatpush3.bf16.msra.mxu1 %v1651_v50  ;;  %v2736_v50 = vld [vmem:[%s3347_s20 + $0x8] sm:$0xff]  }
 0xa24   : > { %2629 = vmatprep.subr.bf16.mxu1 %v2818_v0 }
 0xa28   : > { %v2766_v51 = vpop.eup %2765 }
 0xa29   : > { %v1642_v52 = vmul.f32 %v2766_v51, %v2758_v10  ;;  %1756 = vrot.lane.b32.xlu0 %v3178_v41, %s3392_s1 }
 0xa2b   : > { %v1643_v53 = vpack.c.bf16 %v1642_v52, %v1642_v52 }
 0xa2d   : > { %2620 = vmatmul.mubr.msk.bf16.vlgmr.msra.gmra.mrb[28].mxu1 %vm886_vm2, %v1643_v53 }
 0xa2e   : > { %2631 = vmatprep.mubr.msk.bf16.mxu1 %vm2819_vm0, %v2818_v0 }
 0xa90   : > { %v1752_v54 = vpop.xlane.xlu0 %1751 }
 0xa91   : > { %2767 = vrcp.f32 %v1752_v54 }
 0xa98   : > { %v1862_v55 = vpop.xlane.xlu1 %1861 }
 0xa99   : > { %2769 = vrcp.f32 %v1862_v55  ;;  %v2460_v55 = vld [vmem:[%s3343_s16] ss:$0 sm:$0xff] }
 0xa9b   : > { %v2768_v56 = vpop.eup %2767 }
 0xa9c   : > { %v1754_v58 = vmul.f32 %v2768_v56, %v2760_v38  ;;  %v1867_v61 = vpop.permute.xlu1 %1866 }
 0xa9d   : > { %v1872_v63 = vsel %vm950_vm7, %v1867_v61, 0  ;;  %v2737_v61 = vld [vmem:[%s3347_s20 + $0x10] sm:$0xff]  }
 0xa9e   : > { %v1755_v41 = vpack.c.bf16 %v1754_v58, %v1754_v58 }
 0xaa0   : > { %v1972_v57 = vpop.xlane.xlu0 %1971  ;;  %v1977_v2 = vpop.permute.xlu1 %1976 }
 0xaa1   : > { %2771 = vrcp.f32 %v1972_v57  ;;  %v1982_v6 = vsel %vm950_vm7, %v1977_v2, 0  ;;  %v2461_v57 = vld [vmem:[%s3344_s17] ss:$0 sm:$0xff] }
 0xaa3   : > { %v2770_v62 = vpop.eup %2769 }
 0xaa4   : > { %v1757_v59 = vpop.permute.xlu0 %1756  ;;  %v1864_v1 = vmul.f32 %v2770_v62, %v2762_v44  ;;  %v2462_v62 = vld [vmem:[%s3346_s19] ss:$0 sm:$0xff] }
 0xaa5   : > { %v1762_v60 = vsel %vm950_vm7, %v1757_v59, 0 }
 0xaa6   : > { %2630 = vmatpush3.bf16.msra.mxu1 %v1762_v60  ;;  %v1865_v4 = vpack.c.bf16 %v1864_v1, %v1864_v1 }
 0xaa7   : > { %2641 = vmatprep.subr.bf16.mxu1 %v2818_v0 }
 0xaa9   : > { %2632 = vmatmul.mubr.msk.bf16.vlgmr.msra.gmra.mrb[32].mxu1 %vm886_vm2, %v1755_v41  ;;  %v2738_v41 = vld [vmem:[%s3347_s20 + $0x18] sm:$0xff]  }
 0xaaa   : > { %2642 = vmatpush3.bf16.msra.mxu1 %v1872_v63  ;;  %2643 = vmatprep.mubr.msk.bf16.mxu1 %vm2819_vm0, %v2818_v0 }
 0xaab   : > { %2653 = vmatprep.subr.bf16.mxu1 %v2818_v0  ;;  %v2772_v5 = vpop.eup %2771 }
 0xaac   : > { %v1974_v7 = vmul.f32 %v2772_v5, %v2764_v46 }
 0xaae   : > { %v1975_v8 = vpack.c.bf16 %v1974_v7, %v1974_v7 }
 0xab1   : > { %2644 = vmatmul.mubr.msk.bf16.vlgmr.msra.gmra.mrb[36].mxu1 %vm886_vm2, %v1865_v4 }
 0xab2   : > { %2654 = vmatpush3.bf16.msra.mxu1 %v1982_v6  ;;  %2655 = vmatprep.mubr.msk.bf16.mxu1 %vm2819_vm0, %v2818_v0 }
 0xab3   : > { %2667 = vmatprep.subr.bf16.mxu1 %v2818_v0 }
 0xab9   : > { %2656 = vmatmul.mubr.msk.bf16.vlgmr.msra.gmra.mrb[40].mxu1 %vm886_vm2, %v1975_v8 }
 0xaba   : > { %2671 = vmatprep.mubr.msk.bf16.mxu1 %vm2819_vm0, %v2818_v0  ;;  %2668 = vmatpush3.bf16.msra.mxu1 %v2733_v48 }
 0xabb   : > { %2669 = vmatprep.subr.bf16.mxu1 %v2818_v0 }
 0xabe   : > { %2670 = vmatpush3.bf16.msra.mxu1 %v2734_v49 }
 0xb00   : > { %v1687_v9 = vpop.f32.mrb[28].mxu1 }
 0xb01   : > { %v2621_v11 = vpop.f32.mrb[29].mxu1 }
 0xb02   : > { %v1690_v12 = vpop.f32.mrb[30].mxu1 }
 0xb03   : > { %v2622_v13 = vpop.f32.mrb[31].mxu1 }
 0xb7c   : > { %v1798_v28 = vpop.f32.mrb[32].mxu1 }
 0xb7d   : > { %2025 = vrot.lane.b32.xlu0 %v1798_v28, %s3393_s30  ;;  %v2633_v26 = vpop.f32.mrb[33].mxu1 }
 0xb7e   : > { %v1801_v27 = vpop.f32.mrb[34].mxu1 }
 0xb7f   : > { %v2634_v15 = vpop.f32.mrb[35].mxu1 }
 0xb84   : > { %v1908_v17 = vpop.f32.mrb[36].mxu1 }
 0xb85   : > { %2029 = vrot.lane.b32.xlu1 %v1908_v17, %s3394_s8  ;;  %v2645_v18 = vpop.f32.mrb[37].mxu1 }
 0xb86   : > { %v1911_v19 = vpop.f32.mrb[38].mxu1 }
 0xb87   : > { %v2646_v3 = vpop.f32.mrb[39].mxu1 }
 0xb8c   : > { %v2018_v20 = vpop.f32.mrb[40].mxu1 }
 0xb8d   : > { %2033 = vrot.lane.b32.xlu0 %v2018_v20, %s3395_s4  ;;  %v2657_v21 = vpop.f32.mrb[41].mxu1 }
 0xb8e   : > { %v2021_v22 = vpop.f32.mrb[42].mxu1  ;;  %v2472_v21 = vld [vmem:[%s3349_s22] ss:$0 sm:$0xff] }
 0xb8f   : > { %v2658_v23 = vpop.f32.mrb[43].mxu1 }
 0xb90   : > { %v2473_v23 = vld [vmem:[#allocation2] ss:$0 sm:$0xff] }
 0xbef   : > { %v2026_v24 = vpop.permute.xlu0 %2025 }
 0xbf0   : > { %v2036_v29 = vsel %vm886_vm2, %v1687_v9, %v2026_v24 }
 0xbf7   : > { %v2030_v25 = vpop.permute.xlu1 %2029 }
 0xbf8   : > { %v2037_v10 = vsel %vm1338_vm8, %v2036_v29, %v2030_v25 }
 0xbff   : > { %v2034_v30 = vpop.permute.xlu0 %2033 }
 0xc00   : > { %v2038_v31 = vsel %vm1340_vm9, %v2037_v10, %v2034_v30 }
 0xc01   : > { %v2039_v32 = vpack.c.bf16 %v2038_v31, %v2038_v31 }
 0xc03   : > { %2664 = vmatmul.mubr.msk.bf16.vlgmr.msra.gmra.mrb[36].mxu0 %vm817_vm1, %v2039_v32 }
 0xc04   : > { %2683 = vmatprep.mubr.msk.bf16.mxu0 %vm2819_vm0, %v2818_v0 }
 0xcd6   : > { %v2096_v35 = vpop.f32.mrb[36].mxu0 }
 0xcd7   : > { %v2097_v36 = vadd.f32 %v2456_v33, %v2096_v35  ;;  %v2665_v37 = vpop.f32.mrb[37].mxu0 }
 0xcd8   : > { %v2099_v38 = vpop.f32.mrb[38].mxu0 }
 0xcd9   : > { %v2666_v39 = vpop.f32.mrb[39].mxu0  ;;  %v2102_v40 = vadd.f32 %v2097_v36, %v3168_v34  ;;  %v2735_v34 = vld [vmem:[%s3347_s20] sm:$0xff]  }
 0xcda   : > { %2676 = vmatpush3.bf16.msra.mxu0 %v2735_v34 }
 0xcdb   : > { %v2105_v42 = vsel %vm817_vm1, %v2102_v40, 0.0  ;;  %2677 = vmatprep.subr.bf16.mxu0 %v2818_v0 }
 0xcdc   : > { %2106 = vadd.xlane.f32.xlu1 %v2105_v42 }
 0xcde   : > { %2678 = vmatpush3.bf16.msra.mxu0 %v2736_v50 }
 0xcdf   : > { %2679 = vmatprep.subr.bf16.mxu0 %v2818_v0 }
 0xce2   : > { %2680 = vmatpush3.bf16.msra.mxu0 %v2737_v61 }
 0xce3   : > { %2681 = vmatprep.subr.bf16.mxu0 %v2818_v0  ;;  %v2466_v0 = vld [vmem:[%s3348_s21] ss:$0 sm:$0xff] }
 0xce6   : > { %2682 = vmatpush3.bf16.msra.mxu0 %v2738_v41 }
 0xd69   : > { %v2107_v43 = vpop.xlane.xlu1 %2106 }
 0xd6a   : > { %v2108_v44 = vmul.f32 0.03125, %v2107_v43 }
 0xd6c   : > { %v2109_v45 = vsub.f32 %v2102_v40, %v2108_v44 }
 0xd6e   : > { %v2110_v46 = vmul.f32 %v2109_v45, %v2109_v45 }
 0xd70   : > { %v2111_v47 = vsel %vm817_vm1, %v2110_v46, 0.0 }
 0xd71   : > { %2112 = vadd.xlane.f32.xlu0 %v2111_v47 }
 0xdfe   : > { %v2113_v51 = vpop.xlane.xlu0 %2112 }
 0xdff   : > { %v2114_v52 = vmul.f32 0.03125, %v2113_v51 }
 0xe01   : > { %v2115_v53 = vadd.f32 1e-05, %v2114_v52 }
 0xe03   : > { %2773 = vrsqrt.f32 %v2115_v53 }
 0xe0d   : > { %v2774_v54 = vpop.eup %2773 }
 0xe0e   : > { %v2117_v56 = vmul.f32 %v2774_v54, %v2109_v45 }
 0xe10   : > { %v2124_v58 = vmul.f32 %v2460_v55, %v2117_v56 }
 0xe12   : > { %v2131_v59 = vadd.f32 %v2461_v57, %v2124_v58 }
 0xe14   : > { %v2132_v60 = vpack.c.bf16 %v2131_v59, %v2131_v59 }
 0xe16   : > { %2672 = vmatmul.mubr.msk.bf16.vlgmr.msra.gmra.mrb[44].mxu1 %vm817_vm1, %v2132_v60 }
 0xee9   : > { %v2193_v63 = vpop.f32.mrb[44].mxu1 }
 0xeea   : > { %v2194_v1 = vadd.f32 %v2462_v62, %v2193_v63  ;;  %v2673_v2 = vpop.f32.mrb[45].mxu1 }
 0xeeb   : > { %v2196_v4 = vpop.f32.mrb[46].mxu1 }
 0xeec   : > { %v2199_v5 = vmax.f32 %v2194_v1, 0.0  ;;  %v2674_v6 = vpop.f32.mrb[47].mxu1 }
 0xeee   : > { %v2200_v7 = vpack.c.bf16 %v2199_v5, %v2199_v5 }
 0xef0   : > { %2684 = vmatmul.mubr.msk.bf16.vlgmr.msra.gmra.mrb[40].mxu0 %vm2240_vm12, %v2200_v7 }
 0xfc3   : > { %v2278_v8 = vpop.f32.mrb[40].mxu0 }
 0xfc4   : > { %v2279_v9 = vadd.f32 %v2466_v0, %v2278_v8  ;;  %v2685_v11 = vpop.f32.mrb[41].mxu0 }
 0xfc5   : > { %v2281_v12 = vpop.f32.mrb[42].mxu0 }
 0xfc6   : > { %v2686_v13 = vpop.f32.mrb[43].mxu0  ;;  %v2284_v14 = vadd.f32 %v2279_v9, %v2131_v59 }
 0xfc8   : > { %v2287_v28 = vsel %vm817_vm1, %v2284_v14, 0.0 }
 0xfc9   : > { %2288 = vadd.xlane.f32.xlu0 %v2287_v28 }
0x1056   : > { %v2289_v26 = vpop.xlane.xlu0 %2288 }
0x1057   : > { %v2290_v27 = vmul.f32 0.03125, %v2289_v26 }
0x1059   : > { %v2291_v15 = vsub.f32 %v2284_v14, %v2290_v27 }
0x105b   : > { %v2292_v16 = vmul.f32 %v2291_v15, %v2291_v15 }
0x105d   : > { %v2293_v17 = vsel %vm817_vm1, %v2292_v16, 0.0 }
0x105e   : > { %2294 = vadd.xlane.f32.xlu1 %v2293_v17 }
0x10eb   : > { %v2295_v18 = vpop.xlane.xlu1 %2294 }
0x10ec   : > { %v2296_v19 = vmul.f32 0.03125, %v2295_v18 }
0x10ee   : > { %v2297_v3 = vadd.f32 1e-05, %v2296_v19 }
0x10f0   : > { %2775 = vrsqrt.f32 %v2297_v3 }
0x10fa   : > { %v2776_v20 = vpop.eup %2775 }
0x10fb   : > { %v2299_v22 = vmul.f32 %v2776_v20, %v2291_v15 }
0x10fd   : > { %v2306_v24 = vmul.f32 %v2472_v21, %v2299_v22 }
0x10ff   : > { %v2313_v25 = vadd.f32 %v2473_v23, %v2306_v24 }
0x1101   : > { %v2314_v29 = vpack.c.bf16 %v2313_v25, %v2313_v25 }
0x1103   : > { %2316 = vst.msk [vmem:[%s790_s28] sm:$0xf] %vm2315_vm13, %v2314_v29 }
0x1104 PF: > { %s35_s5 = sadd.s32 1, %s2815_s5  }
0x1105   : > { %p32_p2 = scmp.ge.s32.totalorder %s35_s5, 4  }
0x1107   :  { %34 = sbr.rel (!%p32_p2) target bundleno = 11 (0xb), region = 160 }
0x110e   :  { %2336 = vsyncpa [#allocation3], 1 }
0x110f   :  { %2338 = vsyncpa [#allocation3 + $0x1], 1 }

// kernel: transformer_forward.9
= control target key start
LH: loop header
LB: loop body
LE: loop exit
PB: predicated region body
PF: predicated region fallthrough
CT: control target
= control target key end

     0   :  { %s3220_s0 = inlined_call_operand.vmem [shape: bf16[2,8,32], index: 0, kind: input, shape index: {}, may-alias: {0,24}]   ;;  %s3221_s1 = inlined_call_operand.vmem [shape: bf16[2,8,32], index: 1, kind: input, shape index: {}]   ;;  %s3222_s2 = inlined_call_operand.vmem [shape: f32[2,1,8], index: 2, kind: input, shape index: {}]   ;;  %s3223_s3 = inlined_call_operand.vmem [shape: f32[2,1,8], index: 3, kind: input, shape index: {}]   ;;  %s3224_s4 = inlined_call_operand.vmem [shape: bf16[32,96], index: 4, kind: input, shape index: {}]   ;;  %s3225_s5 = inlined_call_operand.vmem [shape: f32[1,96], index: 5, kind: input, shape index: {}]   ;;  %s3226_s6 = inlined_call_operand.vmem [shape: bf16[32,32], index: 6, kind: input, shape index: {}]   ;;  %s3227_s7 = inlined_call_operand.vmem [shape: f32[1,32], index: 7, kind: input, shape index: {}]   ;;  %s3228_s8 = inlined_call_operand.vmem [shape: f32[1,32], index: 8, kind: input, shape index: {}]   ;;  %s3229_s9 = inlined_call_operand.vmem [shape: f32[1,32], index: 9, kind: input, shape index: {}]   ;;  %s3230_s10 = inlined_call_operand.vmem [shape: bf16[32,32], index: 10, kind: input, shape index: {}]   ;;  %s3231_s11 = inlined_call_operand.vmem [shape: f32[1,32], index: 11, kind: input, shape index: {}]   ;;  %s3232_s12 = inlined_call_operand.vmem [shape: bf16[32,64], index: 12, kind: input, shape index: {}]   ;;  %s3233_s13 = inlined_call_operand.vmem [shape: f32[1,64], index: 13, kind: input, shape index: {}]   ;;  %s3234_s14 = inlined_call_operand.vmem [shape: bf16[32,32], index: 14, kind: input, shape index: {}]   ;;  %s3235_s15 = inlined_call_operand.vmem [shape: f32[1,32], index: 15, kind: input, shape index: {}]   ;;  %s3236_s16 = inlined_call_operand.vmem [shape: f32[1,32], index: 16, kind: input, shape index: {}]   ;;  %s3237_s17 = inlined_call_operand.vmem [shape: f32[1,32], index: 17, kind: input, shape index: {}]   ;;  %s3238_s18 = inlined_call_operand.vmem [shape: bf16[32,64], index: 18, kind: input, shape index: {}]   ;;  %s3239_s19 = inlined_call_operand.vmem [shape: f32[1,64], index: 19, kind: input, shape index: {}]   ;;  %s3240_s20 = inlined_call_operand.vmem [shape: bf16[64,32], index: 20, kind: input, shape index: {}]   ;;  %s3241_s21 = inlined_call_operand.vmem [shape: f32[1,32], index: 21, kind: input, shape index: {}]   ;;  %s3242_s22 = inlined_call_operand.vmem [shape: f32[1,32], index: 22, kind: input, shape index: {}]   ;;  %s3243_s23 = inlined_call_operand.vmem [shape: f32[1,32], index: 23, kind: input, shape index: {}]   ;;  %s3244_s24 = inlined_call_operand.vmem [shape: bf16[2,8,32], index: 24, kind: output, shape index: {}, may-alias: {0,24}]  }
   0x1   :  { %3256 = sst [smem:[#allocation2_spill]] %s3220_s0 }
   0x2   :  { %3257 = sst [smem:[#allocation3_spill]] %s3221_s1 }
   0x3   :  { %3258 = sst [smem:[#allocation4_spill]] %s3222_s2 }
   0x4   :  { %3259 = sst [smem:[#allocation5_spill]] %s3223_s3 }
   0x5   :  { %3260 = sst [smem:[#allocation6_spill]] %s3224_s4 }
   0x6   :  { %3261 = sst [smem:[#allocation7_spill]] %s3225_s5  ;;  %s2889_s5 = smov 0  }
   0x7   :  { %3262 = sst [smem:[#allocation8_spill]] %s3226_s6 }
   0x8   :  { %3263 = sst [smem:[#allocation9_spill]] %s3227_s7 }
   0x9   :  { %3264 = sst [smem:[#allocation10_spill]] %s3228_s8 }
   0xa LB: > { %s2387_s26 = sadd.s32 4294967295, %s2745_s5   ;;  %p2391_p0 = scmp.ge.s32.totalorder %s2745_s5, 1  ;;  %s2745_s5 = sphi %s2889_s5, %s34_s5  }
   0xb   : > { %p686_p1 = scmp.lt.s32.totalorder %s2745_s5, 3 }
   0xd   : > { %p687_p2 = pnand %p2391_p0, %p686_p1 }
   0xe   : > { %s3265_s6 = sld [smem:[#allocation6_spill]] (!%p687_p2)  ;;  %v2747_v1 = vmov (!%p687_p2), 0.0   ;;  %vm2748_vm0 = vmmov (!%p687_p2), 0   ;;  %p760_p3 = scmp.lt.s32.totalorder (!%p687_p2), %s2387_s26, 1  ;;  %vm804_vm1 = vcmask (!%p687_p2), 261120   ;;  %vm873_vm2 = vcmask (!%p687_p2), 64512  }
   0xf   : > { %690 = sbr.rel (%p687_p2) target bundleno = 4319 (0x10df), region = 116  ;;  %2504 = vmatprep.subr.bf16.mxu1 (!%p687_p2), %v2747_v1  ;;  %2518 = vmatprep.subr.bf16.mxu0 (!%p687_p2), %v2747_v1  ;;  %s3266_s3 = sld [smem:[#allocation2_spill]] (!%p687_p2)  ;;  %v855_v24 = vlaneseq (!%p687_p2)  ;;  %v2756_v28 = vmov (!%p687_p2), 0   ;;  %vm937_vm7 = vcmask (!%p687_p2), 1043456   ;;  %vm1325_vm8 = vcmask (!%p687_p2), 130048  }
  0x10   : > { %2508 = vmatprep.mubr.msk.bf16.mxu1 (!%p687_p2), %vm2748_vm0, %v2747_v1  ;;  %2520 = vmatprep.mubr.msk.bf16.mxu0 (!%p687_p2), %vm2748_vm0, %v2747_v1  ;;  %s3267_s1 = sld [smem:[#allocation7_spill]] (!%p687_p2)  ;;  %s3253_s27 = smov (!%p687_p2), 96   ;;  %vm1327_vm9 = vcmask (!%p687_p2), 195584   ;;  %vm2227_vm12 = vcmask (!%p687_p2), 523264   ;;  %vm2302_vm13 = vcmask (!%p687_p2), 257024  }
  0x11   : > { %s2750_s28 = smov (!%p687_p2), 120   ;;  %s3247_s2 = smov (!%p687_p2), 88   ;;  %v2966_v26 = vshrl.u32 (!%p687_p2), %v855_v24, 7  ;;  %v863_v31 = vand.u32 (!%p687_p2), 127, %v855_v24 }
  0x12   : > { %s3249_s29 = smov (!%p687_p2), 80   ;;  %s2753_s7 = smov (!%p687_p2), 112  }
  0x13   : > { %s3248_s30 = smov (!%p687_p2), 72   ;;  %s3268_s4 = sld [smem:[#allocation4_spill]] (!%p687_p2)  ;;  %v857_v27 = vsub.s32 (!%p687_p2), 0, %v2966_v26  ;;  %vm864_vm5 = vcmp.gt.s32.totalorder (!%p687_p2), %v863_v31, %v2966_v26 }
  0x14   : > { %v2685_v0 = vld [vmem:[%s3265_s6] sm:$0xff] (!%p687_p2)   ;;  %v2686_v2 = vld [vmem:[%s3265_s6 + $0x8] sm:$0xff] (!%p687_p2)   ;;  %s2758_s8 = smov (!%p687_p2), 64  }
  0x15   : > { %2505 = vmatpush3.bf16.msra.mxu1 (!%p687_p2), %v2685_v0 }
  0x16   : > { %2506 = vmatprep.subr.bf16.mxu1 %v2747_v1  ;;  %s3283_s26 = smov (!%p760_p3, %s2387_s26), 1  ;;  %v2395_v4 = vld [vmem:[%s3267_s1] ss:$0 sm:$0xff] }
  0x17   : > { %s2913_s0 = sshll.u32 %s3283_s26, 2 }
  0x18   : > { %s763_s25 = scalar_lea.vmem %s3266_s3, %s2913_s0  ;;  %s3254_s3 = smov 104  }
  0x19   : > { %2507 = vmatpush3.bf16.msra.mxu1 %v2686_v2  ;;  %v2920_v3 = vld [vmem:[%s763_s25] sm:$0xf]  ;;  %s770_s1 = scalar_lea.vmem %s3268_s4, %s3283_s26  ;;  %s2757_s25 = smov 56  }
  0x1a   : > { %2512 = vmatprep.subr.bf16.mxu1 %v2747_v1  ;;  %v852_v25 = vld [vmem:[%s770_s1] sm:$0x1]  ;;  %s2759_s4 = smov 40   ;;  %s2760_s1 = smov 48  }
  0x1b   : > { %vm853_vm3 = vcmp.gt.f32.partialorder %v852_v25, 0.5 }
  0x1c   : > { %2509 = vmatmul.mubr.msk.bf16.vlgmr.msra.gmra.mrb[0].mxu1 %vm804_vm1, %v2920_v3  ;;  %v854_v29 = vsel %vm853_vm3, 1, %v2756_v28 }
  0x1d   : > { %2514 = vmatprep.mubr.msk.bf16.mxu1 %vm2748_vm0, %v2747_v1  ;;  %v858_v30 = vrot.slane %v854_v29, %v857_v27 }
  0x1f   : > { %vm859_vm4 = vcmp.eq.s32.totalorder %v858_v30, 1 }
  0x20   : > { %vm865_vm6 = vmor %vm859_vm4, %vm864_vm5 }
  0x21   : > { %v866_v32 = vsel %vm865_vm6, -1e+30, %v2747_v1 }
  0xef   : > { %v842_v5 = vpop.f32.mrb[0].mxu1 }
  0xf0   : > { %v843_v6 = vadd.f32 %v2395_v4, %v842_v5  ;;  %v2510_v7 = vpop.f32.mrb[1].mxu1 }
  0xf1   : > { %v845_v8 = vpop.f32.mrb[2].mxu1 }
  0xf2   : > { %v867_v9 = vmul.f32 0.35355338, %v843_v6  ;;  %v2929_v10 = vpack.c.bf16 %v843_v6, %v843_v6  ;;  %v2511_v11 = vpop.f32.mrb[3].mxu1 }
  0xf4   : > { %v868_v12 = vpack.c.bf16 %v867_v9, %v867_v9  ;;  %871 = vrot.lane.b32.xlu0 %v2929_v10, %s3253_s27  ;;  %s3271_s27 = sld [smem:[#allocation3_spill]] }
  0xf6   : > { %982 = vrot.lane.b32.xlu1 %v868_v12, %s2750_s28 }
  0xf8   : > { %984 = vrot.lane.b32.xlu0 %v2929_v10, %s3247_s2  ;;  %s3276_s2 = smov 80  }
  0xfa   : > { %1094 = vrot.lane.b32.xlu1 %v2929_v10, %s3249_s29  ;;  %s3251_s29 = smov 16  }
  0xfc   : > { %1092 = vrot.lane.b32.xlu0 %v868_v12, %s2753_s7 }
  0xfe   : > { %1204 = vrot.lane.b32.xlu1 %v2929_v10, %s3248_s30  ;;  %s3277_s30 = smov 72  }
 0x100   : > { %1202 = vrot.lane.b32.xlu0 %v868_v12, %s3254_s3  ;;  %s767_s3 = scalar_lea.vmem %s3271_s27, %s2913_s0 }
 0x166   : > { %v872_v13 = vpop.permute.xlu0 %871 }
 0x167   : > { %v878_v14 = vsel %vm873_vm2, %v872_v13, 0 }
 0x168   : > { %2513 = vmatpush3.bf16.xpose.msra.mxu1 %v878_v14  ;;  %v983_v16 = vpop.permute.xlu1 %982 }
 0x169   : > { %2524 = vmatprep.subr.bf16.mxu1 %v2747_v1 }
 0x16a   : > { %v985_v15 = vpop.permute.xlu0 %984 }
 0x16b   : > { %v990_v17 = vsel %vm873_vm2, %v985_v15, 0 }
 0x16c   : > { %v1095_v18 = vpop.permute.xlu1 %1094 }
 0x16d   : > { %v1100_v19 = vsel %vm873_vm2, %v1095_v18, 0 }
 0x16e   : > { %v1093_v21 = vpop.permute.xlu0 %1092 }
 0x16f   : > { %2515 = vmatmul.mubr.msk.bf16.vlgmr.msra.gmra.mrb[4].mxu1 %vm873_vm2, %v868_v12 }
 0x170   : > { %2525 = vmatpush3.bf16.xpose.msra.mxu1 %v990_v17  ;;  %2526 = vmatprep.mubr.msk.bf16.mxu1 %vm2748_vm0, %v2747_v1  ;;  %v1205_v20 = vpop.permute.xlu1 %1204 }
 0x171   : > { %2536 = vmatprep.subr.bf16.mxu1 %v2747_v1  ;;  %v1210_v22 = vsel %vm873_vm2, %v1205_v20, 0 }
 0x172   : > { %v1203_v23 = vpop.permute.xlu0 %1202 }
 0x177   : > { %2527 = vmatmul.mubr.msk.bf16.vlgmr.msra.gmra.mrb[8].mxu1 %vm873_vm2, %v983_v16 }
 0x178   : > { %2537 = vmatpush3.bf16.xpose.msra.mxu1 %v1100_v19  ;;  %2538 = vmatprep.mubr.msk.bf16.mxu1 %vm2748_vm0, %v2747_v1 }
 0x179   : > { %2548 = vmatprep.subr.bf16.mxu1 %v2747_v1 }
 0x17f   : > { %2539 = vmatmul.mubr.msk.bf16.vlgmr.msra.gmra.mrb[12].mxu1 %vm873_vm2, %v1093_v21 }
 0x180   : > { %2549 = vmatpush3.bf16.xpose.msra.mxu1 %v1210_v22  ;;  %2550 = vmatprep.mubr.msk.bf16.mxu1 %vm2748_vm0, %v2747_v1 }
 0x181   : > { %2560 = vmatprep.subr.bf16.mxu1 %v2747_v1 }
 0x187   : > { %2551 = vmatmul.mubr.msk.bf16.vlgmr.msra.gmra.mrb[16].mxu1 %vm873_vm2, %v1203_v23 }
 0x188   : > { %2564 = vmatprep.mubr.msk.bf16.mxu1 %vm2748_vm0, %v2747_v1 }
 0x242   : > { %v914_v33 = vpop.f32.mrb[4].mxu1 }
 0x243   : > { %v915_v34 = vadd.f32 %v914_v33, %v866_v32  ;;  %v2516_v35 = vpop.f32.mrb[5].mxu1 }
 0x244   : > { %v917_v36 = vpop.f32.mrb[6].mxu1 }
 0x245   : > { %v2517_v37 = vpop.f32.mrb[7].mxu1  ;;  %v920_v38 = vsel %vm873_vm2, %v915_v34, -inf }
 0x246   : > { %921 = vmax.xlane.f32.xlu1 %v920_v38 }
 0x24a   : > { %v1026_v39 = vpop.f32.mrb[8].mxu1 }
 0x24b   : > { %v1027_v40 = vadd.f32 %v1026_v39, %v866_v32  ;;  %v2528_v41 = vpop.f32.mrb[9].mxu1 }
 0x24c   : > { %v1029_v42 = vpop.f32.mrb[10].mxu1 }
 0x24d   : > { %v2529_v43 = vpop.f32.mrb[11].mxu1  ;;  %v1032_v44 = vsel %vm873_vm2, %v1027_v40, -inf }
 0x24e   : > { %1033 = vmax.xlane.f32.xlu0 %v1032_v44 }
 0x252   : > { %v1136_v45 = vpop.f32.mrb[12].mxu1 }
 0x253   : > { %v1137_v46 = vadd.f32 %v1136_v45, %v866_v32  ;;  %v2540_v47 = vpop.f32.mrb[13].mxu1 }
 0x254   : > { %v1139_v48 = vpop.f32.mrb[14].mxu1 }
 0x255   : > { %v2541_v49 = vpop.f32.mrb[15].mxu1  ;;  %v1142_v50 = vsel %vm873_vm2, %v1137_v46, -inf }
 0x256   : > { %1143 = vmax.xlane.f32.xlu0 %v1142_v50 }
 0x25a   : > { %v1246_v51 = vpop.f32.mrb[16].mxu1 }
 0x25b   : > { %v1247_v52 = vadd.f32 %v1246_v51, %v866_v32  ;;  %v2552_v53 = vpop.f32.mrb[17].mxu1 }
 0x25c   : > { %v1249_v54 = vpop.f32.mrb[18].mxu1 }
 0x25d   : > { %v2553_v55 = vpop.f32.mrb[19].mxu1  ;;  %v1252_v56 = vsel %vm873_vm2, %v1247_v52, -inf }
 0x25e   : > { %1253 = vmax.xlane.f32.xlu1 %v1252_v56 }
 0x2d3   : > { %v922_v57 = vpop.xlane.xlu1 %921 }
 0x2d4   : > { %v923_v58 = vsub.f32 %v915_v34, %v922_v57 }
 0x2d6   : > { %v924_v59 = vmul.f32 1.442695, %v923_v58 }
 0x2d8   : > { %2701 = vpow2.f32 %v924_v59 }
 0x2db   : > { %v1034_v60 = vpop.xlane.xlu0 %1033 }
 0x2dc   : > { %v1035_v61 = vsub.f32 %v1027_v40, %v1034_v60 }
 0x2de   : > { %v1036_v62 = vmul.f32 1.442695, %v1035_v61 }
 0x2e0   : > { %2703 = vpow2.f32 %v1036_v62 }
 0x2e2   : > { %v2702_v63 = vpop.eup %2701 }
 0x2e3   : > { %v1144_v0 = vpop.xlane.xlu0 %1143  ;;  %v926_v2 = vsel %vm873_vm2, %v2702_v63, 0.0 }
 0x2e4   : > { %v1145_v4 = vsub.f32 %v1137_v46, %v1144_v0  ;;  %927 = vadd.xlane.f32.xlu0 %v926_v2 }
 0x2e6   : > { %v1146_v5 = vmul.f32 1.442695, %v1145_v4 }
 0x2e8   : > { %2705 = vpow2.f32 %v1146_v5 }
 0x2ea   : > { %v2704_v6 = vpop.eup %2703 }
 0x2eb   : > { %v1038_v7 = vsel %vm873_vm2, %v2704_v6, 0.0  ;;  %v1254_v11 = vpop.xlane.xlu1 %1253 }
 0x2ec   : > { %1039 = vadd.xlane.f32.xlu1 %v1038_v7  ;;  %v1255_v12 = vsub.f32 %v1247_v52, %v1254_v11 }
 0x2ee   : > { %v1256_v13 = vmul.f32 1.442695, %v1255_v12 }
 0x2f0   : > { %2707 = vpow2.f32 %v1256_v13 }
 0x2f2   : > { %v2706_v8 = vpop.eup %2705 }
 0x2f3   : > { %v1148_v9 = vsel %vm873_vm2, %v2706_v8, 0.0 }
 0x2f4   : > { %1149 = vadd.xlane.f32.xlu0 %v1148_v9 }
 0x2fa   : > { %v2708_v14 = vpop.eup %2707 }
 0x2fb   : > { %v1258_v15 = vsel %vm873_vm2, %v2708_v14, 0.0 }
 0x2fd   : > { %1044 = vrot.lane.b32.xlu1 %v2929_v10, %s2757_s25  ;;  %s3252_s25 = smov 8  }
 0x30a   : > { %932 = vrot.lane.b32.xlu0 %v2929_v10, %s2758_s8  ;;  %s3250_s8 = smov 24  }
 0x30e   : > { %1264 = vrot.lane.b32.xlu0 %v2929_v10, %s2759_s4  ;;  %s3270_s4 = sld [smem:[#allocation9_spill]] }
 0x314   : > { %v2407_v5 = vld [vmem:[%s3270_s4] ss:$0 sm:$0xff]  ;;  %s3273_s4 = smov 104  }
 0x321   : > { %1259 = vadd.xlane.f32.xlu1 %v1258_v15 }
 0x332   : > { %1154 = vrot.lane.b32.xlu1 %v2929_v10, %s2760_s1  ;;  %s3269_s1 = sld [smem:[#allocation8_spill]] }
 0x338   : > { %v2687_v50 = vld [vmem:[%s3269_s1] sm:$0xff]   ;;  %v2688_v51 = vld [vmem:[%s3269_s1 + $0x8] sm:$0xff]  }
 0x339   : > { %2561 = vmatpush3.bf16.msra.mxu1 %v2687_v50 }
 0x33a   : > { %2562 = vmatprep.subr.bf16.mxu1 %v2747_v1 }
 0x33d   : > { %2563 = vmatpush3.bf16.msra.mxu1 %v2688_v51 }
 0x33e   : > { %2576 = vmatprep.subr.bf16.mxu1 %v2747_v1 }
 0x371   : > { %v928_v16 = vpop.xlane.xlu0 %927 }
 0x372   : > { %2709 = vrcp.f32 %v928_v16 }
 0x379   : > { %v1040_v17 = vpop.xlane.xlu1 %1039 }
 0x37a   : > { %2711 = vrcp.f32 %v1040_v17 }
 0x37c   : > { %v2710_v18 = vpop.eup %2709 }
 0x37d   : > { %v930_v20 = vmul.f32 %v2710_v18, %v2702_v63  ;;  %v1045_v23 = vpop.permute.xlu1 %1044 }
 0x37e   : > { %v1050_v29 = vsel %vm937_vm7, %v1045_v23, 0  ;;  %v2692_v23 = vld [vmem:[%s3230_s10 + $0x8] sm:$0xff]  }
 0x37f   : > { %v931_v24 = vpack.c.bf16 %v930_v20, %v930_v20  ;;  %v2690_v20 = vld [vmem:[%s3232_s12 + $0x8] sm:$0xff]  }
 0x381   : > { %v1150_v19 = vpop.xlane.xlu0 %1149 }
 0x382   : > { %2713 = vrcp.f32 %v1150_v19 }
 0x384   : > { %v2712_v25 = vpop.eup %2711 }
 0x385   : > { %v933_v21 = vpop.permute.xlu0 %932  ;;  %v1042_v10 = vmul.f32 %v2712_v25, %v2704_v6  ;;  %v1392_v6 = vunpack.c.l.bf16 %v2920_v3  ;;  %v2689_v3 = vld [vmem:[%s3232_s12] sm:$0xff]  }
 0x386   : > { %v939_v22 = vsel %vm937_vm7, %v933_v21, 0  ;;  %v780_v21 = vld [vmem:[%s767_s3] sm:$0xf]  ;;  %s3272_s3 = sld [smem:[#allocation10_spill]] }
 0x387   : > { %2519 = vmatpush3.bf16.msra.mxu0 %v939_v22  ;;  %v1043_v30 = vpack.c.bf16 %v1042_v10, %v1042_v10  ;;  %v2691_v22 = vld [vmem:[%s3230_s10] sm:$0xff]  }
 0x388   : > { %2530 = vmatprep.subr.bf16.mxu0 %v2747_v1 }
 0x389   : > { %v1265_v36 = vpop.permute.xlu0 %1264 }
 0x38a   : > { %2521 = vmatmul.mubr.msk.bf16.vlgmr.msra.gmra.mrb[0].mxu0 %vm873_vm2, %v931_v24  ;;  %v1270_v38 = vsel %vm937_vm7, %v1265_v36, 0  ;;  %v2417_v36 = vld [vmem:[%s3233_s13] ss:$0 sm:$0xff] }
 0x38b   : > { %2531 = vmatpush3.bf16.msra.mxu0 %v1050_v29  ;;  %2532 = vmatprep.mubr.msk.bf16.mxu0 %vm2748_vm0, %v2747_v1 }
 0x38c   : > { %2542 = vmatprep.subr.bf16.mxu0 %v2747_v1  ;;  %v2714_v31 = vpop.eup %2713 }
 0x38d   : > { %v1152_v33 = vmul.f32 %v2714_v31, %v2706_v8 }
 0x38f   : > { %v1153_v37 = vpack.c.bf16 %v1152_v33, %v1152_v33 }
 0x392   : > { %2533 = vmatmul.mubr.msk.bf16.vlgmr.msra.gmra.mrb[4].mxu0 %vm873_vm2, %v1043_v30  ;;  %v2411_v30 = vld [vmem:[%s3272_s3] ss:$0 sm:$0xff]  ;;  %s3274_s3 = sld [smem:[#allocation5_spill]] }
 0x393   : > { %2544 = vmatprep.mubr.msk.bf16.mxu0 %vm2748_vm0, %v2747_v1 }
 0x3ae   : > { %v1260_v32 = vpop.xlane.xlu1 %1259 }
 0x3af   : > { %2715 = vrcp.f32 %v1260_v32  ;;  %v2412_v32 = vld [vmem:[%s3229_s9] ss:$0 sm:$0xff] }
 0x3b2   : > { %v1155_v34 = vpop.permute.xlu1 %1154 }
 0x3b3   : > { %v1160_v35 = vsel %vm937_vm7, %v1155_v34, 0 }
 0x3b4   : > { %2543 = vmatpush3.bf16.msra.mxu0 %v1160_v35 }
 0x3b5   : > { %2554 = vmatprep.subr.bf16.mxu0 %v2747_v1 }
 0x3b7   : > { %2545 = vmatmul.mubr.msk.bf16.vlgmr.msra.gmra.mrb[8].mxu0 %vm873_vm2, %v1153_v37 }
 0x3b8   : > { %2555 = vmatpush3.bf16.msra.mxu0 %v1270_v38  ;;  %2556 = vmatprep.mubr.msk.bf16.mxu0 %vm2748_vm0, %v2747_v1 }
 0x3b9   : > { %v2716_v39 = vpop.eup %2715  ;;  %2568 = vmatprep.subr.bf16.mxu0 %v2747_v1 }
 0x3ba   : > { %v1262_v40 = vmul.f32 %v2716_v39, %v2708_v14 }
 0x3bc   : > { %v1263_v41 = vpack.c.bf16 %v1262_v40, %v1262_v40 }
 0x3bf   : > { %2557 = vmatmul.mubr.msk.bf16.vlgmr.msra.gmra.mrb[12].mxu0 %vm873_vm2, %v1263_v41 }
 0x3c0   : > { %2572 = vmatprep.mubr.msk.bf16.mxu0 %vm2748_vm0, %v2747_v1  ;;  %2569 = vmatpush3.bf16.msra.mxu0 %v2691_v22 }
 0x3c1   : > { %2570 = vmatprep.subr.bf16.mxu0 %v2747_v1 }
 0x3c4   : > { %2571 = vmatpush3.bf16.msra.mxu0 %v2692_v23 }
 0x3c5   : > { %2584 = vmatprep.subr.bf16.mxu0 %v2747_v1 }
 0x45d   : > { %v975_v42 = vpop.f32.mrb[0].mxu0 }
 0x45e   : > { %v2522_v43 = vpop.f32.mrb[1].mxu0 }
 0x45f   : > { %v978_v44 = vpop.f32.mrb[2].mxu0 }
 0x460   : > { %v2523_v45 = vpop.f32.mrb[3].mxu0  ;;  %v2413_v44 = vld [vmem:[%s3231_s11] ss:$0 sm:$0xff] }
 0x465   : > { %v1086_v46 = vpop.f32.mrb[4].mxu0 }
 0x466   : > { %1313 = vrot.lane.b32.xlu1 %v1086_v46, %s3252_s25  ;;  %v2534_v47 = vpop.f32.mrb[5].mxu0  ;;  %s773_s25 = scalar_lea.vmem %s3274_s3, %s3283_s26  ;;  %s3275_s26 = smov 96  }
 0x467   : > { %v1089_v48 = vpop.f32.mrb[6].mxu0  ;;  %s3280_s3 = smov 16  }
 0x468   : > { %v2535_v49 = vpop.f32.mrb[7].mxu0 }
 0x48a   : > { %v1196_v52 = vpop.f32.mrb[8].mxu0 }
 0x48b   : > { %1317 = vrot.lane.b32.xlu0 %v1196_v52, %s3251_s29  ;;  %v2546_v53 = vpop.f32.mrb[9].mxu0  ;;  %s3279_s29 = smov 8  }
 0x48c   : > { %v1199_v54 = vpop.f32.mrb[10].mxu0 }
 0x48d   : > { %v2547_v55 = vpop.f32.mrb[11].mxu0 }
 0x492   : > { %v1306_v56 = vpop.f32.mrb[12].mxu0 }
 0x493   : > { %1321 = vrot.lane.b32.xlu1 %v1306_v56, %s3250_s8  ;;  %v2558_v57 = vpop.f32.mrb[13].mxu0  ;;  %s3278_s8 = smov 88  }
 0x494   : > { %v1309_v58 = vpop.f32.mrb[14].mxu0 }
 0x495   : > { %v2559_v59 = vpop.f32.mrb[15].mxu0 }
 0x4d8   : > { %v1314_v60 = vpop.permute.xlu1 %1313 }
 0x4d9   : > { %v1324_v62 = vsel %vm873_vm2, %v975_v42, %v1314_v60 }
 0x4fd   : > { %v1318_v61 = vpop.permute.xlu0 %1317 }
 0x4fe   : > { %v1326_v63 = vsel %vm1325_vm8, %v1324_v62, %v1318_v61  ;;  %v1561_v61 = vld [vmem:[%s773_s25] sm:$0x1]  ;;  %s3281_s25 = smov 24  }
 0x4ff   : > { %vm1562_vm10 = vcmp.gt.f32.partialorder %v1561_v61, 0.5 }
 0x500   : > { %v1563_v62 = vsel %vm1562_vm10, 1, %v2756_v28 }
 0x505   : > { %v1322_v0 = vpop.permute.xlu1 %1321 }
 0x506   : > { %v1328_v2 = vsel %vm1327_vm9, %v1326_v63, %v1322_v0  ;;  %v1567_v63 = vrot.slane %v1563_v62, %v857_v27 }
 0x507   : > { %v1329_v4 = vpack.c.bf16 %v1328_v2, %v1328_v2 }
 0x508   : > { %vm1568_vm11 = vcmp.eq.s32.totalorder %v1567_v63, 1 }
 0x509   : > { %2565 = vmatmul.mubr.msk.bf16.vlgmr.msra.gmra.mrb[20].mxu1 %vm804_vm1, %v1329_v4  ;;  %v1569_v0 = vsel %vm1568_vm11, -1e+30, %v2747_v1 }
 0x50a   : > { %2580 = vmatprep.mubr.msk.bf16.mxu1 %vm2748_vm0, %v2747_v1  ;;  %2577 = vmatpush3.bf16.msra.mxu1 %v2689_v3 }
 0x50b   : > { %2578 = vmatprep.subr.bf16.mxu1 %v2747_v1 }
 0x50e   : > { %2579 = vmatpush3.bf16.msra.mxu1 %v2690_v20 }
 0x50f   : > { %2590 = vmatprep.subr.bf16.mxu1 %v2747_v1 }
 0x511   : > { %2581 = vmatmul.mubr.msk.bf16.vlgmr.msra.gmra.mrb[24].mxu1 %vm804_vm1, %v780_v21 }
 0x512   : > { %2592 = vmatprep.mubr.msk.bf16.mxu1 %vm2748_vm0, %v2747_v1 }
 0x5dc   : > { %v1386_v7 = vpop.f32.mrb[20].mxu1 }
 0x5dd   : > { %v1387_v8 = vadd.f32 %v2407_v5, %v1386_v7  ;;  %v2566_v9 = vpop.f32.mrb[21].mxu1 }
 0x5de   : > { %v1389_v11 = vpop.f32.mrb[22].mxu1 }
 0x5df   : > { %v2567_v12 = vpop.f32.mrb[23].mxu1  ;;  %v1393_v13 = vadd.f32 %v1392_v6, %v1387_v8 }
 0x5e1   : > { %v1396_v14 = vsel %vm804_vm1, %v1393_v13, 0.0 }
 0x5e2   : > { %1397 = vadd.xlane.f32.xlu0 %v1396_v14 }
 0x5e4   : > { %v1551_v37 = vpop.f32.mrb[24].mxu1 }
 0x5e5   : > { %v1552_v38 = vadd.f32 %v2417_v36, %v1551_v37  ;;  %v2582_v39 = vpop.f32.mrb[25].mxu1 }
 0x5e6   : > { %v1554_v40 = vpop.f32.mrb[26].mxu1 }
 0x5e7   : > { %v3068_v41 = vpack.c.bf16 %v1552_v38, %v1552_v38  ;;  %v2583_v42 = vpop.f32.mrb[27].mxu1 }
 0x5e9   : > { %v1577_v43 = vsel %vm873_vm2, %v3068_v41, 0 }
 0x5f8   : > { %1683 = vrot.lane.b32.xlu0 %v3068_v41, %s2750_s28 }
 0x5fc   : > { %1793 = vrot.lane.b32.xlu0 %v3068_v41, %s2753_s7 }
 0x600   : > { %1903 = vrot.lane.b32.xlu0 %v3068_v41, %s3273_s4 }
 0x66f   : > { %v1398_v15 = vpop.xlane.xlu0 %1397 }
 0x670   : > { %v1400_v16 = vmul.f32 0.03125, %v1398_v15 }
 0x672   : > { %v1401_v17 = vsub.f32 %v1393_v13, %v1400_v16 }
 0x673   : > { %v1684_v51 = vpop.permute.xlu0 %1683 }
 0x674   : > { %v1402_v18 = vmul.f32 %v1401_v17, %v1401_v17  ;;  %v1689_v53 = vsel %vm873_vm2, %v1684_v51, 0 }
 0x676   : > { %v1403_v19 = vsel %vm804_vm1, %v1402_v18, 0.0 }
 0x677   : > { %1404 = vadd.xlane.f32.xlu1 %v1403_v19  ;;  %v1794_v54 = vpop.permute.xlu0 %1793 }
 0x678   : > { %v1799_v56 = vsel %vm873_vm2, %v1794_v54, 0 }
 0x67b   : > { %v1904_v57 = vpop.permute.xlu0 %1903 }
 0x67c   : > { %v1909_v59 = vsel %vm873_vm2, %v1904_v57, 0 }
 0x704   : > { %v1405_v24 = vpop.xlane.xlu1 %1404 }
 0x705   : > { %v1406_v25 = vmul.f32 0.03125, %v1405_v24 }
 0x707   : > { %v1407_v29 = vadd.f32 1e-05, %v1406_v25 }
 0x709   : > { %2717 = vrsqrt.f32 %v1407_v29 }
 0x713   : > { %v2718_v10 = vpop.eup %2717 }
 0x714   : > { %v1409_v31 = vmul.f32 %v2718_v10, %v1401_v17 }
 0x716   : > { %v1416_v33 = vmul.f32 %v2411_v30, %v1409_v31 }
 0x718   : > { %v3058_v34 = vadd.f32 %v2412_v32, %v1416_v33 }
 0x71a   : > { %v1424_v35 = vpack.c.bf16 %v3058_v34, %v3058_v34 }
 0x71c   : > { %2573 = vmatmul.mubr.msk.bf16.vlgmr.msra.gmra.mrb[16].mxu0 %vm804_vm1, %v1424_v35 }
 0x71d   : > { %2586 = vmatprep.mubr.msk.bf16.mxu0 %vm2748_vm0, %v2747_v1  ;;  %2585 = vmatpush3.bf16.xpose.msra.mxu0 %v1577_v43 }
 0x71e   : > { %2596 = vmatprep.subr.bf16.mxu0 %v2747_v1 }
 0x7ef   : > { %v1485_v45 = vpop.f32.mrb[16].mxu0 }
 0x7f0   : > { %v1486_v46 = vadd.f32 %v2413_v44, %v1485_v45  ;;  %v2574_v47 = vpop.f32.mrb[17].mxu0 }
 0x7f1   : > { %v1488_v48 = vpop.f32.mrb[18].mxu0 }
 0x7f2   : > { %v1570_v49 = vmul.f32 0.35355338, %v1486_v46  ;;  %v2575_v50 = vpop.f32.mrb[19].mxu0 }
 0x7f4   : > { %v1571_v52 = vpack.c.bf16 %v1570_v49, %v1570_v49 }
 0x7f6   : > { %1681 = vrot.lane.b32.xlu1 %v1571_v52, %s2750_s28  ;;  %2587 = vmatmul.mubr.msk.bf16.vlgmr.msra.gmra.mrb[20].mxu0 %vm873_vm2, %v1571_v52 }
 0x7f7   : > { %2597 = vmatpush3.bf16.xpose.msra.mxu0 %v1689_v53  ;;  %2598 = vmatprep.mubr.msk.bf16.mxu0 %vm2748_vm0, %v2747_v1 }
 0x7f8   : > { %2608 = vmatprep.subr.bf16.mxu0 %v2747_v1 }
 0x7fa   : > { %1791 = vrot.lane.b32.xlu1 %v1571_v52, %s2753_s7 }
 0x7fe   : > { %1901 = vrot.lane.b32.xlu1 %v1571_v52, %s3273_s4 }
 0x868   : > { %v1682_v55 = vpop.permute.xlu1 %1681 }
 0x869   : > { %2599 = vmatmul.mubr.msk.bf16.vlgmr.msra.gmra.mrb[24].mxu0 %vm873_vm2, %v1682_v55 }
 0x86a   : > { %2609 = vmatpush3.bf16.xpose.msra.mxu0 %v1799_v56  ;;  %2610 = vmatprep.mubr.msk.bf16.mxu0 %vm2748_vm0, %v2747_v1 }
 0x86b   : > { %2620 = vmatprep.subr.bf16.mxu0 %v2747_v1 }
 0x86c   : > { %v1792_v58 = vpop.permute.xlu1 %1791 }
 0x870   : > { %v1902_v60 = vpop.permute.xlu1 %1901 }
 0x871   : > { %2611 = vmatmul.mubr.msk.bf16.vlgmr.msra.gmra.mrb[28].mxu0 %vm873_vm2, %v1792_v58 }
 0x872   : > { %2621 = vmatpush3.bf16.xpose.msra.mxu0 %v1909_v59  ;;  %2622 = vmatprep.mubr.msk.bf16.mxu0 %vm2748_vm0, %v2747_v1 }
 0x873   : > { %2632 = vmatprep.subr.bf16.mxu0 %v2747_v1 }
 0x879   : > { %2623 = vmatmul.mubr.msk.bf16.vlgmr.msra.gmra.mrb[32].mxu0 %vm873_vm2, %v1902_v60 }
 0x87a   : > { %2636 = vmatprep.mubr.msk.bf16.mxu0 %vm2748_vm0, %v2747_v1 }
 0x8c9   : > { %v1613_v2 = vpop.f32.mrb[20].mxu0 }
 0x8ca   : > { %v1614_v4 = vadd.f32 %v1613_v2, %v1569_v0  ;;  %v2588_v5 = vpop.f32.mrb[21].mxu0 }
 0x8cb   : > { %v1616_v6 = vpop.f32.mrb[22].mxu0 }
 0x8cc   : > { %v2589_v7 = vpop.f32.mrb[23].mxu0  ;;  %v1619_v8 = vsel %vm873_vm2, %v1614_v4, -inf }
 0x8cd   : > { %1620 = vmax.xlane.f32.xlu0 %v1619_v8 }
 0x93c   : > { %v1725_v9 = vpop.f32.mrb[24].mxu0 }
 0x93d   : > { %v1726_v11 = vadd.f32 %v1725_v9, %v1569_v0  ;;  %v2600_v12 = vpop.f32.mrb[25].mxu0 }
 0x93e   : > { %v1728_v13 = vpop.f32.mrb[26].mxu0 }
 0x93f   : > { %v2601_v14 = vpop.f32.mrb[27].mxu0  ;;  %v1731_v28 = vsel %vm873_vm2, %v1726_v11, -inf }
 0x940   : > { %1732 = vmax.xlane.f32.xlu1 %v1731_v28  ;;  %v2693_v14 = vld [vmem:[%s3234_s14] sm:$0xff]  }
 0x941   : > { %2633 = vmatpush3.bf16.msra.mxu0 %v2693_v14 }
 0x942   : > { %2634 = vmatprep.subr.bf16.mxu0 %v2747_v1 }
 0x944   : > { %v1835_v26 = vpop.f32.mrb[28].mxu0 }
 0x945   : > { %v1836_v27 = vadd.f32 %v1835_v26, %v1569_v0  ;;  %v2612_v15 = vpop.f32.mrb[29].mxu0 }
 0x946   : > { %v1838_v16 = vpop.f32.mrb[30].mxu0 }
 0x947   : > { %v2613_v17 = vpop.f32.mrb[31].mxu0  ;;  %v1841_v18 = vsel %vm873_vm2, %v1836_v27, -inf  ;;  %v2694_v16 = vld [vmem:[%s3234_s14 + $0x8] sm:$0xff]  }
 0x948   : > { %1842 = vmax.xlane.f32.xlu0 %v1841_v18  ;;  %2635 = vmatpush3.bf16.msra.mxu0 %v2694_v16 }
 0x949   : > { %2648 = vmatprep.subr.bf16.mxu0 %v2747_v1 }
 0x94c   : > { %v1945_v19 = vpop.f32.mrb[32].mxu0 }
 0x94d   : > { %v1946_v3 = vadd.f32 %v1945_v19, %v1569_v0  ;;  %v2624_v20 = vpop.f32.mrb[33].mxu0 }
 0x94e   : > { %v1948_v21 = vpop.f32.mrb[34].mxu0 }
 0x94f   : > { %v2625_v22 = vpop.f32.mrb[35].mxu0  ;;  %v1951_v23 = vsel %vm873_vm2, %v1946_v3, -inf }
 0x950   : > { %1952 = vmax.xlane.f32.xlu0 %v1951_v23 }
 0x95a   : > { %v1621_v24 = vpop.xlane.xlu0 %1620 }
 0x95b   : > { %v1622_v25 = vsub.f32 %v1614_v4, %v1621_v24 }
 0x95d   : > { %v1623_v29 = vmul.f32 1.442695, %v1622_v25 }
 0x95f   : > { %2719 = vpow2.f32 %v1623_v29 }
 0x969   : > { %v2720_v10 = vpop.eup %2719 }
 0x96a   : > { %v1625_v30 = vsel %vm873_vm2, %v2720_v10, 0.0 }
 0x96b   : > { %1626 = vadd.xlane.f32.xlu1 %v1625_v30 }
 0x97c   : > { %1632 = vrot.lane.b32.xlu1 %v3068_v41, %s3275_s26 }
 0x9cd   : > { %v1733_v31 = vpop.xlane.xlu1 %1732 }
 0x9ce   : > { %v1734_v32 = vsub.f32 %v1726_v11, %v1733_v31 }
 0x9d0   : > { %v1735_v33 = vmul.f32 1.442695, %v1734_v32 }
 0x9d2   : > { %2721 = vpow2.f32 %v1735_v33  ;;  %v2429_v33 = vld [vmem:[%s3235_s15] ss:$0 sm:$0xff] }
 0x9d5   : > { %v1843_v35 = vpop.xlane.xlu0 %1842 }
 0x9d6   : > { %v1844_v36 = vsub.f32 %v1836_v27, %v1843_v35 }
 0x9d8   : > { %v1845_v37 = vmul.f32 1.442695, %v1844_v36 }
 0x9da   : > { %2723 = vpow2.f32 %v1845_v37 }
 0x9dc   : > { %v2722_v38 = vpop.eup %2721 }
 0x9dd   : > { %v1953_v39 = vpop.xlane.xlu0 %1952  ;;  %v1737_v40 = vsel %vm873_vm2, %v2722_v38, 0.0 }
 0x9de   : > { %v1954_v42 = vsub.f32 %v1946_v3, %v1953_v39  ;;  %1738 = vadd.xlane.f32.xlu0 %v1737_v40 }
 0x9e0   : > { %v1955_v43 = vmul.f32 1.442695, %v1954_v42 }
 0x9e2   : > { %2725 = vpow2.f32 %v1955_v43 }
 0x9e4   : > { %v2724_v44 = vpop.eup %2723 }
 0x9e5   : > { %v1847_v45 = vsel %vm873_vm2, %v2724_v44, 0.0 }
 0x9e6   : > { %1848 = vadd.xlane.f32.xlu1 %v1847_v45 }
 0x9ec   : > { %v2726_v46 = vpop.eup %2725 }
 0x9ed   : > { %v1957_v47 = vsel %vm873_vm2, %v2726_v46, 0.0 }
 0x9ee   : > { %1958 = vadd.xlane.f32.xlu0 %v1957_v47 }
 0x9f7   : > { %1853 = vrot.lane.b32.xlu1 %v3068_v41, %s3276_s2 }
 0x9f8   : > { %v1627_v48 = vpop.xlane.xlu1 %1626 }
 0x9f9   : > { %2727 = vrcp.f32 %v1627_v48  ;;  %v2695_v48 = vld [vmem:[%s3238_s18] sm:$0xff]  }
 0x9fb   : > { %1963 = vrot.lane.b32.xlu1 %v3068_v41, %s3277_s30 }
 0x9fc   : > { %v1633_v49 = vpop.permute.xlu1 %1632 }
 0x9fd   : > { %v1638_v50 = vsel %vm937_vm7, %v1633_v49, 0  ;;  %v2696_v49 = vld [vmem:[%s3238_s18 + $0x8] sm:$0xff]  }
 0x9fe   : > { %2591 = vmatpush3.bf16.msra.mxu1 %v1638_v50  ;;  %v2698_v50 = vld [vmem:[%s3240_s20 + $0x8] sm:$0xff]  }
 0x9ff   : > { %2602 = vmatprep.subr.bf16.mxu1 %v2747_v1 }
 0xa03   : > { %v2728_v51 = vpop.eup %2727 }
 0xa04   : > { %v1629_v52 = vmul.f32 %v2728_v51, %v2720_v10  ;;  %1743 = vrot.lane.b32.xlu0 %v3068_v41, %s3278_s8 }
 0xa06   : > { %v1630_v53 = vpack.c.bf16 %v1629_v52, %v1629_v52 }
 0xa08   : > { %2593 = vmatmul.mubr.msk.bf16.vlgmr.msra.gmra.mrb[28].mxu1 %vm873_vm2, %v1630_v53 }
 0xa09   : > { %2604 = vmatprep.mubr.msk.bf16.mxu1 %vm2748_vm0, %v2747_v1 }
 0xa6b   : > { %v1739_v54 = vpop.xlane.xlu0 %1738 }
 0xa6c   : > { %2729 = vrcp.f32 %v1739_v54 }
 0xa73   : > { %v1849_v55 = vpop.xlane.xlu1 %1848 }
 0xa74   : > { %2731 = vrcp.f32 %v1849_v55  ;;  %v2433_v55 = vld [vmem:[%s3236_s16] ss:$0 sm:$0xff] }
 0xa76   : > { %v2730_v56 = vpop.eup %2729 }
 0xa77   : > { %v1741_v58 = vmul.f32 %v2730_v56, %v2722_v38  ;;  %v1854_v61 = vpop.permute.xlu1 %1853 }
 0xa78   : > { %v1859_v63 = vsel %vm937_vm7, %v1854_v61, 0  ;;  %v2699_v61 = vld [vmem:[%s3240_s20 + $0x10] sm:$0xff]  }
 0xa79   : > { %v1742_v41 = vpack.c.bf16 %v1741_v58, %v1741_v58 }
 0xa7b   : > { %v1959_v57 = vpop.xlane.xlu0 %1958  ;;  %v1964_v2 = vpop.permute.xlu1 %1963 }
 0xa7c   : > { %2733 = vrcp.f32 %v1959_v57  ;;  %v1969_v6 = vsel %vm937_vm7, %v1964_v2, 0  ;;  %v2434_v57 = vld [vmem:[%s3237_s17] ss:$0 sm:$0xff] }
 0xa7e   : > { %v2732_v62 = vpop.eup %2731 }
 0xa7f   : > { %v1744_v59 = vpop.permute.xlu0 %1743  ;;  %v1851_v0 = vmul.f32 %v2732_v62, %v2724_v44  ;;  %v2435_v62 = vld [vmem:[%s3239_s19] ss:$0 sm:$0xff] }
 0xa80   : > { %v1749_v60 = vsel %vm937_vm7, %v1744_v59, 0 }
 0xa81   : > { %2603 = vmatpush3.bf16.msra.mxu1 %v1749_v60  ;;  %v1852_v4 = vpack.c.bf16 %v1851_v0, %v1851_v0 }
 0xa82   : > { %2614 = vmatprep.subr.bf16.mxu1 %v2747_v1 }
 0xa84   : > { %2605 = vmatmul.mubr.msk.bf16.vlgmr.msra.gmra.mrb[32].mxu1 %vm873_vm2, %v1742_v41  ;;  %v2700_v41 = vld [vmem:[%s3240_s20 + $0x18] sm:$0xff]  }
 0xa85   : > { %2615 = vmatpush3.bf16.msra.mxu1 %v1859_v63  ;;  %2616 = vmatprep.mubr.msk.bf16.mxu1 %vm2748_vm0, %v2747_v1 }
 0xa86   : > { %2626 = vmatprep.subr.bf16.mxu1 %v2747_v1  ;;  %v2734_v5 = vpop.eup %2733 }
 0xa87   : > { %v1961_v7 = vmul.f32 %v2734_v5, %v2726_v46 }
 0xa89   : > { %v1962_v8 = vpack.c.bf16 %v1961_v7, %v1961_v7 }
 0xa8c   : > { %2617 = vmatmul.mubr.msk.bf16.vlgmr.msra.gmra.mrb[36].mxu1 %vm873_vm2, %v1852_v4 }
 0xa8d   : > { %2627 = vmatpush3.bf16.msra.mxu1 %v1969_v6  ;;  %2628 = vmatprep.mubr.msk.bf16.mxu1 %vm2748_vm0, %v2747_v1 }
 0xa8e   : > { %2640 = vmatprep.subr.bf16.mxu1 %v2747_v1 }
 0xa94   : > { %2629 = vmatmul.mubr.msk.bf16.vlgmr.msra.gmra.mrb[40].mxu1 %vm873_vm2, %v1962_v8 }
 0xa95   : > { %2644 = vmatprep.mubr.msk.bf16.mxu1 %vm2748_vm0, %v2747_v1  ;;  %2641 = vmatpush3.bf16.msra.mxu1 %v2695_v48 }
 0xa96   : > { %2642 = vmatprep.subr.bf16.mxu1 %v2747_v1 }
 0xa99   : > { %2643 = vmatpush3.bf16.msra.mxu1 %v2696_v49 }
 0xadb   : > { %v1674_v9 = vpop.f32.mrb[28].mxu1 }
 0xadc   : > { %v2594_v11 = vpop.f32.mrb[29].mxu1 }
 0xadd   : > { %v1677_v12 = vpop.f32.mrb[30].mxu1 }
 0xade   : > { %v2595_v13 = vpop.f32.mrb[31].mxu1 }
 0xb57   : > { %v1785_v28 = vpop.f32.mrb[32].mxu1 }
 0xb58   : > { %2012 = vrot.lane.b32.xlu0 %v1785_v28, %s3279_s29  ;;  %v2606_v26 = vpop.f32.mrb[33].mxu1  ;;  %s777_s29 = scalar_lea.vmem %s3244_s24, %s2913_s0 }
 0xb59   : > { %v1788_v27 = vpop.f32.mrb[34].mxu1 }
 0xb5a   : > { %v2607_v15 = vpop.f32.mrb[35].mxu1 }
 0xb5f   : > { %v1895_v17 = vpop.f32.mrb[36].mxu1 }
 0xb60   : > { %2016 = vrot.lane.b32.xlu1 %v1895_v17, %s3280_s3  ;;  %v2618_v18 = vpop.f32.mrb[37].mxu1 }
 0xb61   : > { %v1898_v19 = vpop.f32.mrb[38].mxu1 }
 0xb62   : > { %v2619_v3 = vpop.f32.mrb[39].mxu1 }
 0xb67   : > { %v2005_v20 = vpop.f32.mrb[40].mxu1 }
 0xb68   : > { %2020 = vrot.lane.b32.xlu0 %v2005_v20, %s3281_s25  ;;  %v2630_v21 = vpop.f32.mrb[41].mxu1 }
 0xb69   : > { %v2008_v22 = vpop.f32.mrb[42].mxu1  ;;  %v2445_v21 = vld [vmem:[%s3242_s22] ss:$0 sm:$0xff] }
 0xb6a   : > { %v2631_v23 = vpop.f32.mrb[43].mxu1 }
 0xb6b   : > { %v2446_v23 = vld [vmem:[%s3243_s23] ss:$0 sm:$0xff] }
 0xbca   : > { %v2013_v24 = vpop.permute.xlu0 %2012 }
 0xbcb   : > { %v2023_v29 = vsel %vm873_vm2, %v1674_v9, %v2013_v24 }
 0xbd2   : > { %v2017_v25 = vpop.permute.xlu1 %2016 }
 0xbd3   : > { %v2024_v10 = vsel %vm1325_vm8, %v2023_v29, %v2017_v25 }
 0xbda   : > { %v2021_v30 = vpop.permute.xlu0 %2020 }
 0xbdb   : > { %v2025_v31 = vsel %vm1327_vm9, %v2024_v10, %v2021_v30 }
 0xbdc   : > { %v2026_v32 = vpack.c.bf16 %v2025_v31, %v2025_v31 }
 0xbde   : > { %2637 = vmatmul.mubr.msk.bf16.vlgmr.msra.gmra.mrb[36].mxu0 %vm804_vm1, %v2026_v32 }
 0xbdf   : > { %2656 = vmatprep.mubr.msk.bf16.mxu0 %vm2748_vm0, %v2747_v1 }
 0xcb1   : > { %v2083_v35 = vpop.f32.mrb[36].mxu0 }
 0xcb2   : > { %v2084_v36 = vadd.f32 %v2429_v33, %v2083_v35  ;;  %v2638_v37 = vpop.f32.mrb[37].mxu0 }
 0xcb3   : > { %v2086_v38 = vpop.f32.mrb[38].mxu0 }
 0xcb4   : > { %v2639_v39 = vpop.f32.mrb[39].mxu0  ;;  %v2089_v40 = vadd.f32 %v2084_v36, %v3058_v34  ;;  %v2697_v34 = vld [vmem:[%s3240_s20] sm:$0xff]  }
 0xcb5   : > { %2649 = vmatpush3.bf16.msra.mxu0 %v2697_v34 }
 0xcb6   : > { %v2092_v42 = vsel %vm804_vm1, %v2089_v40, 0.0  ;;  %2650 = vmatprep.subr.bf16.mxu0 %v2747_v1 }
 0xcb7   : > { %2093 = vadd.xlane.f32.xlu1 %v2092_v42 }
 0xcb9   : > { %2651 = vmatpush3.bf16.msra.mxu0 %v2698_v50 }
 0xcba   : > { %2652 = vmatprep.subr.bf16.mxu0 %v2747_v1 }
 0xcbd   : > { %2653 = vmatpush3.bf16.msra.mxu0 %v2699_v61 }
 0xcbe   : > { %2654 = vmatprep.subr.bf16.mxu0 %v2747_v1  ;;  %v2439_v1 = vld [vmem:[%s3241_s21] ss:$0 sm:$0xff] }
 0xcc1   : > { %2655 = vmatpush3.bf16.msra.mxu0 %v2700_v41 }
 0xd44   : > { %v2094_v43 = vpop.xlane.xlu1 %2093 }
 0xd45   : > { %v2095_v44 = vmul.f32 0.03125, %v2094_v43 }
 0xd47   : > { %v2096_v45 = vsub.f32 %v2089_v40, %v2095_v44 }
 0xd49   : > { %v2097_v46 = vmul.f32 %v2096_v45, %v2096_v45 }
 0xd4b   : > { %v2098_v47 = vsel %vm804_vm1, %v2097_v46, 0.0 }
 0xd4c   : > { %2099 = vadd.xlane.f32.xlu0 %v2098_v47 }
 0xdd9   : > { %v2100_v51 = vpop.xlane.xlu0 %2099 }
 0xdda   : > { %v2101_v52 = vmul.f32 0.03125, %v2100_v51 }
 0xddc   : > { %v2102_v53 = vadd.f32 1e-05, %v2101_v52 }
 0xdde   : > { %2735 = vrsqrt.f32 %v2102_v53 }
 0xde8   : > { %v2736_v54 = vpop.eup %2735 }
 0xde9   : > { %v2104_v56 = vmul.f32 %v2736_v54, %v2096_v45 }
 0xdeb   : > { %v2111_v58 = vmul.f32 %v2433_v55, %v2104_v56 }
 0xded   : > { %v2118_v59 = vadd.f32 %v2434_v57, %v2111_v58 }
 0xdef   : > { %v2119_v60 = vpack.c.bf16 %v2118_v59, %v2118_v59 }
 0xdf1   : > { %2645 = vmatmul.mubr.msk.bf16.vlgmr.msra.gmra.mrb[44].mxu1 %vm804_vm1, %v2119_v60 }
 0xec4   : > { %v2180_v63 = vpop.f32.mrb[44].mxu1 }
 0xec5   : > { %v2181_v0 = vadd.f32 %v2435_v62, %v2180_v63  ;;  %v2646_v2 = vpop.f32.mrb[45].mxu1 }
 0xec6   : > { %v2183_v4 = vpop.f32.mrb[46].mxu1 }
 0xec7   : > { %v2186_v5 = vmax.f32 %v2181_v0, 0.0  ;;  %v2647_v6 = vpop.f32.mrb[47].mxu1 }
 0xec9   : > { %v2187_v7 = vpack.c.bf16 %v2186_v5, %v2186_v5 }
 0xecb   : > { %2657 = vmatmul.mubr.msk.bf16.vlgmr.msra.gmra.mrb[40].mxu0 %vm2227_vm12, %v2187_v7 }
 0xf9e   : > { %v2265_v8 = vpop.f32.mrb[40].mxu0 }
 0xf9f   : > { %v2266_v9 = vadd.f32 %v2439_v1, %v2265_v8  ;;  %v2658_v11 = vpop.f32.mrb[41].mxu0 }
 0xfa0   : > { %v2268_v12 = vpop.f32.mrb[42].mxu0 }
 0xfa1   : > { %v2659_v13 = vpop.f32.mrb[43].mxu0  ;;  %v2271_v14 = vadd.f32 %v2266_v9, %v2118_v59 }
 0xfa3   : > { %v2274_v28 = vsel %vm804_vm1, %v2271_v14, 0.0 }
 0xfa4   : > { %2275 = vadd.xlane.f32.xlu0 %v2274_v28 }
0x1031   : > { %v2276_v26 = vpop.xlane.xlu0 %2275 }
0x1032   : > { %v2277_v27 = vmul.f32 0.03125, %v2276_v26 }
0x1034   : > { %v2278_v15 = vsub.f32 %v2271_v14, %v2277_v27 }
0x1036   : > { %v2279_v16 = vmul.f32 %v2278_v15, %v2278_v15 }
0x1038   : > { %v2280_v17 = vsel %vm804_vm1, %v2279_v16, 0.0 }
0x1039   : > { %2281 = vadd.xlane.f32.xlu1 %v2280_v17 }
0x10c6   : > { %v2282_v18 = vpop.xlane.xlu1 %2281 }
0x10c7   : > { %v2283_v19 = vmul.f32 0.03125, %v2282_v18 }
0x10c9   : > { %v2284_v3 = vadd.f32 1e-05, %v2283_v19 }
0x10cb   : > { %2737 = vrsqrt.f32 %v2284_v3 }
0x10d5   : > { %v2738_v20 = vpop.eup %2737 }
0x10d6   : > { %v2286_v22 = vmul.f32 %v2738_v20, %v2278_v15 }
0x10d8   : > { %v2293_v24 = vmul.f32 %v2445_v21, %v2286_v22 }
0x10da   : > { %v2300_v25 = vadd.f32 %v2446_v23, %v2293_v24 }
0x10dc   : > { %v2301_v29 = vpack.c.bf16 %v2300_v25, %v2300_v25 }
0x10de   : > { %2303 = vst.msk [vmem:[%s777_s29] sm:$0xf] %vm2302_vm13, %v2301_v29 }
0x10df PF: > { %s34_s5 = sadd.s32 1, %s2745_s5  }
0x10e0   : > { %p31_p4 = scmp.ge.s32.totalorder %s34_s5, 4  }
0x10e2   :  { %33 = sbr.rel (!%p31_p4) target bundleno = 10 (0xa), region = 155 }

</bundles_post_ra>
